<compile_context>
chip_gen: v6e
topology: v6e:2x2x1
jax: 0.10.0
libtpu: 0.0.40
codegen_flags: <defaults>
</compile_context>

<pallas_src>
import functools
import math

import numpy as np
import jax
import jax.numpy as jnp
from jax.experimental import pallas as pl
from jax.experimental.pallas import tpu as pltpu

EPS = 1e-6  # LayerNorm eps, matches the repo's LayerNorm


# ----------------------------------------------------------------------------
# helpers
# ----------------------------------------------------------------------------
def gen_timing_signal(length, channels, min_timescale=1.0, max_timescale=1.0e4):
    """Port of _gen_timing_signal (returns (length, channels) float32)."""
    position = np.arange(length, dtype=np.float64)
    num_timescales = channels // 2
    log_timescale_increment = math.log(float(max_timescale) / float(min_timescale)) / (
        float(num_timescales) - 1
    )
    inv_timescales = min_timescale * np.exp(
        np.arange(num_timescales, dtype=np.float64) * -log_timescale_increment
    )
    scaled_time = position[:, None] * inv_timescales[None, :]
    signal = np.concatenate([np.sin(scaled_time), np.cos(scaled_time)], axis=1)
    signal = np.pad(signal, [[0, 0], [0, channels % 2]], "constant")
    return jnp.asarray(signal, dtype=jnp.float32)


def _layer_norm(v, g, b):
    # Matches the repo's LayerNorm: gamma*(x-mean)/(std+eps)+beta, torch.std's
    # default *unbiased* estimator (ddof=1).  Exact f32 reciprocal (only M of
    # them per call) for accuracy; the multiplies stay on the VPU.
    mean = jnp.mean(v, axis=-1, keepdims=True)
    var = jnp.sum((v - mean) ** 2, axis=-1, keepdims=True) * (1.0 / (v.shape[-1] - 1))
    inv = 1.0 / (jnp.sqrt(var) + EPS)
    return g * (v - mean) * inv + b


def _default_block_batch(B, L):
    """Largest divisor of B s.t. block rows (d*L) stay <= 256 (MXU-friendly M)."""
    best = 1
    for d in range(1, B + 1):
        if B % d == 0 and d * L <= 256:
            best = d
    return best


# ----------------------------------------------------------------------------
# fused encoder kernel: one grid step = `block_batch` batch elements, all layers
# ----------------------------------------------------------------------------
def encoder_kernel(
    x_ref, we_ref, t_ref,
    g1_ref, b1_ref, wqkv_ref, wo_ref,
    g2_ref, b2_ref, c1w_ref, c1b_ref, c2w_ref, c2b_ref,
    gf_ref, bf_ref,
    o_ref,
    *, num_layers, num_heads, kd, vd, seq_len, block_batch,
    conv1_stacked, conv2_stacked,
):
    bf16 = jnp.bfloat16
    M = x_ref.shape[0]          # block_batch * seq_len rows (flattened)
    L = seq_len
    Bb = block_batch
    dk = kd // num_heads
    dv = vd // num_heads

    # ---- embedding projection + timing signal (f32 accumulation) ----
    x = jnp.dot(x_ref[...], we_ref[...], preferred_element_type=jnp.float32) + t_ref[...]

    # Per-sequence boundary masks for the k=3 SAME-conv shifts (hoisted once).
    pos = jax.lax.broadcasted_iota(jnp.int32, (M, 1), 0) % L
    first_row = pos == 0
    last_row = pos == L - 1

    def conv3(y, w, bias, stacked):
        # y: (M, Cin) f32; SAME conv k=3 over each length-L sequence in the block.
        y_prev = jnp.where(first_row, 0.0, pltpu.roll(y, 1, 0))       # y[l-1], 0 at l=0
        y_next = jnp.where(last_row, 0.0, pltpu.roll(y, M - 1, 0))    # y[l+1], 0 at l=L-1
        if stacked:
            # small Cin: fuse taps into one matmul (K = 3*Cin)
            ycat = jnp.concatenate([y_prev, y, y_next], axis=-1).astype(bf16)
            out = jnp.dot(ycat, w, preferred_element_type=jnp.float32)
        else:
            # Cin >= 128: contraction already fills the MXU; skip the lane concat.
            out = jnp.dot(y_prev.astype(bf16), w[0], preferred_element_type=jnp.float32)
            out = out + jnp.dot(y.astype(bf16), w[1], preferred_element_type=jnp.float32)
            out = out + jnp.dot(y_next.astype(bf16), w[2], preferred_element_type=jnp.float32)
        return out + bias

    def layer_body(l, x):
        # ---- multi-head self-attention sub-layer (pre-LN) ----
        xn = _layer_norm(x, g1_ref[l], b1_ref[l]).astype(bf16)
        # single full-width QKV matmul; 1/sqrt(dk) pre-folded into wq host-side
        qkv = jnp.dot(xn, wqkv_ref[l], preferred_element_type=jnp.float32)   # (M, 2KD+VD)
        wo_l = wo_ref[l]                                                     # (VD, H) bf16

        per_seq = []
        for b in range(Bb):                     # static unroll over sequences in block
            r0 = b * L
            q_b = qkv[r0:r0 + L, :kd].astype(bf16)             # (L, KD)
            kT_b = qkv[r0:r0 + L, kd:2 * kd].astype(bf16).T    # (KD, L): ONE transpose
            v_b = qkv[r0:r0 + L, 2 * kd:].astype(bf16)         # (L, VD)
            upd = None
            for h in range(num_heads):          # static unroll over heads
                logits = jnp.dot(q_b[:, h * dk:(h + 1) * dk],
                                 kT_b[h * dk:(h + 1) * dk, :],   # sublane slice of kT
                                 preferred_element_type=jnp.float32)
                logits = logits - jnp.max(logits, axis=-1, keepdims=True)
                e = jnp.exp(logits)
                p = (e * pl.reciprocal(jnp.sum(e, axis=-1, keepdims=True),
                                       approx=True)).astype(bf16)
                ctx_h = jnp.dot(p, v_b[:, h * dv:(h + 1) * dv],
                                preferred_element_type=jnp.float32)          # (L, dv)
                # accumulate the output projection per head (no lane concat)
                contrib = jnp.dot(ctx_h.astype(bf16), wo_l[h * dv:(h + 1) * dv, :],
                                  preferred_element_type=jnp.float32)        # (L, H)
                upd = contrib if upd is None else upd + contrib
            per_seq.append(upd)
        attn = per_seq[0] if Bb == 1 else jnp.concatenate(per_seq, axis=0)   # sublane concat
        x = x + attn

        # ---- positionwise FFN: Conv(k=3,SAME) -> ReLU -> Conv(k=3,SAME) ----
        xn2 = _layer_norm(x, g2_ref[l], b2_ref[l])
        h1 = jnp.maximum(conv3(xn2, c1w_ref[l], c1b_ref[l], conv1_stacked), 0.0)
        x = x + conv3(h1, c2w_ref[l], c2b_ref[l], conv2_stacked)
        return x

    # Bounded-body layer loop (keeps register pressure flat per layer).
    x = jax.lax.fori_loop(0, num_layers, layer_body, x)

    # ---- final LayerNorm ----
    # Note: for toy H < 128 this is a masked partial store; real HMNet hidden
    # sizes (>=128) make the output lane-dense.
    o_ref[...] = _layer_norm(x, gf_ref[...], bf_ref[...])


# ----------------------------------------------------------------------------
# wrapper: weight prep + single fused pallas_call
# ----------------------------------------------------------------------------
def encoder_forward(x, params, timing, num_heads, block_batch=None):
    B, L, E = x.shape
    H = params["w_embed"].shape[1]
    layers = params["layers"]
    NL = len(layers)
    KD = layers[0]["wq"].shape[1]
    VD = layers[0]["wv"].shape[1]
    F = layers[0]["c1b"].shape[0]
    assert KD % num_heads == 0 and VD % num_heads == 0
    dk = KD // num_heads
    QKV = 2 * KD + VD
    bf16 = jnp.bfloat16

    if block_batch is None:
        block_batch = _default_block_batch(B, L)
    Bb = block_batch
    assert B % Bb == 0
    M = Bb * L

    # ---- host-side weight prep (bf16 matmul operands, stacked across layers) ----
    we = params["w_embed"].astype(bf16)                                      # (E, H)
    timing_tiled = jnp.tile(timing.astype(jnp.float32)[:L], (Bb, 1))         # (Bb*L, H)
    g1 = jnp.stack([lp["g1"].reshape(1, H) for lp in layers])                # (NL,1,H)
    b1 = jnp.stack([lp["b1"].reshape(1, H) for lp in layers])
    wqkv = jnp.stack([
        jnp.concatenate([lp["wq"] * (dk ** -0.5), lp["wk"], lp["wv"]], axis=1)
        for lp in layers
    ]).astype(bf16)                                                          # (NL,H,QKV)
    wo = jnp.stack([lp["wo"] for lp in layers]).astype(bf16)                 # (NL,VD,H)
    g2 = jnp.stack([lp["g2"].reshape(1, H) for lp in layers])
    b2 = jnp.stack([lp["b2"].reshape(1, H) for lp in layers])
    conv1_stacked = H < 128
    conv2_stacked = F < 128
    if conv1_stacked:
        c1w = jnp.stack([lp["c1w"].reshape(3 * H, F) for lp in layers]).astype(bf16)
    else:
        c1w = jnp.stack([lp["c1w"] for lp in layers]).astype(bf16)           # (NL,3,H,F)
    c1b = jnp.stack([lp["c1b"].reshape(1, F) for lp in layers])
    if conv2_stacked:
        c2w = jnp.stack([lp["c2w"].reshape(3 * F, H) for lp in layers]).astype(bf16)
    else:
        c2w = jnp.stack([lp["c2w"] for lp in layers]).astype(bf16)           # (NL,3,F,H)
    c2b = jnp.stack([lp["c2b"].reshape(1, H) for lp in layers])
    gf = params["gf"].reshape(1, H).astype(jnp.float32)
    bf_ = params["bf"].reshape(1, H).astype(jnp.float32)

    # bf16 input cast + flatten batch into rows on the host (free reshape).
    x_flat = x.astype(bf16).reshape(B * L, E)

    weights = (we, timing_tiled, g1, b1, wqkv, wo, g2, b2,
               c1w, c1b, c2w, c2b, gf, bf_)

    # ---- explicit VMEM budget: weights (+possible double-buffer) + I/O + acts ----
    wbytes = sum(int(w.size) * w.dtype.itemsize for w in weights)
    io_bytes = 2 * (M * E * 2 + M * H * 4)          # double-buffered in/out blocks
    act_bytes = 8 * M * max(H, F, QKV) * 4          # rough live-activation headroom
    vmem_limit = int(min(max(2 * wbytes + io_bytes + act_bytes + (4 << 20), 32 << 20),
                         64 << 20))

    kern = functools.partial(
        encoder_kernel,
        num_layers=NL, num_heads=num_heads, kd=KD, vd=VD,
        seq_len=L, block_batch=Bb,
        conv1_stacked=conv1_stacked, conv2_stacked=conv2_stacked,
    )

    def run(single_buffer_weights):
        def rep(shape):
            n = len(shape)
            kwargs = {}
            if single_buffer_weights:
                # Constant index_map across the grid -> single buffer is enough;
                # default 2-deep pipelining would just double weight VMEM.
                kwargs["pipeline_mode"] = pl.Buffered(1)
            return pl.BlockSpec(shape, lambda i: (0,) * n, **kwargs)

        in_specs = [pl.BlockSpec((M, E), lambda i: (i, 0))] + [rep(w.shape) for w in weights]
        return pl.pallas_call(
            kern,
            out_shape=jax.ShapeDtypeStruct((B * L, H), jnp.float32),
            grid=(B // Bb,),
            in_specs=in_specs,
            out_specs=pl.BlockSpec((M, H), lambda i: (i, 0)),
            compiler_params=pltpu.CompilerParams(
                dimension_semantics=("parallel",),
                vmem_limit_bytes=vmem_limit,
            ),
        )(x_flat, *weights)

    try:
        out_flat = run(single_buffer_weights=True)
    except Exception:
        # pipeline_mode=pl.Buffered(1) not supported on this jax version;
        # fall back to default (double-buffered) weight specs.
        out_flat = run(single_buffer_weights=False)

    return out_flat.reshape(B, L, H)


# ----------------------------------------------------------------------------
# deterministic parameter init (shapes from the module __init__)
# ----------------------------------------------------------------------------
def init_params(key, E, H, KD, VD, F, num_layers):
    def lin(k, fan_in, shape):
        bound = 1.0 / math.sqrt(fan_in)
        return jax.random.uniform(k, shape, jnp.float32, -bound, bound)

    keys = jax.random.split(key, 1 + num_layers)
    params = {"w_embed": lin(keys[0], E, (E, H))}  # Linear(E->H, bias=False), stored (in,out)
    layers = []
    for l in range(num_layers):
        ks = jax.random.split(keys[1 + l], 8)
        layers.append(dict(
            g1=jnp.ones((H,), jnp.float32), b1=jnp.zeros((H,), jnp.float32),
            wq=lin(ks[0], H, (H, KD)),
            wk=lin(ks[1], H, (H, KD)),
            wv=lin(ks[2], H, (H, VD)),
            wo=lin(ks[3], VD, (VD, H)),
            g2=jnp.ones((H,), jnp.float32), b2=jnp.zeros((H,), jnp.float32),
            # Conv1d(H->F, k=3) / Conv1d(F->H, k=3); stored as (tap, C_in, C_out)
            c1w=lin(ks[4], H * 3, (3, H, F)),
            c1b=lin(ks[5], H * 3, (F,)),
            c2w=lin(ks[6], F * 3, (3, F, H)),
            c2b=lin(ks[7], F * 3, (H,)),
        ))
    params["layers"] = layers
    params["gf"] = jnp.ones((H,), jnp.float32)
    params["bf"] = jnp.zeros((H,), jnp.float32)
    return params


# ----------------------------------------------------------------------------
# plain-JAX reference (f32, same math) for a sanity check
# ----------------------------------------------------------------------------
def reference_forward(x, params, timing, num_heads):
    def ln(v, g, b):
        mean = v.mean(-1, keepdims=True)
        var = ((v - mean) ** 2).sum(-1, keepdims=True) / (v.shape[-1] - 1)
        return g * (v - mean) / (jnp.sqrt(var) + EPS) + b

    h = jnp.einsum("ble,eh->blh", x, params["w_embed"]) + timing[None]
    B, L, H = h.shape
    for lp in params["layers"]:
        xn = ln(h, lp["g1"], lp["b1"])
        q = xn @ lp["wq"]; k = xn @ lp["wk"]; v = xn @ lp["wv"]
        KD, VD = q.shape[-1], v.shape[-1]
        dk, dv = KD // num_heads, VD // num_heads
        qh = q.reshape(B, L, num_heads, dk).transpose(0, 2, 1, 3) * dk ** -0.5
        kh = k.reshape(B, L, num_heads, dk).transpose(0, 2, 1, 3)
        vh = v.reshape(B, L, num_heads, dv).transpose(0, 2, 1, 3)
        p = jax.nn.softmax(qh @ kh.transpose(0, 1, 3, 2), axis=-1)
        ctx = (p @ vh).transpose(0, 2, 1, 3).reshape(B, L, VD)
        h = h + ctx @ lp["wo"]
        xn2 = ln(h, lp["g2"], lp["b2"])

        def conv(xs, w, bias):
            z = jnp.zeros_like(xs[:, :1])
            xp = jnp.concatenate([z, xs[:, :-1]], axis=1)
            xn_ = jnp.concatenate([xs[:, 1:], z], axis=1)
            return xp @ w[0] + xs @ w[1] + xn_ @ w[2] + bias

        h1 = jax.nn.relu(conv(xn2, lp["c1w"], lp["c1b"]))
        h = conv(h1, lp["c2w"], lp["c2b"]) + h
    return ln(h, params["gf"], params["bf"])


# ----------------------------------------------------------------------------
if __name__ == "__main__":
    # Small shapes consistent with the module's forward:
    B, L, E, H = 2, 8, 16, 32
    num_layers, num_heads = 2, 4
    KD = VD = 32          # total_key_depth / total_value_depth
    F = 64                # filter_size
    max_length = 100

    key = jax.random.PRNGKey(0)
    kx, kp = jax.random.split(key)
    x = jax.random.normal(kx, (B, L, E), jnp.float32)
    params = init_params(kp, E, H, KD, VD, F, num_layers)
    timing = gen_timing_signal(max_length, H)[:L, :]

    out = encoder_forward(x, params, timing, num_heads)
    out = jax.block_until_ready(out)

    ref = reference_forward(x, params, timing, num_heads)
    assert out.shape == (B, L, H)
    assert bool(jnp.all(jnp.isfinite(out)))
    # bf16 matmul operands + approx softmax reciprocal vs f32 reference.
    np.testing.assert_allclose(np.asarray(out), np.asarray(ref), rtol=5e-2, atol=1e-1)

    print("KERNEL_OK")
</pallas_src>

<mosaic_0001>
module attributes {stable_mosaic.version = 11 : i64} {
  func.func @encoder_kernel(%arg0: i32, %arg1: memref<16x16xbf16, #tpu.memory_space<vmem>>, %arg2: memref<16x32xbf16, #tpu.memory_space<vmem>>, %arg3: memref<16x32xf32, #tpu.memory_space<vmem>>, %arg4: memref<2x1x32xf32, #tpu.memory_space<vmem>>, %arg5: memref<2x1x32xf32, #tpu.memory_space<vmem>>, %arg6: memref<2x32x96xbf16, #tpu.memory_space<vmem>>, %arg7: memref<2x32x32xbf16, #tpu.memory_space<vmem>>, %arg8: memref<2x1x32xf32, #tpu.memory_space<vmem>>, %arg9: memref<2x1x32xf32, #tpu.memory_space<vmem>>, %arg10: memref<2x96x64xbf16, #tpu.memory_space<vmem>>, %arg11: memref<2x1x64xf32, #tpu.memory_space<vmem>>, %arg12: memref<2x192x32xbf16, #tpu.memory_space<vmem>>, %arg13: memref<2x1x32xf32, #tpu.memory_space<vmem>>, %arg14: memref<1x32xf32, #tpu.memory_space<vmem>>, %arg15: memref<1x32xf32, #tpu.memory_space<vmem>>, %arg16: memref<16x32xf32, #tpu.memory_space<vmem>>) attributes {dimension_semantics = [#tpu.dimension_semantics<parallel>], iteration_bounds = array<i64: 1>, scalar_prefetch = 0 : i64, scratch_operands = 0 : i64, tpu.core_type = #tpu.core_type<tc>, window_params = [{transform_indices = @transform_0, window_bounds = array<i64: 16, 16>}, {pipeline_mode = #tpu.pipeline_mode<synchronous>, transform_indices = @transform_1, window_bounds = array<i64: 16, 32>}, {pipeline_mode = #tpu.pipeline_mode<synchronous>, transform_indices = @transform_2, window_bounds = array<i64: 16, 32>}, {pipeline_mode = #tpu.pipeline_mode<synchronous>, transform_indices = @transform_3, window_bounds = array<i64: 2, 1, 32>}, {pipeline_mode = #tpu.pipeline_mode<synchronous>, transform_indices = @transform_4, window_bounds = array<i64: 2, 1, 32>}, {pipeline_mode = #tpu.pipeline_mode<synchronous>, transform_indices = @transform_5, window_bounds = array<i64: 2, 32, 96>}, {pipeline_mode = #tpu.pipeline_mode<synchronous>, transform_indices = @transform_6, window_bounds = array<i64: 2, 32, 32>}, {pipeline_mode = #tpu.pipeline_mode<synchronous>, transform_indices = @transform_7, window_bounds = array<i64: 2, 1, 32>}, {pipeline_mode = #tpu.pipeline_mode<synchronous>, transform_indices = @transform_8, window_bounds = array<i64: 2, 1, 32>}, {pipeline_mode = #tpu.pipeline_mode<synchronous>, transform_indices = @transform_9, window_bounds = array<i64: 2, 96, 64>}, {pipeline_mode = #tpu.pipeline_mode<synchronous>, transform_indices = @transform_10, window_bounds = array<i64: 2, 1, 64>}, {pipeline_mode = #tpu.pipeline_mode<synchronous>, transform_indices = @transform_11, window_bounds = array<i64: 2, 192, 32>}, {pipeline_mode = #tpu.pipeline_mode<synchronous>, transform_indices = @transform_12, window_bounds = array<i64: 2, 1, 32>}, {pipeline_mode = #tpu.pipeline_mode<synchronous>, transform_indices = @transform_13, window_bounds = array<i64: 1, 32>}, {pipeline_mode = #tpu.pipeline_mode<synchronous>, transform_indices = @transform_14, window_bounds = array<i64: 1, 32>}, {transform_indices = @transform_15, window_bounds = array<i64: 16, 32>}]} {
    %c0 = arith.constant 0 : index
    %c0_0 = arith.constant 0 : index
    %0 = vector.load %arg1[%c0, %c0_0] : memref<16x16xbf16, #tpu.memory_space<vmem>>, vector<16x16xbf16>
    %c0_1 = arith.constant 0 : index
    %c0_2 = arith.constant 0 : index
    %1 = vector.load %arg2[%c0_1, %c0_2] : memref<16x32xbf16, #tpu.memory_space<vmem>>, vector<16x32xbf16>
    %cst = arith.constant dense<0.000000e+00> : vector<16x32xf32>
    %2 = tpu.matmul %0, %1, %cst {dimension_numbers = #tpu.dot_dimension_numbers<[1], [0], [0], [1], [0, 0, 1, 1], [], []>} : vector<16x16xbf16>, vector<16x32xbf16>, vector<16x32xf32> -> vector<16x32xf32>
    %c0_3 = arith.constant 0 : index
    %c0_4 = arith.constant 0 : index
    %3 = vector.load %arg3[%c0_3, %c0_4] : memref<16x32xf32, #tpu.memory_space<vmem>>, vector<16x32xf32>
    %4 = arith.addf %2, %3 : vector<16x32xf32>
    %5 = tpu.iota {dimensions = array<i32: 0>} : vector<16x1xi32>
    %c8_i32 = arith.constant 8 : i32
    %c0_i32 = arith.constant 0 : i32
    %6 = arith.cmpi eq, %c8_i32, %c0_i32 : i32
    %c1_i32 = arith.constant 1 : i32
    %7 = arith.select %6, %c1_i32, %c8_i32 : i32
    %8 = vector.broadcast %7 : i32 to vector<16x1xi32>
    %9 = arith.remsi %5, %8 : vector<16x1xi32>
    %c0_i32_5 = arith.constant 0 : i32
    %10 = vector.broadcast %c0_i32_5 : i32 to vector<16x1xi32>
    %11 = arith.cmpi ne, %9, %10 : vector<16x1xi32>
    %c0_i32_6 = arith.constant 0 : i32
    %12 = vector.broadcast %c0_i32_6 : i32 to vector<16x1xi32>
    %13 = arith.cmpi slt, %9, %12 : vector<16x1xi32>
    %c0_i32_7 = arith.constant 0 : i32
    %14 = arith.cmpi slt, %7, %c0_i32_7 : i32
    %15 = vector.broadcast %14 : i1 to vector<16x1xi1>
    %16 = vector.broadcast %15 : vector<16x1xi1> to vector<16x1xi1>
    %17 = arith.xori %13, %16 : vector<16x1xi1>
    %18 = arith.andi %17, %11 : vector<16x1xi1>
    %19 = vector.broadcast %7 : i32 to vector<16x1xi32>
    %20 = arith.addi %9, %19 : vector<16x1xi32>
    %21 = arith.select %18, %20, %9 : vector<16x1xi1>, vector<16x1xi32>
    %c0_i32_8 = arith.constant 0 : i32
    %22 = vector.broadcast %c0_i32_8 : i32 to vector<16x1xi32>
    %23 = arith.cmpi eq, %21, %22 : vector<16x1xi32>
    %c7_i32 = arith.constant 7 : i32
    %24 = vector.broadcast %c7_i32 : i32 to vector<16x1xi32>
    %25 = arith.cmpi eq, %21, %24 : vector<16x1xi32>
    %c0_i32_9 = arith.constant 0 : i32
    %c2_i32 = arith.constant 2 : i32
    %26 = arith.addi %c0_i32_9, %c2_i32 : i32
    %c1_i32_10 = arith.constant 1 : i32
    %27 = scf.for %arg17 = %c0_i32_9 to %26 step %c1_i32_10 iter_args(%arg18 = %4) -> (vector<16x32xf32>)  : i32 {
      %55 = arith.index_cast %arg17 : i32 to index
      %c0_24 = arith.constant 0 : index
      %c0_25 = arith.constant 0 : index
      %56 = vector.load %arg4[%55, %c0_24, %c0_25] : memref<2x1x32xf32, #tpu.memory_space<vmem>>, vector<1x1x32xf32>
      %57 = vector.shape_cast %56 : vector<1x1x32xf32> to vector<1x32xf32>
      %58 = arith.index_cast %arg17 : i32 to index
      %c0_26 = arith.constant 0 : index
      %c0_27 = arith.constant 0 : index
      %59 = vector.load %arg5[%58, %c0_26, %c0_27] : memref<2x1x32xf32, #tpu.memory_space<vmem>>, vector<1x1x32xf32>
      %60 = vector.shape_cast %59 : vector<1x1x32xf32> to vector<1x32xf32>
      %cst_28 = arith.constant dense<0.000000e+00> : vector<16xf32>
      %61 = vector.multi_reduction <add>, %arg18, %cst_28 [1] : vector<16x32xf32> to vector<16xf32>
      %62 = vector.shape_cast %61 : vector<16xf32> to vector<16x1xf32>
      %cst_29 = arith.constant 3.200000e+01 : f32
      %63 = vector.broadcast %cst_29 : f32 to vector<16x1xf32>
      %64 = arith.divf %62, %63 : vector<16x1xf32>
      %65 = vector.broadcast %64 : vector<16x1xf32> to vector<16x32xf32>
      %66 = arith.subf %arg18, %65 : vector<16x32xf32>
      %67 = arith.mulf %66, %66 : vector<16x32xf32>
      %cst_30 = arith.constant dense<0.000000e+00> : vector<16xf32>
      %68 = vector.multi_reduction <add>, %67, %cst_30 [1] : vector<16x32xf32> to vector<16xf32>
      %69 = vector.shape_cast %68 : vector<16xf32> to vector<16x1xf32>
      %cst_31 = arith.constant 0.0322580636 : f32
      %70 = vector.broadcast %cst_31 : f32 to vector<16x1xf32>
      %71 = arith.mulf %69, %70 : vector<16x1xf32>
      %72 = math.sqrt %71 : vector<16x1xf32>
      %cst_32 = arith.constant 9.99999997E-7 : f32
      %73 = vector.broadcast %cst_32 : f32 to vector<16x1xf32>
      %74 = arith.addf %72, %73 : vector<16x1xf32>
      %cst_33 = arith.constant 1.000000e+00 : f32
      %75 = vector.broadcast %cst_33 : f32 to vector<16x1xf32>
      %76 = arith.divf %75, %74 : vector<16x1xf32>
      %77 = vector.broadcast %64 : vector<16x1xf32> to vector<16x32xf32>
      %78 = arith.subf %arg18, %77 : vector<16x32xf32>
      %79 = vector.broadcast %57 : vector<1x32xf32> to vector<16x32xf32>
      %80 = arith.mulf %79, %78 : vector<16x32xf32>
      %81 = vector.broadcast %76 : vector<16x1xf32> to vector<16x32xf32>
      %82 = arith.mulf %80, %81 : vector<16x32xf32>
      %83 = vector.broadcast %60 : vector<1x32xf32> to vector<16x32xf32>
      %84 = arith.addf %82, %83 : vector<16x32xf32>
      %85 = arith.truncf %84 : vector<16x32xf32> to vector<16x32xbf16>
      %86 = arith.index_cast %arg17 : i32 to index
      %c0_34 = arith.constant 0 : index
      %c0_35 = arith.constant 0 : index
      %87 = vector.load %arg6[%86, %c0_34, %c0_35] : memref<2x32x96xbf16, #tpu.memory_space<vmem>>, vector<1x32x96xbf16>
      %88 = vector.shape_cast %87 : vector<1x32x96xbf16> to vector<32x96xbf16>
      %cst_36 = arith.constant dense<0.000000e+00> : vector<16x96xf32>
      %89 = tpu.matmul %85, %88, %cst_36 {dimension_numbers = #tpu.dot_dimension_numbers<[1], [0], [0], [1], [0, 0, 1, 1], [], []>} : vector<16x32xbf16>, vector<32x96xbf16>, vector<16x96xf32> -> vector<16x96xf32>
      %90 = arith.index_cast %arg17 : i32 to index
      %c0_37 = arith.constant 0 : index
      %c0_38 = arith.constant 0 : index
      %91 = vector.load %arg7[%90, %c0_37, %c0_38] : memref<2x32x32xbf16, #tpu.memory_space<vmem>>, vector<1x32x32xbf16>
      %92 = vector.shape_cast %91 : vector<1x32x32xbf16> to vector<32x32xbf16>
      %93 = vector.extract_strided_slice %89 {offsets = [0, 0], sizes = [8, 32], strides = [1, 1]} : vector<16x96xf32> to vector<8x32xf32>
      %94 = arith.truncf %93 : vector<8x32xf32> to vector<8x32xbf16>
      %95 = vector.extract_strided_slice %89 {offsets = [0, 32], sizes = [8, 32], strides = [1, 1]} : vector<16x96xf32> to vector<8x32xf32>
      %96 = arith.truncf %95 : vector<8x32xf32> to vector<8x32xbf16>
      %97 = tpu.transpose %96, [1, 0] : vector<8x32xbf16> -> vector<32x8xbf16>
      %98 = vector.extract_strided_slice %89 {offsets = [0, 64], sizes = [8, 32], strides = [1, 1]} : vector<16x96xf32> to vector<8x32xf32>
      %99 = arith.truncf %98 : vector<8x32xf32> to vector<8x32xbf16>
      %100 = vector.extract_strided_slice %94 {offsets = [0, 0], sizes = [8, 8], strides = [1, 1]} : vector<8x32xbf16> to vector<8x8xbf16>
      %101 = vector.extract_strided_slice %97 {offsets = [0, 0], sizes = [8, 8], strides = [1, 1]} : vector<32x8xbf16> to vector<8x8xbf16>
      %cst_39 = arith.constant dense<0.000000e+00> : vector<8x8xf32>
      %102 = tpu.matmul %100, %101, %cst_39 {dimension_numbers = #tpu.dot_dimension_numbers<[1], [0], [0], [1], [0, 0, 1, 1], [], []>} : vector<8x8xbf16>, vector<8x8xbf16>, vector<8x8xf32> -> vector<8x8xf32>
      %cst_40 = arith.constant dense<0xFF800000> : vector<8xf32>
      %103 = vector.multi_reduction <maximumf>, %102, %cst_40 [1] : vector<8x8xf32> to vector<8xf32>
      %104 = vector.shape_cast %103 : vector<8xf32> to vector<8x1xf32>
      %105 = vector.broadcast %104 : vector<8x1xf32> to vector<8x8xf32>
      %106 = arith.subf %102, %105 : vector<8x8xf32>
      %107 = math.exp %106 : vector<8x8xf32>
      %cst_41 = arith.constant dense<0.000000e+00> : vector<8xf32>
      %108 = vector.multi_reduction <add>, %107, %cst_41 [1] : vector<8x8xf32> to vector<8xf32>
      %109 = vector.shape_cast %108 : vector<8xf32> to vector<8x1xf32>
      %110 = tpu.reciprocal %109 {approx = true} : vector<8x1xf32> -> vector<8x1xf32>
      %111 = vector.broadcast %110 : vector<8x1xf32> to vector<8x8xf32>
      %112 = arith.mulf %107, %111 : vector<8x8xf32>
      %113 = arith.truncf %112 : vector<8x8xf32> to vector<8x8xbf16>
      %114 = vector.extract_strided_slice %99 {offsets = [0, 0], sizes = [8, 8], strides = [1, 1]} : vector<8x32xbf16> to vector<8x8xbf16>
      %cst_42 = arith.constant dense<0.000000e+00> : vector<8x8xf32>
      %115 = tpu.matmul %113, %114, %cst_42 {dimension_numbers = #tpu.dot_dimension_numbers<[1], [0], [0], [1], [0, 0, 1, 1], [], []>} : vector<8x8xbf16>, vector<8x8xbf16>, vector<8x8xf32> -> vector<8x8xf32>
      %116 = arith.truncf %115 : vector<8x8xf32> to vector<8x8xbf16>
      %117 = vector.extract_strided_slice %92 {offsets = [0, 0], sizes = [8, 32], strides = [1, 1]} : vector<32x32xbf16> to vector<8x32xbf16>
      %cst_43 = arith.constant dense<0.000000e+00> : vector<8x32xf32>
      %118 = tpu.matmul %116, %117, %cst_43 {dimension_numbers = #tpu.dot_dimension_numbers<[1], [0], [0], [1], [0, 0, 1, 1], [], []>} : vector<8x8xbf16>, vector<8x32xbf16>, vector<8x32xf32> -> vector<8x32xf32>
      %119 = vector.extract_strided_slice %94 {offsets = [0, 8], sizes = [8, 8], strides = [1, 1]} : vector<8x32xbf16> to vector<8x8xbf16>
      %120 = vector.extract_strided_slice %97 {offsets = [8, 0], sizes = [8, 8], strides = [1, 1]} : vector<32x8xbf16> to vector<8x8xbf16>
      %cst_44 = arith.constant dense<0.000000e+00> : vector<8x8xf32>
      %121 = tpu.matmul %119, %120, %cst_44 {dimension_numbers = #tpu.dot_dimension_numbers<[1], [0], [0], [1], [0, 0, 1, 1], [], []>} : vector<8x8xbf16>, vector<8x8xbf16>, vector<8x8xf32> -> vector<8x8xf32>
      %cst_45 = arith.constant dense<0xFF800000> : vector<8xf32>
      %122 = vector.multi_reduction <maximumf>, %121, %cst_45 [1] : vector<8x8xf32> to vector<8xf32>
      %123 = vector.shape_cast %122 : vector<8xf32> to vector<8x1xf32>
      %124 = vector.broadcast %123 : vector<8x1xf32> to vector<8x8xf32>
      %125 = arith.subf %121, %124 : vector<8x8xf32>
      %126 = math.exp %125 : vector<8x8xf32>
      %cst_46 = arith.constant dense<0.000000e+00> : vector<8xf32>
      %127 = vector.multi_reduction <add>, %126, %cst_46 [1] : vector<8x8xf32> to vector<8xf32>
      %128 = vector.shape_cast %127 : vector<8xf32> to vector<8x1xf32>
      %129 = tpu.reciprocal %128 {approx = true} : vector<8x1xf32> -> vector<8x1xf32>
      %130 = vector.broadcast %129 : vector<8x1xf32> to vector<8x8xf32>
      %131 = arith.mulf %126, %130 : vector<8x8xf32>
      %132 = arith.truncf %131 : vector<8x8xf32> to vector<8x8xbf16>
      %133 = vector.extract_strided_slice %99 {offsets = [0, 8], sizes = [8, 8], strides = [1, 1]} : vector<8x32xbf16> to vector<8x8xbf16>
      %cst_47 = arith.constant dense<0.000000e+00> : vector<8x8xf32>
      %134 = tpu.matmul %132, %133, %cst_47 {dimension_numbers = #tpu.dot_dimension_numbers<[1], [0], [0], [1], [0, 0, 1, 1], [], []>} : vector<8x8xbf16>, vector<8x8xbf16>, vector<8x8xf32> -> vector<8x8xf32>
      %135 = arith.truncf %134 : vector<8x8xf32> to vector<8x8xbf16>
      %136 = vector.extract_strided_slice %92 {offsets = [8, 0], sizes = [8, 32], strides = [1, 1]} : vector<32x32xbf16> to vector<8x32xbf16>
      %cst_48 = arith.constant dense<0.000000e+00> : vector<8x32xf32>
      %137 = tpu.matmul %135, %136, %cst_48 {dimension_numbers = #tpu.dot_dimension_numbers<[1], [0], [0], [1], [0, 0, 1, 1], [], []>} : vector<8x8xbf16>, vector<8x32xbf16>, vector<8x32xf32> -> vector<8x32xf32>
      %138 = arith.addf %118, %137 : vector<8x32xf32>
      %139 = vector.extract_strided_slice %94 {offsets = [0, 16], sizes = [8, 8], strides = [1, 1]} : vector<8x32xbf16> to vector<8x8xbf16>
      %140 = vector.extract_strided_slice %97 {offsets = [16, 0], sizes = [8, 8], strides = [1, 1]} : vector<32x8xbf16> to vector<8x8xbf16>
      %cst_49 = arith.constant dense<0.000000e+00> : vector<8x8xf32>
      %141 = tpu.matmul %139, %140, %cst_49 {dimension_numbers = #tpu.dot_dimension_numbers<[1], [0], [0], [1], [0, 0, 1, 1], [], []>} : vector<8x8xbf16>, vector<8x8xbf16>, vector<8x8xf32> -> vector<8x8xf32>
      %cst_50 = arith.constant dense<0xFF800000> : vector<8xf32>
      %142 = vector.multi_reduction <maximumf>, %141, %cst_50 [1] : vector<8x8xf32> to vector<8xf32>
      %143 = vector.shape_cast %142 : vector<8xf32> to vector<8x1xf32>
      %144 = vector.broadcast %143 : vector<8x1xf32> to vector<8x8xf32>
      %145 = arith.subf %141, %144 : vector<8x8xf32>
      %146 = math.exp %145 : vector<8x8xf32>
      %cst_51 = arith.constant dense<0.000000e+00> : vector<8xf32>
      %147 = vector.multi_reduction <add>, %146, %cst_51 [1] : vector<8x8xf32> to vector<8xf32>
      %148 = vector.shape_cast %147 : vector<8xf32> to vector<8x1xf32>
      %149 = tpu.reciprocal %148 {approx = true} : vector<8x1xf32> -> vector<8x1xf32>
      %150 = vector.broadcast %149 : vector<8x1xf32> to vector<8x8xf32>
      %151 = arith.mulf %146, %150 : vector<8x8xf32>
      %152 = arith.truncf %151 : vector<8x8xf32> to vector<8x8xbf16>
      %153 = vector.extract_strided_slice %99 {offsets = [0, 16], sizes = [8, 8], strides = [1, 1]} : vector<8x32xbf16> to vector<8x8xbf16>
      %cst_52 = arith.constant dense<0.000000e+00> : vector<8x8xf32>
      %154 = tpu.matmul %152, %153, %cst_52 {dimension_numbers = #tpu.dot_dimension_numbers<[1], [0], [0], [1], [0, 0, 1, 1], [], []>} : vector<8x8xbf16>, vector<8x8xbf16>, vector<8x8xf32> -> vector<8x8xf32>
      %155 = arith.truncf %154 : vector<8x8xf32> to vector<8x8xbf16>
      %156 = vector.extract_strided_slice %92 {offsets = [16, 0], sizes = [8, 32], strides = [1, 1]} : vector<32x32xbf16> to vector<8x32xbf16>
      %cst_53 = arith.constant dense<0.000000e+00> : vector<8x32xf32>
      %157 = tpu.matmul %155, %156, %cst_53 {dimension_numbers = #tpu.dot_dimension_numbers<[1], [0], [0], [1], [0, 0, 1, 1], [], []>} : vector<8x8xbf16>, vector<8x32xbf16>, vector<8x32xf32> -> vector<8x32xf32>
      %158 = arith.addf %138, %157 : vector<8x32xf32>
      %159 = vector.extract_strided_slice %94 {offsets = [0, 24], sizes = [8, 8], strides = [1, 1]} : vector<8x32xbf16> to vector<8x8xbf16>
      %160 = vector.extract_strided_slice %97 {offsets = [24, 0], sizes = [8, 8], strides = [1, 1]} : vector<32x8xbf16> to vector<8x8xbf16>
      %cst_54 = arith.constant dense<0.000000e+00> : vector<8x8xf32>
      %161 = tpu.matmul %159, %160, %cst_54 {dimension_numbers = #tpu.dot_dimension_numbers<[1], [0], [0], [1], [0, 0, 1, 1], [], []>} : vector<8x8xbf16>, vector<8x8xbf16>, vector<8x8xf32> -> vector<8x8xf32>
      %cst_55 = arith.constant dense<0xFF800000> : vector<8xf32>
      %162 = vector.multi_reduction <maximumf>, %161, %cst_55 [1] : vector<8x8xf32> to vector<8xf32>
      %163 = vector.shape_cast %162 : vector<8xf32> to vector<8x1xf32>
      %164 = vector.broadcast %163 : vector<8x1xf32> to vector<8x8xf32>
      %165 = arith.subf %161, %164 : vector<8x8xf32>
      %166 = math.exp %165 : vector<8x8xf32>
      %cst_56 = arith.constant dense<0.000000e+00> : vector<8xf32>
      %167 = vector.multi_reduction <add>, %166, %cst_56 [1] : vector<8x8xf32> to vector<8xf32>
      %168 = vector.shape_cast %167 : vector<8xf32> to vector<8x1xf32>
      %169 = tpu.reciprocal %168 {approx = true} : vector<8x1xf32> -> vector<8x1xf32>
      %170 = vector.broadcast %169 : vector<8x1xf32> to vector<8x8xf32>
      %171 = arith.mulf %166, %170 : vector<8x8xf32>
      %172 = arith.truncf %171 : vector<8x8xf32> to vector<8x8xbf16>
      %173 = vector.extract_strided_slice %99 {offsets = [0, 24], sizes = [8, 8], strides = [1, 1]} : vector<8x32xbf16> to vector<8x8xbf16>
      %cst_57 = arith.constant dense<0.000000e+00> : vector<8x8xf32>
      %174 = tpu.matmul %172, %173, %cst_57 {dimension_numbers = #tpu.dot_dimension_numbers<[1], [0], [0], [1], [0, 0, 1, 1], [], []>} : vector<8x8xbf16>, vector<8x8xbf16>, vector<8x8xf32> -> vector<8x8xf32>
      %175 = arith.truncf %174 : vector<8x8xf32> to vector<8x8xbf16>
      %176 = vector.extract_strided_slice %92 {offsets = [24, 0], sizes = [8, 32], strides = [1, 1]} : vector<32x32xbf16> to vector<8x32xbf16>
      %cst_58 = arith.constant dense<0.000000e+00> : vector<8x32xf32>
      %177 = tpu.matmul %175, %176, %cst_58 {dimension_numbers = #tpu.dot_dimension_numbers<[1], [0], [0], [1], [0, 0, 1, 1], [], []>} : vector<8x8xbf16>, vector<8x32xbf16>, vector<8x32xf32> -> vector<8x32xf32>
      %178 = arith.addf %158, %177 : vector<8x32xf32>
      %179 = vector.extract_strided_slice %89 {offsets = [8, 0], sizes = [8, 32], strides = [1, 1]} : vector<16x96xf32> to vector<8x32xf32>
      %180 = arith.truncf %179 : vector<8x32xf32> to vector<8x32xbf16>
      %181 = vector.extract_strided_slice %89 {offsets = [8, 32], sizes = [8, 32], strides = [1, 1]} : vector<16x96xf32> to vector<8x32xf32>
      %182 = arith.truncf %181 : vector<8x32xf32> to vector<8x32xbf16>
      %183 = tpu.transpose %182, [1, 0] : vector<8x32xbf16> -> vector<32x8xbf16>
      %184 = vector.extract_strided_slice %89 {offsets = [8, 64], sizes = [8, 32], strides = [1, 1]} : vector<16x96xf32> to vector<8x32xf32>
      %185 = arith.truncf %184 : vector<8x32xf32> to vector<8x32xbf16>
      %186 = vector.extract_strided_slice %180 {offsets = [0, 0], sizes = [8, 8], strides = [1, 1]} : vector<8x32xbf16> to vector<8x8xbf16>
      %187 = vector.extract_strided_slice %183 {offsets = [0, 0], sizes = [8, 8], strides = [1, 1]} : vector<32x8xbf16> to vector<8x8xbf16>
      %cst_59 = arith.constant dense<0.000000e+00> : vector<8x8xf32>
      %188 = tpu.matmul %186, %187, %cst_59 {dimension_numbers = #tpu.dot_dimension_numbers<[1], [0], [0], [1], [0, 0, 1, 1], [], []>} : vector<8x8xbf16>, vector<8x8xbf16>, vector<8x8xf32> -> vector<8x8xf32>
      %cst_60 = arith.constant dense<0xFF800000> : vector<8xf32>
      %189 = vector.multi_reduction <maximumf>, %188, %cst_60 [1] : vector<8x8xf32> to vector<8xf32>
      %190 = vector.shape_cast %189 : vector<8xf32> to vector<8x1xf32>
      %191 = vector.broadcast %190 : vector<8x1xf32> to vector<8x8xf32>
      %192 = arith.subf %188, %191 : vector<8x8xf32>
      %193 = math.exp %192 : vector<8x8xf32>
      %cst_61 = arith.constant dense<0.000000e+00> : vector<8xf32>
      %194 = vector.multi_reduction <add>, %193, %cst_61 [1] : vector<8x8xf32> to vector<8xf32>
      %195 = vector.shape_cast %194 : vector<8xf32> to vector<8x1xf32>
      %196 = tpu.reciprocal %195 {approx = true} : vector<8x1xf32> -> vector<8x1xf32>
      %197 = vector.broadcast %196 : vector<8x1xf32> to vector<8x8xf32>
      %198 = arith.mulf %193, %197 : vector<8x8xf32>
      %199 = arith.truncf %198 : vector<8x8xf32> to vector<8x8xbf16>
      %200 = vector.extract_strided_slice %185 {offsets = [0, 0], sizes = [8, 8], strides = [1, 1]} : vector<8x32xbf16> to vector<8x8xbf16>
      %cst_62 = arith.constant dense<0.000000e+00> : vector<8x8xf32>
      %201 = tpu.matmul %199, %200, %cst_62 {dimension_numbers = #tpu.dot_dimension_numbers<[1], [0], [0], [1], [0, 0, 1, 1], [], []>} : vector<8x8xbf16>, vector<8x8xbf16>, vector<8x8xf32> -> vector<8x8xf32>
      %202 = arith.truncf %201 : vector<8x8xf32> to vector<8x8xbf16>
      %203 = vector.extract_strided_slice %92 {offsets = [0, 0], sizes = [8, 32], strides = [1, 1]} : vector<32x32xbf16> to vector<8x32xbf16>
      %cst_63 = arith.constant dense<0.000000e+00> : vector<8x32xf32>
      %204 = tpu.matmul %202, %203, %cst_63 {dimension_numbers = #tpu.dot_dimension_numbers<[1], [0], [0], [1], [0, 0, 1, 1], [], []>} : vector<8x8xbf16>, vector<8x32xbf16>, vector<8x32xf32> -> vector<8x32xf32>
      %205 = vector.extract_strided_slice %180 {offsets = [0, 8], sizes = [8, 8], strides = [1, 1]} : vector<8x32xbf16> to vector<8x8xbf16>
      %206 = vector.extract_strided_slice %183 {offsets = [8, 0], sizes = [8, 8], strides = [1, 1]} : vector<32x8xbf16> to vector<8x8xbf16>
      %cst_64 = arith.constant dense<0.000000e+00> : vector<8x8xf32>
      %207 = tpu.matmul %205, %206, %cst_64 {dimension_numbers = #tpu.dot_dimension_numbers<[1], [0], [0], [1], [0, 0, 1, 1], [], []>} : vector<8x8xbf16>, vector<8x8xbf16>, vector<8x8xf32> -> vector<8x8xf32>
      %cst_65 = arith.constant dense<0xFF800000> : vector<8xf32>
      %208 = vector.multi_reduction <maximumf>, %207, %cst_65 [1] : vector<8x8xf32> to vector<8xf32>
      %209 = vector.shape_cast %208 : vector<8xf32> to vector<8x1xf32>
      %210 = vector.broadcast %209 : vector<8x1xf32> to vector<8x8xf32>
      %211 = arith.subf %207, %210 : vector<8x8xf32>
      %212 = math.exp %211 : vector<8x8xf32>
      %cst_66 = arith.constant dense<0.000000e+00> : vector<8xf32>
      %213 = vector.multi_reduction <add>, %212, %cst_66 [1] : vector<8x8xf32> to vector<8xf32>
      %214 = vector.shape_cast %213 : vector<8xf32> to vector<8x1xf32>
      %215 = tpu.reciprocal %214 {approx = true} : vector<8x1xf32> -> vector<8x1xf32>
      %216 = vector.broadcast %215 : vector<8x1xf32> to vector<8x8xf32>
      %217 = arith.mulf %212, %216 : vector<8x8xf32>
      %218 = arith.truncf %217 : vector<8x8xf32> to vector<8x8xbf16>
      %219 = vector.extract_strided_slice %185 {offsets = [0, 8], sizes = [8, 8], strides = [1, 1]} : vector<8x32xbf16> to vector<8x8xbf16>
      %cst_67 = arith.constant dense<0.000000e+00> : vector<8x8xf32>
      %220 = tpu.matmul %218, %219, %cst_67 {dimension_numbers = #tpu.dot_dimension_numbers<[1], [0], [0], [1], [0, 0, 1, 1], [], []>} : vector<8x8xbf16>, vector<8x8xbf16>, vector<8x8xf32> -> vector<8x8xf32>
      %221 = arith.truncf %220 : vector<8x8xf32> to vector<8x8xbf16>
      %222 = vector.extract_strided_slice %92 {offsets = [8, 0], sizes = [8, 32], strides = [1, 1]} : vector<32x32xbf16> to vector<8x32xbf16>
      %cst_68 = arith.constant dense<0.000000e+00> : vector<8x32xf32>
      %223 = tpu.matmul %221, %222, %cst_68 {dimension_numbers = #tpu.dot_dimension_numbers<[1], [0], [0], [1], [0, 0, 1, 1], [], []>} : vector<8x8xbf16>, vector<8x32xbf16>, vector<8x32xf32> -> vector<8x32xf32>
      %224 = arith.addf %204, %223 : vector<8x32xf32>
      %225 = vector.extract_strided_slice %180 {offsets = [0, 16], sizes = [8, 8], strides = [1, 1]} : vector<8x32xbf16> to vector<8x8xbf16>
      %226 = vector.extract_strided_slice %183 {offsets = [16, 0], sizes = [8, 8], strides = [1, 1]} : vector<32x8xbf16> to vector<8x8xbf16>
      %cst_69 = arith.constant dense<0.000000e+00> : vector<8x8xf32>
      %227 = tpu.matmul %225, %226, %cst_69 {dimension_numbers = #tpu.dot_dimension_numbers<[1], [0], [0], [1], [0, 0, 1, 1], [], []>} : vector<8x8xbf16>, vector<8x8xbf16>, vector<8x8xf32> -> vector<8x8xf32>
      %cst_70 = arith.constant dense<0xFF800000> : vector<8xf32>
      %228 = vector.multi_reduction <maximumf>, %227, %cst_70 [1] : vector<8x8xf32> to vector<8xf32>
      %229 = vector.shape_cast %228 : vector<8xf32> to vector<8x1xf32>
      %230 = vector.broadcast %229 : vector<8x1xf32> to vector<8x8xf32>
      %231 = arith.subf %227, %230 : vector<8x8xf32>
      %232 = math.exp %231 : vector<8x8xf32>
      %cst_71 = arith.constant dense<0.000000e+00> : vector<8xf32>
      %233 = vector.multi_reduction <add>, %232, %cst_71 [1] : vector<8x8xf32> to vector<8xf32>
      %234 = vector.shape_cast %233 : vector<8xf32> to vector<8x1xf32>
      %235 = tpu.reciprocal %234 {approx = true} : vector<8x1xf32> -> vector<8x1xf32>
      %236 = vector.broadcast %235 : vector<8x1xf32> to vector<8x8xf32>
      %237 = arith.mulf %232, %236 : vector<8x8xf32>
      %238 = arith.truncf %237 : vector<8x8xf32> to vector<8x8xbf16>
      %239 = vector.extract_strided_slice %185 {offsets = [0, 16], sizes = [8, 8], strides = [1, 1]} : vector<8x32xbf16> to vector<8x8xbf16>
      %cst_72 = arith.constant dense<0.000000e+00> : vector<8x8xf32>
      %240 = tpu.matmul %238, %239, %cst_72 {dimension_numbers = #tpu.dot_dimension_numbers<[1], [0], [0], [1], [0, 0, 1, 1], [], []>} : vector<8x8xbf16>, vector<8x8xbf16>, vector<8x8xf32> -> vector<8x8xf32>
      %241 = arith.truncf %240 : vector<8x8xf32> to vector<8x8xbf16>
      %242 = vector.extract_strided_slice %92 {offsets = [16, 0], sizes = [8, 32], strides = [1, 1]} : vector<32x32xbf16> to vector<8x32xbf16>
      %cst_73 = arith.constant dense<0.000000e+00> : vector<8x32xf32>
      %243 = tpu.matmul %241, %242, %cst_73 {dimension_numbers = #tpu.dot_dimension_numbers<[1], [0], [0], [1], [0, 0, 1, 1], [], []>} : vector<8x8xbf16>, vector<8x32xbf16>, vector<8x32xf32> -> vector<8x32xf32>
      %244 = arith.addf %224, %243 : vector<8x32xf32>
      %245 = vector.extract_strided_slice %180 {offsets = [0, 24], sizes = [8, 8], strides = [1, 1]} : vector<8x32xbf16> to vector<8x8xbf16>
      %246 = vector.extract_strided_slice %183 {offsets = [24, 0], sizes = [8, 8], strides = [1, 1]} : vector<32x8xbf16> to vector<8x8xbf16>
      %cst_74 = arith.constant dense<0.000000e+00> : vector<8x8xf32>
      %247 = tpu.matmul %245, %246, %cst_74 {dimension_numbers = #tpu.dot_dimension_numbers<[1], [0], [0], [1], [0, 0, 1, 1], [], []>} : vector<8x8xbf16>, vector<8x8xbf16>, vector<8x8xf32> -> vector<8x8xf32>
      %cst_75 = arith.constant dense<0xFF800000> : vector<8xf32>
      %248 = vector.multi_reduction <maximumf>, %247, %cst_75 [1] : vector<8x8xf32> to vector<8xf32>
      %249 = vector.shape_cast %248 : vector<8xf32> to vector<8x1xf32>
      %250 = vector.broadcast %249 : vector<8x1xf32> to vector<8x8xf32>
      %251 = arith.subf %247, %250 : vector<8x8xf32>
      %252 = math.exp %251 : vector<8x8xf32>
      %cst_76 = arith.constant dense<0.000000e+00> : vector<8xf32>
      %253 = vector.multi_reduction <add>, %252, %cst_76 [1] : vector<8x8xf32> to vector<8xf32>
      %254 = vector.shape_cast %253 : vector<8xf32> to vector<8x1xf32>
      %255 = tpu.reciprocal %254 {approx = true} : vector<8x1xf32> -> vector<8x1xf32>
      %256 = vector.broadcast %255 : vector<8x1xf32> to vector<8x8xf32>
      %257 = arith.mulf %252, %256 : vector<8x8xf32>
      %258 = arith.truncf %257 : vector<8x8xf32> to vector<8x8xbf16>
      %259 = vector.extract_strided_slice %185 {offsets = [0, 24], sizes = [8, 8], strides = [1, 1]} : vector<8x32xbf16> to vector<8x8xbf16>
      %cst_77 = arith.constant dense<0.000000e+00> : vector<8x8xf32>
      %260 = tpu.matmul %258, %259, %cst_77 {dimension_numbers = #tpu.dot_dimension_numbers<[1], [0], [0], [1], [0, 0, 1, 1], [], []>} : vector<8x8xbf16>, vector<8x8xbf16>, vector<8x8xf32> -> vector<8x8xf32>
      %261 = arith.truncf %260 : vector<8x8xf32> to vector<8x8xbf16>
      %262 = vector.extract_strided_slice %92 {offsets = [24, 0], sizes = [8, 32], strides = [1, 1]} : vector<32x32xbf16> to vector<8x32xbf16>
      %cst_78 = arith.constant dense<0.000000e+00> : vector<8x32xf32>
      %263 = tpu.matmul %261, %262, %cst_78 {dimension_numbers = #tpu.dot_dimension_numbers<[1], [0], [0], [1], [0, 0, 1, 1], [], []>} : vector<8x8xbf16>, vector<8x32xbf16>, vector<8x32xf32> -> vector<8x32xf32>
      %264 = arith.addf %244, %263 : vector<8x32xf32>
      %265 = tpu.concatenate %178, %264 in 0 : vector<8x32xf32>, vector<8x32xf32> -> vector<16x32xf32>
      %266 = arith.addf %arg18, %265 : vector<16x32xf32>
      %267 = arith.index_cast %arg17 : i32 to index
      %c0_79 = arith.constant 0 : index
      %c0_80 = arith.constant 0 : index
      %268 = vector.load %arg8[%267, %c0_79, %c0_80] : memref<2x1x32xf32, #tpu.memory_space<vmem>>, vector<1x1x32xf32>
      %269 = vector.shape_cast %268 : vector<1x1x32xf32> to vector<1x32xf32>
      %270 = arith.index_cast %arg17 : i32 to index
      %c0_81 = arith.constant 0 : index
      %c0_82 = arith.constant 0 : index
      %271 = vector.load %arg9[%270, %c0_81, %c0_82] : memref<2x1x32xf32, #tpu.memory_space<vmem>>, vector<1x1x32xf32>
      %272 = vector.shape_cast %271 : vector<1x1x32xf32> to vector<1x32xf32>
      %cst_83 = arith.constant dense<0.000000e+00> : vector<16xf32>
      %273 = vector.multi_reduction <add>, %266, %cst_83 [1] : vector<16x32xf32> to vector<16xf32>
      %274 = vector.shape_cast %273 : vector<16xf32> to vector<16x1xf32>
      %cst_84 = arith.constant 3.200000e+01 : f32
      %275 = vector.broadcast %cst_84 : f32 to vector<16x1xf32>
      %276 = arith.divf %274, %275 : vector<16x1xf32>
      %277 = vector.broadcast %276 : vector<16x1xf32> to vector<16x32xf32>
      %278 = arith.subf %266, %277 : vector<16x32xf32>
      %279 = arith.mulf %278, %278 : vector<16x32xf32>
      %cst_85 = arith.constant dense<0.000000e+00> : vector<16xf32>
      %280 = vector.multi_reduction <add>, %279, %cst_85 [1] : vector<16x32xf32> to vector<16xf32>
      %281 = vector.shape_cast %280 : vector<16xf32> to vector<16x1xf32>
      %cst_86 = arith.constant 0.0322580636 : f32
      %282 = vector.broadcast %cst_86 : f32 to vector<16x1xf32>
      %283 = arith.mulf %281, %282 : vector<16x1xf32>
      %284 = math.sqrt %283 : vector<16x1xf32>
      %cst_87 = arith.constant 9.99999997E-7 : f32
      %285 = vector.broadcast %cst_87 : f32 to vector<16x1xf32>
      %286 = arith.addf %284, %285 : vector<16x1xf32>
      %cst_88 = arith.constant 1.000000e+00 : f32
      %287 = vector.broadcast %cst_88 : f32 to vector<16x1xf32>
      %288 = arith.divf %287, %286 : vector<16x1xf32>
      %289 = vector.broadcast %276 : vector<16x1xf32> to vector<16x32xf32>
      %290 = arith.subf %266, %289 : vector<16x32xf32>
      %291 = vector.broadcast %269 : vector<1x32xf32> to vector<16x32xf32>
      %292 = arith.mulf %291, %290 : vector<16x32xf32>
      %293 = vector.broadcast %288 : vector<16x1xf32> to vector<16x32xf32>
      %294 = arith.mulf %292, %293 : vector<16x32xf32>
      %295 = vector.broadcast %272 : vector<1x32xf32> to vector<16x32xf32>
      %296 = arith.addf %294, %295 : vector<16x32xf32>
      %297 = arith.index_cast %arg17 : i32 to index
      %c0_89 = arith.constant 0 : index
      %c0_90 = arith.constant 0 : index
      %298 = vector.load %arg10[%297, %c0_89, %c0_90] : memref<2x96x64xbf16, #tpu.memory_space<vmem>>, vector<1x96x64xbf16>
      %299 = vector.shape_cast %298 : vector<1x96x64xbf16> to vector<96x64xbf16>
      %300 = arith.index_cast %arg17 : i32 to index
      %c0_91 = arith.constant 0 : index
      %c0_92 = arith.constant 0 : index
      %301 = vector.load %arg11[%300, %c0_91, %c0_92] : memref<2x1x64xf32, #tpu.memory_space<vmem>>, vector<1x1x64xf32>
      %302 = vector.shape_cast %301 : vector<1x1x64xf32> to vector<1x64xf32>
      %c1_i32_93 = arith.constant 1 : i32
      %303 = tpu.dynamic_rotate %296 by %c1_i32_93 dim 0 : vector<16x32xf32>, i32 -> vector<16x32xf32>
      %cst_94 = arith.constant 0.000000e+00 : f32
      %304 = vector.shape_cast %23 : vector<16x1xi1> to vector<16x1xi1>
      %305 = vector.broadcast %304 : vector<16x1xi1> to vector<16x32xi1>
      %306 = vector.broadcast %cst_94 : f32 to vector<16x32xf32>
      %307 = arith.select %305, %306, %303 : vector<16x32xi1>, vector<16x32xf32>
      %c15_i32 = arith.constant 15 : i32
      %308 = tpu.dynamic_rotate %296 by %c15_i32 dim 0 : vector<16x32xf32>, i32 -> vector<16x32xf32>
      %cst_95 = arith.constant 0.000000e+00 : f32
      %309 = vector.shape_cast %25 : vector<16x1xi1> to vector<16x1xi1>
      %310 = vector.broadcast %309 : vector<16x1xi1> to vector<16x32xi1>
      %311 = vector.broadcast %cst_95 : f32 to vector<16x32xf32>
      %312 = arith.select %310, %311, %308 : vector<16x32xi1>, vector<16x32xf32>
      %313 = tpu.concatenate %307, %296, %312 in 1 : vector<16x32xf32>, vector<16x32xf32>, vector<16x32xf32> -> vector<16x96xf32>
      %314 = arith.truncf %313 : vector<16x96xf32> to vector<16x96xbf16>
      %cst_96 = arith.constant dense<0.000000e+00> : vector<16x64xf32>
      %315 = tpu.matmul %314, %299, %cst_96 {dimension_numbers = #tpu.dot_dimension_numbers<[1], [0], [0], [1], [0, 0, 1, 1], [], []>} : vector<16x96xbf16>, vector<96x64xbf16>, vector<16x64xf32> -> vector<16x64xf32>
      %316 = vector.broadcast %302 : vector<1x64xf32> to vector<16x64xf32>
      %317 = arith.addf %315, %316 : vector<16x64xf32>
      %cst_97 = arith.constant 0.000000e+00 : f32
      %318 = vector.broadcast %cst_97 : f32 to vector<16x64xf32>
      %319 = arith.maximumf %317, %318 : vector<16x64xf32>
      %320 = arith.index_cast %arg17 : i32 to index
      %c0_98 = arith.constant 0 : index
      %c0_99 = arith.constant 0 : index
      %321 = vector.load %arg12[%320, %c0_98, %c0_99] : memref<2x192x32xbf16, #tpu.memory_space<vmem>>, vector<1x192x32xbf16>
      %322 = vector.shape_cast %321 : vector<1x192x32xbf16> to vector<192x32xbf16>
      %323 = arith.index_cast %arg17 : i32 to index
      %c0_100 = arith.constant 0 : index
      %c0_101 = arith.constant 0 : index
      %324 = vector.load %arg13[%323, %c0_100, %c0_101] : memref<2x1x32xf32, #tpu.memory_space<vmem>>, vector<1x1x32xf32>
      %325 = vector.shape_cast %324 : vector<1x1x32xf32> to vector<1x32xf32>
      %c1_i32_102 = arith.constant 1 : i32
      %326 = tpu.dynamic_rotate %319 by %c1_i32_102 dim 0 : vector<16x64xf32>, i32 -> vector<16x64xf32>
      %cst_103 = arith.constant 0.000000e+00 : f32
      %327 = vector.shape_cast %23 : vector<16x1xi1> to vector<16x1xi1>
      %328 = vector.broadcast %327 : vector<16x1xi1> to vector<16x64xi1>
      %329 = vector.broadcast %cst_103 : f32 to vector<16x64xf32>
      %330 = arith.select %328, %329, %326 : vector<16x64xi1>, vector<16x64xf32>
      %c15_i32_104 = arith.constant 15 : i32
      %331 = tpu.dynamic_rotate %319 by %c15_i32_104 dim 0 : vector<16x64xf32>, i32 -> vector<16x64xf32>
      %cst_105 = arith.constant 0.000000e+00 : f32
      %332 = vector.shape_cast %25 : vector<16x1xi1> to vector<16x1xi1>
      %333 = vector.broadcast %332 : vector<16x1xi1> to vector<16x64xi1>
      %334 = vector.broadcast %cst_105 : f32 to vector<16x64xf32>
      %335 = arith.select %333, %334, %331 : vector<16x64xi1>, vector<16x64xf32>
      %336 = tpu.concatenate %330, %319, %335 in 1 : vector<16x64xf32>, vector<16x64xf32>, vector<16x64xf32> -> vector<16x192xf32>
      %337 = arith.truncf %336 : vector<16x192xf32> to vector<16x192xbf16>
      %cst_106 = arith.constant dense<0.000000e+00> : vector<16x32xf32>
      %338 = tpu.matmul %337, %322, %cst_106 {dimension_numbers = #tpu.dot_dimension_numbers<[1], [0], [0], [1], [0, 0, 1, 1], [], []>} : vector<16x192xbf16>, vector<192x32xbf16>, vector<16x32xf32> -> vector<16x32xf32>
      %339 = vector.broadcast %325 : vector<1x32xf32> to vector<16x32xf32>
      %340 = arith.addf %338, %339 : vector<16x32xf32>
      %341 = arith.addf %266, %340 : vector<16x32xf32>
      scf.yield %341 : vector<16x32xf32>
    }
    %c2_i32_11 = arith.constant 2 : i32
    %c0_12 = arith.constant 0 : index
    %c0_13 = arith.constant 0 : index
    %28 = vector.load %arg14[%c0_12, %c0_13] : memref<1x32xf32, #tpu.memory_space<vmem>>, vector<1x32xf32>
    %c0_14 = arith.constant 0 : index
    %c0_15 = arith.constant 0 : index
    %29 = vector.load %arg15[%c0_14, %c0_15] : memref<1x32xf32, #tpu.memory_space<vmem>>, vector<1x32xf32>
    %cst_16 = arith.constant dense<0.000000e+00> : vector<16xf32>
    %30 = vector.multi_reduction <add>, %27, %cst_16 [1] : vector<16x32xf32> to vector<16xf32>
    %31 = vector.shape_cast %30 : vector<16xf32> to vector<16x1xf32>
    %cst_17 = arith.constant 3.200000e+01 : f32
    %32 = vector.broadcast %cst_17 : f32 to vector<16x1xf32>
    %33 = arith.divf %31, %32 : vector<16x1xf32>
    %34 = vector.broadcast %33 : vector<16x1xf32> to vector<16x32xf32>
    %35 = arith.subf %27, %34 : vector<16x32xf32>
    %36 = arith.mulf %35, %35 : vector<16x32xf32>
    %cst_18 = arith.constant dense<0.000000e+00> : vector<16xf32>
    %37 = vector.multi_reduction <add>, %36, %cst_18 [1] : vector<16x32xf32> to vector<16xf32>
    %38 = vector.shape_cast %37 : vector<16xf32> to vector<16x1xf32>
    %cst_19 = arith.constant 0.0322580636 : f32
    %39 = vector.broadcast %cst_19 : f32 to vector<16x1xf32>
    %40 = arith.mulf %38, %39 : vector<16x1xf32>
    %41 = math.sqrt %40 : vector<16x1xf32>
    %cst_20 = arith.constant 9.99999997E-7 : f32
    %42 = vector.broadcast %cst_20 : f32 to vector<16x1xf32>
    %43 = arith.addf %41, %42 : vector<16x1xf32>
    %cst_21 = arith.constant 1.000000e+00 : f32
    %44 = vector.broadcast %cst_21 : f32 to vector<16x1xf32>
    %45 = arith.divf %44, %43 : vector<16x1xf32>
    %46 = vector.broadcast %33 : vector<16x1xf32> to vector<16x32xf32>
    %47 = arith.subf %27, %46 : vector<16x32xf32>
    %48 = vector.broadcast %28 : vector<1x32xf32> to vector<16x32xf32>
    %49 = arith.mulf %48, %47 : vector<16x32xf32>
    %50 = vector.broadcast %45 : vector<16x1xf32> to vector<16x32xf32>
    %51 = arith.mulf %49, %50 : vector<16x32xf32>
    %52 = vector.broadcast %29 : vector<1x32xf32> to vector<16x32xf32>
    %53 = arith.addf %51, %52 : vector<16x32xf32>
    %c0_22 = arith.constant 0 : index
    %c0_23 = arith.constant 0 : index
    %54 = vector.load %arg16[%c0_22, %c0_23] : memref<16x32xf32, #tpu.memory_space<vmem>>, vector<16x32xf32>
    tpu.vector_store %arg16[%c0_22, %c0_23], %53 {strides = array<i32>} : memref<16x32xf32, #tpu.memory_space<vmem>>, vector<16x32xf32>,
    return
  }
  func.func @transform_0(%arg0: i32) -> (i32, i32) {
    %c0_i32 = arith.constant 0 : i32
    %c0_i32_0 = arith.constant 0 : i32
    return %arg0, %c0_i32 : i32, i32
  }
  func.func @transform_1(%arg0: i32) -> (i32, i32) {
    %c0_i32 = arith.constant 0 : i32
    %c0_i32_0 = arith.constant 0 : i32
    %c0_i32_1 = arith.constant 0 : i32
    return %c0_i32, %c0_i32_0 : i32, i32
  }
  func.func @transform_2(%arg0: i32) -> (i32, i32) {
    %c0_i32 = arith.constant 0 : i32
    %c0_i32_0 = arith.constant 0 : i32
    %c0_i32_1 = arith.constant 0 : i32
    return %c0_i32, %c0_i32_0 : i32, i32
  }
  func.func @transform_3(%arg0: i32) -> (i32, i32, i32) {
    %c0_i32 = arith.constant 0 : i32
    %c0_i32_0 = arith.constant 0 : i32
    %c0_i32_1 = arith.constant 0 : i32
    %c0_i32_2 = arith.constant 0 : i32
    return %c0_i32, %c0_i32_0, %c0_i32_1 : i32, i32, i32
  }
  func.func @transform_4(%arg0: i32) -> (i32, i32, i32) {
    %c0_i32 = arith.constant 0 : i32
    %c0_i32_0 = arith.constant 0 : i32
    %c0_i32_1 = arith.constant 0 : i32
    %c0_i32_2 = arith.constant 0 : i32
    return %c0_i32, %c0_i32_0, %c0_i32_1 : i32, i32, i32
  }
  func.func @transform_5(%arg0: i32) -> (i32, i32, i32) {
    %c0_i32 = arith.constant 0 : i32
    %c0_i32_0 = arith.constant 0 : i32
    %c0_i32_1 = arith.constant 0 : i32
    %c0_i32_2 = arith.constant 0 : i32
    return %c0_i32, %c0_i32_0, %c0_i32_1 : i32, i32, i32
  }
  func.func @transform_6(%arg0: i32) -> (i32, i32, i32) {
    %c0_i32 = arith.constant 0 : i32
    %c0_i32_0 = arith.constant 0 : i32
    %c0_i32_1 = arith.constant 0 : i32
    %c0_i32_2 = arith.constant 0 : i32
    return %c0_i32, %c0_i32_0, %c0_i32_1 : i32, i32, i32
  }
  func.func @transform_7(%arg0: i32) -> (i32, i32, i32) {
    %c0_i32 = arith.constant 0 : i32
    %c0_i32_0 = arith.constant 0 : i32
    %c0_i32_1 = arith.constant 0 : i32
    %c0_i32_2 = arith.constant 0 : i32
    return %c0_i32, %c0_i32_0, %c0_i32_1 : i32, i32, i32
  }
  func.func @transform_8(%arg0: i32) -> (i32, i32, i32) {
    %c0_i32 = arith.constant 0 : i32
    %c0_i32_0 = arith.constant 0 : i32
    %c0_i32_1 = arith.constant 0 : i32
    %c0_i32_2 = arith.constant 0 : i32
    return %c0_i32, %c0_i32_0, %c0_i32_1 : i32, i32, i32
  }
  func.func @transform_9(%arg0: i32) -> (i32, i32, i32) {
    %c0_i32 = arith.constant 0 : i32
    %c0_i32_0 = arith.constant 0 : i32
    %c0_i32_1 = arith.constant 0 : i32
    %c0_i32_2 = arith.constant 0 : i32
    return %c0_i32, %c0_i32_0, %c0_i32_1 : i32, i32, i32
  }
  func.func @transform_10(%arg0: i32) -> (i32, i32, i32) {
    %c0_i32 = arith.constant 0 : i32
    %c0_i32_0 = arith.constant 0 : i32
    %c0_i32_1 = arith.constant 0 : i32
    %c0_i32_2 = arith.constant 0 : i32
    return %c0_i32, %c0_i32_0, %c0_i32_1 : i32, i32, i32
  }
  func.func @transform_11(%arg0: i32) -> (i32, i32, i32) {
    %c0_i32 = arith.constant 0 : i32
    %c0_i32_0 = arith.constant 0 : i32
    %c0_i32_1 = arith.constant 0 : i32
    %c0_i32_2 = arith.constant 0 : i32
    return %c0_i32, %c0_i32_0, %c0_i32_1 : i32, i32, i32
  }
  func.func @transform_12(%arg0: i32) -> (i32, i32, i32) {
    %c0_i32 = arith.constant 0 : i32
    %c0_i32_0 = arith.constant 0 : i32
    %c0_i32_1 = arith.constant 0 : i32
    %c0_i32_2 = arith.constant 0 : i32
    return %c0_i32, %c0_i32_0, %c0_i32_1 : i32, i32, i32
  }
  func.func @transform_13(%arg0: i32) -> (i32, i32) {
    %c0_i32 = arith.constant 0 : i32
    %c0_i32_0 = arith.constant 0 : i32
    %c0_i32_1 = arith.constant 0 : i32
    return %c0_i32, %c0_i32_0 : i32, i32
  }
  func.func @transform_14(%arg0: i32) -> (i32, i32) {
    %c0_i32 = arith.constant 0 : i32
    %c0_i32_0 = arith.constant 0 : i32
    %c0_i32_1 = arith.constant 0 : i32
    return %c0_i32, %c0_i32_0 : i32, i32
  }
  func.func @transform_15(%arg0: i32) -> (i32, i32) {
    %c0_i32 = arith.constant 0 : i32
    %c0_i32_0 = arith.constant 0 : i32
    return %arg0, %c0_i32 : i32, i32
  }
}

module attributes {stable_mosaic.version = 11 : i64} {
  func.func @encoder_kernel(%arg0: i32, %arg1: memref<16x16xbf16, #tpu.memory_space<vmem>>, %arg2: memref<16x32xbf16, #tpu.memory_space<vmem>>, %arg3: memref<16x32xf32, #tpu.memory_space<vmem>>, %arg4: memref<2x1x32xf32, #tpu.memory_space<vmem>>, %arg5: memref<2x1x32xf32, #tpu.memory_space<vmem>>, %arg6: memref<2x32x96xbf16, #tpu.memory_space<vmem>>, %arg7: memref<2x32x32xbf16, #tpu.memory_space<vmem>>, %arg8: memref<2x1x32xf32, #tpu.memory_space<vmem>>, %arg9: memref<2x1x32xf32, #tpu.memory_space<vmem>>, %arg10: memref<2x96x64xbf16, #tpu.memory_space<vmem>>, %arg11: memref<2x1x64xf32, #tpu.memory_space<vmem>>, %arg12: memref<2x192x32xbf16, #tpu.memory_space<vmem>>, %arg13: memref<2x1x32xf32, #tpu.memory_space<vmem>>, %arg14: memref<1x32xf32, #tpu.memory_space<vmem>>, %arg15: memref<1x32xf32, #tpu.memory_space<vmem>>, %arg16: memref<16x32xf32, #tpu.memory_space<vmem>>) attributes {dimension_semantics = [#tpu.dimension_semantics<parallel>], iteration_bounds = array<i64: 1>, scalar_prefetch = 0 : i64, scratch_operands = 0 : i64, tpu.core_type = #tpu.core_type<tc>, window_params = [{transform_indices = @transform_0, window_bounds = array<i64: 16, 16>}, {pipeline_mode = #tpu.pipeline_mode<synchronous>, transform_indices = @transform_1, window_bounds = array<i64: 16, 32>}, {pipeline_mode = #tpu.pipeline_mode<synchronous>, transform_indices = @transform_2, window_bounds = array<i64: 16, 32>}, {pipeline_mode = #tpu.pipeline_mode<synchronous>, transform_indices = @transform_3, window_bounds = array<i64: 2, 1, 32>}, {pipeline_mode = #tpu.pipeline_mode<synchronous>, transform_indices = @transform_4, window_bounds = array<i64: 2, 1, 32>}, {pipeline_mode = #tpu.pipeline_mode<synchronous>, transform_indices = @transform_5, window_bounds = array<i64: 2, 32, 96>}, {pipeline_mode = #tpu.pipeline_mode<synchronous>, transform_indices = @transform_6, window_bounds = array<i64: 2, 32, 32>}, {pipeline_mode = #tpu.pipeline_mode<synchronous>, transform_indices = @transform_7, window_bounds = array<i64: 2, 1, 32>}, {pipeline_mode = #tpu.pipeline_mode<synchronous>, transform_indices = @transform_8, window_bounds = array<i64: 2, 1, 32>}, {pipeline_mode = #tpu.pipeline_mode<synchronous>, transform_indices = @transform_9, window_bounds = array<i64: 2, 96, 64>}, {pipeline_mode = #tpu.pipeline_mode<synchronous>, transform_indices = @transform_10, window_bounds = array<i64: 2, 1, 64>}, {pipeline_mode = #tpu.pipeline_mode<synchronous>, transform_indices = @transform_11, window_bounds = array<i64: 2, 192, 32>}, {pipeline_mode = #tpu.pipeline_mode<synchronous>, transform_indices = @transform_12, window_bounds = array<i64: 2, 1, 32>}, {pipeline_mode = #tpu.pipeline_mode<synchronous>, transform_indices = @transform_13, window_bounds = array<i64: 1, 32>}, {pipeline_mode = #tpu.pipeline_mode<synchronous>, transform_indices = @transform_14, window_bounds = array<i64: 1, 32>}, {transform_indices = @transform_15, window_bounds = array<i64: 16, 32>}]} {
    %c0 = arith.constant 0 : index
    %c0_0 = arith.constant 0 : index
    %0 = vector.load %arg1[%c0, %c0_0] : memref<16x16xbf16, #tpu.memory_space<vmem>>, vector<16x16xbf16>
    %c0_1 = arith.constant 0 : index
    %c0_2 = arith.constant 0 : index
    %1 = vector.load %arg2[%c0_1, %c0_2] : memref<16x32xbf16, #tpu.memory_space<vmem>>, vector<16x32xbf16>
    %cst = arith.constant dense<0.000000e+00> : vector<16x32xf32>
    %2 = tpu.matmul %0, %1, %cst {dimension_numbers = #tpu.dot_dimension_numbers<[1], [0], [0], [1], [0, 0, 1, 1], [], []>} : vector<16x16xbf16>, vector<16x32xbf16>, vector<16x32xf32> -> vector<16x32xf32>
    %c0_3 = arith.constant 0 : index
    %c0_4 = arith.constant 0 : index
    %3 = vector.load %arg3[%c0_3, %c0_4] : memref<16x32xf32, #tpu.memory_space<vmem>>, vector<16x32xf32>
    %4 = arith.addf %2, %3 : vector<16x32xf32>
    %5 = tpu.iota {dimensions = array<i32: 0>} : vector<16x1xi32>
    %c8_i32 = arith.constant 8 : i32
    %c0_i32 = arith.constant 0 : i32
    %6 = arith.cmpi eq, %c8_i32, %c0_i32 : i32
    %c1_i32 = arith.constant 1 : i32
    %7 = arith.select %6, %c1_i32, %c8_i32 : i32
    %8 = vector.broadcast %7 : i32 to vector<16x1xi32>
    %9 = arith.remsi %5, %8 : vector<16x1xi32>
    %c0_i32_5 = arith.constant 0 : i32
    %10 = vector.broadcast %c0_i32_5 : i32 to vector<16x1xi32>
    %11 = arith.cmpi ne, %9, %10 : vector<16x1xi32>
    %c0_i32_6 = arith.constant 0 : i32
    %12 = vector.broadcast %c0_i32_6 : i32 to vector<16x1xi32>
    %13 = arith.cmpi slt, %9, %12 : vector<16x1xi32>
    %c0_i32_7 = arith.constant 0 : i32
    %14 = arith.cmpi slt, %7, %c0_i32_7 : i32
    %15 = vector.broadcast %14 : i1 to vector<16x1xi1>
    %16 = vector.broadcast %15 : vector<16x1xi1> to vector<16x1xi1>
    %17 = arith.xori %13, %16 : vector<16x1xi1>
    %18 = arith.andi %17, %11 : vector<16x1xi1>
    %19 = vector.broadcast %7 : i32 to vector<16x1xi32>
    %20 = arith.addi %9, %19 : vector<16x1xi32>
    %21 = arith.select %18, %20, %9 : vector<16x1xi1>, vector<16x1xi32>
    %c0_i32_8 = arith.constant 0 : i32
    %22 = vector.broadcast %c0_i32_8 : i32 to vector<16x1xi32>
    %23 = arith.cmpi eq, %21, %22 : vector<16x1xi32>
    %c7_i32 = arith.constant 7 : i32
    %24 = vector.broadcast %c7_i32 : i32 to vector<16x1xi32>
    %25 = arith.cmpi eq, %21, %24 : vector<16x1xi32>
    %c0_i32_9 = arith.constant 0 : i32
    %c2_i32 = arith.constant 2 : i32
    %26 = arith.addi %c0_i32_9, %c2_i32 : i32
    %c1_i32_10 = arith.constant 1 : i32
    %27 = scf.for %arg17 = %c0_i32_9 to %26 step %c1_i32_10 iter_args(%arg18 = %4) -> (vector<16x32xf32>)  : i32 {
      %55 = arith.index_cast %arg17 : i32 to index
      %c0_24 = arith.constant 0 : index
      %c0_25 = arith.constant 0 : index
      %56 = vector.load %arg4[%55, %c0_24, %c0_25] : memref<2x1x32xf32, #tpu.memory_space<vmem>>, vector<1x1x32xf32>
      %57 = vector.shape_cast %56 : vector<1x1x32xf32> to vector<1x32xf32>
      %58 = arith.index_cast %arg17 : i32 to index
      %c0_26 = arith.constant 0 : index
      %c0_27 = arith.constant 0 : index
      %59 = vector.load %arg5[%58, %c0_26, %c0_27] : memref<2x1x32xf32, #tpu.memory_space<vmem>>, vector<1x1x32xf32>
      %60 = vector.shape_cast %59 : vector<1x1x32xf32> to vector<1x32xf32>
      %cst_28 = arith.constant dense<0.000000e+00> : vector<16xf32>
      %61 = vector.multi_reduction <add>, %arg18, %cst_28 [1] : vector<16x32xf32> to vector<16xf32>
      %62 = vector.shape_cast %61 : vector<16xf32> to vector<16x1xf32>
      %cst_29 = arith.constant 3.200000e+01 : f32
      %63 = vector.broadcast %cst_29 : f32 to vector<16x1xf32>
      %64 = arith.divf %62, %63 : vector<16x1xf32>
      %65 = vector.broadcast %64 : vector<16x1xf32> to vector<16x32xf32>
      %66 = arith.subf %arg18, %65 : vector<16x32xf32>
      %67 = arith.mulf %66, %66 : vector<16x32xf32>
      %cst_30 = arith.constant dense<0.000000e+00> : vector<16xf32>
      %68 = vector.multi_reduction <add>, %67, %cst_30 [1] : vector<16x32xf32> to vector<16xf32>
      %69 = vector.shape_cast %68 : vector<16xf32> to vector<16x1xf32>
      %cst_31 = arith.constant 0.0322580636 : f32
      %70 = vector.broadcast %cst_31 : f32 to vector<16x1xf32>
      %71 = arith.mulf %69, %70 : vector<16x1xf32>
      %72 = math.sqrt %71 : vector<16x1xf32>
      %cst_32 = arith.constant 9.99999997E-7 : f32
      %73 = vector.broadcast %cst_32 : f32 to vector<16x1xf32>
      %74 = arith.addf %72, %73 : vector<16x1xf32>
      %cst_33 = arith.constant 1.000000e+00 : f32
      %75 = vector.broadcast %cst_33 : f32 to vector<16x1xf32>
      %76 = arith.divf %75, %74 : vector<16x1xf32>
      %77 = vector.broadcast %64 : vector<16x1xf32> to vector<16x32xf32>
      %78 = arith.subf %arg18, %77 : vector<16x32xf32>
      %79 = vector.broadcast %57 : vector<1x32xf32> to vector<16x32xf32>
      %80 = arith.mulf %79, %78 : vector<16x32xf32>
      %81 = vector.broadcast %76 : vector<16x1xf32> to vector<16x32xf32>
      %82 = arith.mulf %80, %81 : vector<16x32xf32>
      %83 = vector.broadcast %60 : vector<1x32xf32> to vector<16x32xf32>
      %84 = arith.addf %82, %83 : vector<16x32xf32>
      %85 = arith.truncf %84 : vector<16x32xf32> to vector<16x32xbf16>
      %86 = arith.index_cast %arg17 : i32 to index
      %c0_34 = arith.constant 0 : index
      %c0_35 = arith.constant 0 : index
      %87 = vector.load %arg6[%86, %c0_34, %c0_35] : memref<2x32x96xbf16, #tpu.memory_space<vmem>>, vector<1x32x96xbf16>
      %88 = vector.shape_cast %87 : vector<1x32x96xbf16> to vector<32x96xbf16>
      %cst_36 = arith.constant dense<0.000000e+00> : vector<16x96xf32>
      %89 = tpu.matmul %85, %88, %cst_36 {dimension_numbers = #tpu.dot_dimension_numbers<[1], [0], [0], [1], [0, 0, 1, 1], [], []>} : vector<16x32xbf16>, vector<32x96xbf16>, vector<16x96xf32> -> vector<16x96xf32>
      %90 = arith.index_cast %arg17 : i32 to index
      %c0_37 = arith.constant 0 : index
      %c0_38 = arith.constant 0 : index
      %91 = vector.load %arg7[%90, %c0_37, %c0_38] : memref<2x32x32xbf16, #tpu.memory_space<vmem>>, vector<1x32x32xbf16>
      %92 = vector.shape_cast %91 : vector<1x32x32xbf16> to vector<32x32xbf16>
      %93 = vector.extract_strided_slice %89 {offsets = [0, 0], sizes = [8, 32], strides = [1, 1]} : vector<16x96xf32> to vector<8x32xf32>
      %94 = arith.truncf %93 : vector<8x32xf32> to vector<8x32xbf16>
      %95 = vector.extract_strided_slice %89 {offsets = [0, 32], sizes = [8, 32], strides = [1, 1]} : vector<16x96xf32> to vector<8x32xf32>
      %96 = arith.truncf %95 : vector<8x32xf32> to vector<8x32xbf16>
      %97 = tpu.transpose %96, [1, 0] : vector<8x32xbf16> -> vector<32x8xbf16>
      %98 = vector.extract_strided_slice %89 {offsets = [0, 64], sizes = [8, 32], strides = [1, 1]} : vector<16x96xf32> to vector<8x32xf32>
      %99 = arith.truncf %98 : vector<8x32xf32> to vector<8x32xbf16>
      %100 = vector.extract_strided_slice %94 {offsets = [0, 0], sizes = [8, 8], strides = [1, 1]} : vector<8x32xbf16> to vector<8x8xbf16>
      %101 = vector.extract_strided_slice %97 {offsets = [0, 0], sizes = [8, 8], strides = [1, 1]} : vector<32x8xbf16> to vector<8x8xbf16>
      %cst_39 = arith.constant dense<0.000000e+00> : vector<8x8xf32>
      %102 = tpu.matmul %100, %101, %cst_39 {dimension_numbers = #tpu.dot_dimension_numbers<[1], [0], [0], [1], [0, 0, 1, 1], [], []>} : vector<8x8xbf16>, vector<8x8xbf16>, vector<8x8xf32> -> vector<8x8xf32>
      %cst_40 = arith.constant dense<0xFF800000> : vector<8xf32>
      %103 = vector.multi_reduction <maximumf>, %102, %cst_40 [1] : vector<8x8xf32> to vector<8xf32>
      %104 = vector.shape_cast %103 : vector<8xf32> to vector<8x1xf32>
      %105 = vector.broadcast %104 : vector<8x1xf32> to vector<8x8xf32>
      %106 = arith.subf %102, %105 : vector<8x8xf32>
      %107 = math.exp %106 : vector<8x8xf32>
      %cst_41 = arith.constant dense<0.000000e+00> : vector<8xf32>
      %108 = vector.multi_reduction <add>, %107, %cst_41 [1] : vector<8x8xf32> to vector<8xf32>
      %109 = vector.shape_cast %108 : vector<8xf32> to vector<8x1xf32>
      %110 = tpu.reciprocal %109 {approx = true} : vector<8x1xf32> -> vector<8x1xf32>
      %111 = vector.broadcast %110 : vector<8x1xf32> to vector<8x8xf32>
      %112 = arith.mulf %107, %111 : vector<8x8xf32>
      %113 = arith.truncf %112 : vector<8x8xf32> to vector<8x8xbf16>
      %114 = vector.extract_strided_slice %99 {offsets = [0, 0], sizes = [8, 8], strides = [1, 1]} : vector<8x32xbf16> to vector<8x8xbf16>
      %cst_42 = arith.constant dense<0.000000e+00> : vector<8x8xf32>
      %115 = tpu.matmul %113, %114, %cst_42 {dimension_numbers = #tpu.dot_dimension_numbers<[1], [0], [0], [1], [0, 0, 1, 1], [], []>} : vector<8x8xbf16>, vector<8x8xbf16>, vector<8x8xf32> -> vector<8x8xf32>
      %116 = arith.truncf %115 : vector<8x8xf32> to vector<8x8xbf16>
      %117 = vector.extract_strided_slice %92 {offsets = [0, 0], sizes = [8, 32], strides = [1, 1]} : vector<32x32xbf16> to vector<8x32xbf16>
      %cst_43 = arith.constant dense<0.000000e+00> : vector<8x32xf32>
      %118 = tpu.matmul %116, %117, %cst_43 {dimension_numbers = #tpu.dot_dimension_numbers<[1], [0], [0], [1], [0, 0, 1, 1], [], []>} : vector<8x8xbf16>, vector<8x32xbf16>, vector<8x32xf32> -> vector<8x32xf32>
      %119 = vector.extract_strided_slice %94 {offsets = [0, 8], sizes = [8, 8], strides = [1, 1]} : vector<8x32xbf16> to vector<8x8xbf16>
      %120 = vector.extract_strided_slice %97 {offsets = [8, 0], sizes = [8, 8], strides = [1, 1]} : vector<32x8xbf16> to vector<8x8xbf16>
      %cst_44 = arith.constant dense<0.000000e+00> : vector<8x8xf32>
      %121 = tpu.matmul %119, %120, %cst_44 {dimension_numbers = #tpu.dot_dimension_numbers<[1], [0], [0], [1], [0, 0, 1, 1], [], []>} : vector<8x8xbf16>, vector<8x8xbf16>, vector<8x8xf32> -> vector<8x8xf32>
      %cst_45 = arith.constant dense<0xFF800000> : vector<8xf32>
      %122 = vector.multi_reduction <maximumf>, %121, %cst_45 [1] : vector<8x8xf32> to vector<8xf32>
      %123 = vector.shape_cast %122 : vector<8xf32> to vector<8x1xf32>
      %124 = vector.broadcast %123 : vector<8x1xf32> to vector<8x8xf32>
      %125 = arith.subf %121, %124 : vector<8x8xf32>
      %126 = math.exp %125 : vector<8x8xf32>
      %cst_46 = arith.constant dense<0.000000e+00> : vector<8xf32>
      %127 = vector.multi_reduction <add>, %126, %cst_46 [1] : vector<8x8xf32> to vector<8xf32>
      %128 = vector.shape_cast %127 : vector<8xf32> to vector<8x1xf32>
      %129 = tpu.reciprocal %128 {approx = true} : vector<8x1xf32> -> vector<8x1xf32>
      %130 = vector.broadcast %129 : vector<8x1xf32> to vector<8x8xf32>
      %131 = arith.mulf %126, %130 : vector<8x8xf32>
      %132 = arith.truncf %131 : vector<8x8xf32> to vector<8x8xbf16>
      %133 = vector.extract_strided_slice %99 {offsets = [0, 8], sizes = [8, 8], strides = [1, 1]} : vector<8x32xbf16> to vector<8x8xbf16>
      %cst_47 = arith.constant dense<0.000000e+00> : vector<8x8xf32>
      %134 = tpu.matmul %132, %133, %cst_47 {dimension_numbers = #tpu.dot_dimension_numbers<[1], [0], [0], [1], [0, 0, 1, 1], [], []>} : vector<8x8xbf16>, vector<8x8xbf16>, vector<8x8xf32> -> vector<8x8xf32>
      %135 = arith.truncf %134 : vector<8x8xf32> to vector<8x8xbf16>
      %136 = vector.extract_strided_slice %92 {offsets = [8, 0], sizes = [8, 32], strides = [1, 1]} : vector<32x32xbf16> to vector<8x32xbf16>
      %cst_48 = arith.constant dense<0.000000e+00> : vector<8x32xf32>
      %137 = tpu.matmul %135, %136, %cst_48 {dimension_numbers = #tpu.dot_dimension_numbers<[1], [0], [0], [1], [0, 0, 1, 1], [], []>} : vector<8x8xbf16>, vector<8x32xbf16>, vector<8x32xf32> -> vector<8x32xf32>
      %138 = arith.addf %118, %137 : vector<8x32xf32>
      %139 = vector.extract_strided_slice %94 {offsets = [0, 16], sizes = [8, 8], strides = [1, 1]} : vector<8x32xbf16> to vector<8x8xbf16>
      %140 = vector.extract_strided_slice %97 {offsets = [16, 0], sizes = [8, 8], strides = [1, 1]} : vector<32x8xbf16> to vector<8x8xbf16>
      %cst_49 = arith.constant dense<0.000000e+00> : vector<8x8xf32>
      %141 = tpu.matmul %139, %140, %cst_49 {dimension_numbers = #tpu.dot_dimension_numbers<[1], [0], [0], [1], [0, 0, 1, 1], [], []>} : vector<8x8xbf16>, vector<8x8xbf16>, vector<8x8xf32> -> vector<8x8xf32>
      %cst_50 = arith.constant dense<0xFF800000> : vector<8xf32>
      %142 = vector.multi_reduction <maximumf>, %141, %cst_50 [1] : vector<8x8xf32> to vector<8xf32>
      %143 = vector.shape_cast %142 : vector<8xf32> to vector<8x1xf32>
      %144 = vector.broadcast %143 : vector<8x1xf32> to vector<8x8xf32>
      %145 = arith.subf %141, %144 : vector<8x8xf32>
      %146 = math.exp %145 : vector<8x8xf32>
      %cst_51 = arith.constant dense<0.000000e+00> : vector<8xf32>
      %147 = vector.multi_reduction <add>, %146, %cst_51 [1] : vector<8x8xf32> to vector<8xf32>
      %148 = vector.shape_cast %147 : vector<8xf32> to vector<8x1xf32>
      %149 = tpu.reciprocal %148 {approx = true} : vector<8x1xf32> -> vector<8x1xf32>
      %150 = vector.broadcast %149 : vector<8x1xf32> to vector<8x8xf32>
      %151 = arith.mulf %146, %150 : vector<8x8xf32>
      %152 = arith.truncf %151 : vector<8x8xf32> to vector<8x8xbf16>
      %153 = vector.extract_strided_slice %99 {offsets = [0, 16], sizes = [8, 8], strides = [1, 1]} : vector<8x32xbf16> to vector<8x8xbf16>
      %cst_52 = arith.constant dense<0.000000e+00> : vector<8x8xf32>
      %154 = tpu.matmul %152, %153, %cst_52 {dimension_numbers = #tpu.dot_dimension_numbers<[1], [0], [0], [1], [0, 0, 1, 1], [], []>} : vector<8x8xbf16>, vector<8x8xbf16>, vector<8x8xf32> -> vector<8x8xf32>
      %155 = arith.truncf %154 : vector<8x8xf32> to vector<8x8xbf16>
      %156 = vector.extract_strided_slice %92 {offsets = [16, 0], sizes = [8, 32], strides = [1, 1]} : vector<32x32xbf16> to vector<8x32xbf16>
      %cst_53 = arith.constant dense<0.000000e+00> : vector<8x32xf32>
      %157 = tpu.matmul %155, %156, %cst_53 {dimension_numbers = #tpu.dot_dimension_numbers<[1], [0], [0], [1], [0, 0, 1, 1], [], []>} : vector<8x8xbf16>, vector<8x32xbf16>, vector<8x32xf32> -> vector<8x32xf32>
      %158 = arith.addf %138, %157 : vector<8x32xf32>
      %159 = vector.extract_strided_slice %94 {offsets = [0, 24], sizes = [8, 8], strides = [1, 1]} : vector<8x32xbf16> to vector<8x8xbf16>
      %160 = vector.extract_strided_slice %97 {offsets = [24, 0], sizes = [8, 8], strides = [1, 1]} : vector<32x8xbf16> to vector<8x8xbf16>
      %cst_54 = arith.constant dense<0.000000e+00> : vector<8x8xf32>
      %161 = tpu.matmul %159, %160, %cst_54 {dimension_numbers = #tpu.dot_dimension_numbers<[1], [0], [0], [1], [0, 0, 1, 1], [], []>} : vector<8x8xbf16>, vector<8x8xbf16>, vector<8x8xf32> -> vector<8x8xf32>
      %cst_55 = arith.constant dense<0xFF800000> : vector<8xf32>
      %162 = vector.multi_reduction <maximumf>, %161, %cst_55 [1] : vector<8x8xf32> to vector<8xf32>
      %163 = vector.shape_cast %162 : vector<8xf32> to vector<8x1xf32>
      %164 = vector.broadcast %163 : vector<8x1xf32> to vector<8x8xf32>
      %165 = arith.subf %161, %164 : vector<8x8xf32>
      %166 = math.exp %165 : vector<8x8xf32>
      %cst_56 = arith.constant dense<0.000000e+00> : vector<8xf32>
      %167 = vector.multi_reduction <add>, %166, %cst_56 [1] : vector<8x8xf32> to vector<8xf32>
      %168 = vector.shape_cast %167 : vector<8xf32> to vector<8x1xf32>
      %169 = tpu.reciprocal %168 {approx = true} : vector<8x1xf32> -> vector<8x1xf32>
      %170 = vector.broadcast %169 : vector<8x1xf32> to vector<8x8xf32>
      %171 = arith.mulf %166, %170 : vector<8x8xf32>
      %172 = arith.truncf %171 : vector<8x8xf32> to vector<8x8xbf16>
      %173 = vector.extract_strided_slice %99 {offsets = [0, 24], sizes = [8, 8], strides = [1, 1]} : vector<8x32xbf16> to vector<8x8xbf16>
      %cst_57 = arith.constant dense<0.000000e+00> : vector<8x8xf32>
      %174 = tpu.matmul %172, %173, %cst_57 {dimension_numbers = #tpu.dot_dimension_numbers<[1], [0], [0], [1], [0, 0, 1, 1], [], []>} : vector<8x8xbf16>, vector<8x8xbf16>, vector<8x8xf32> -> vector<8x8xf32>
      %175 = arith.truncf %174 : vector<8x8xf32> to vector<8x8xbf16>
      %176 = vector.extract_strided_slice %92 {offsets = [24, 0], sizes = [8, 32], strides = [1, 1]} : vector<32x32xbf16> to vector<8x32xbf16>
      %cst_58 = arith.constant dense<0.000000e+00> : vector<8x32xf32>
      %177 = tpu.matmul %175, %176, %cst_58 {dimension_numbers = #tpu.dot_dimension_numbers<[1], [0], [0], [1], [0, 0, 1, 1], [], []>} : vector<8x8xbf16>, vector<8x32xbf16>, vector<8x32xf32> -> vector<8x32xf32>
      %178 = arith.addf %158, %177 : vector<8x32xf32>
      %179 = vector.extract_strided_slice %89 {offsets = [8, 0], sizes = [8, 32], strides = [1, 1]} : vector<16x96xf32> to vector<8x32xf32>
      %180 = arith.truncf %179 : vector<8x32xf32> to vector<8x32xbf16>
      %181 = vector.extract_strided_slice %89 {offsets = [8, 32], sizes = [8, 32], strides = [1, 1]} : vector<16x96xf32> to vector<8x32xf32>
      %182 = arith.truncf %181 : vector<8x32xf32> to vector<8x32xbf16>
      %183 = tpu.transpose %182, [1, 0] : vector<8x32xbf16> -> vector<32x8xbf16>
      %184 = vector.extract_strided_slice %89 {offsets = [8, 64], sizes = [8, 32], strides = [1, 1]} : vector<16x96xf32> to vector<8x32xf32>
      %185 = arith.truncf %184 : vector<8x32xf32> to vector<8x32xbf16>
      %186 = vector.extract_strided_slice %180 {offsets = [0, 0], sizes = [8, 8], strides = [1, 1]} : vector<8x32xbf16> to vector<8x8xbf16>
      %187 = vector.extract_strided_slice %183 {offsets = [0, 0], sizes = [8, 8], strides = [1, 1]} : vector<32x8xbf16> to vector<8x8xbf16>
      %cst_59 = arith.constant dense<0.000000e+00> : vector<8x8xf32>
      %188 = tpu.matmul %186, %187, %cst_59 {dimension_numbers = #tpu.dot_dimension_numbers<[1], [0], [0], [1], [0, 0, 1, 1], [], []>} : vector<8x8xbf16>, vector<8x8xbf16>, vector<8x8xf32> -> vector<8x8xf32>
      %cst_60 = arith.constant dense<0xFF800000> : vector<8xf32>
      %189 = vector.multi_reduction <maximumf>, %188, %cst_60 [1] : vector<8x8xf32> to vector<8xf32>
      %190 = vector.shape_cast %189 : vector<8xf32> to vector<8x1xf32>
      %191 = vector.broadcast %190 : vector<8x1xf32> to vector<8x8xf32>
      %192 = arith.subf %188, %191 : vector<8x8xf32>
      %193 = math.exp %192 : vector<8x8xf32>
      %cst_61 = arith.constant dense<0.000000e+00> : vector<8xf32>
      %194 = vector.multi_reduction <add>, %193, %cst_61 [1] : vector<8x8xf32> to vector<8xf32>
      %195 = vector.shape_cast %194 : vector<8xf32> to vector<8x1xf32>
      %196 = tpu.reciprocal %195 {approx = true} : vector<8x1xf32> -> vector<8x1xf32>
      %197 = vector.broadcast %196 : vector<8x1xf32> to vector<8x8xf32>
      %198 = arith.mulf %193, %197 : vector<8x8xf32>
      %199 = arith.truncf %198 : vector<8x8xf32> to vector<8x8xbf16>
      %200 = vector.extract_strided_slice %185 {offsets = [0, 0], sizes = [8, 8], strides = [1, 1]} : vector<8x32xbf16> to vector<8x8xbf16>
      %cst_62 = arith.constant dense<0.000000e+00> : vector<8x8xf32>
      %201 = tpu.matmul %199, %200, %cst_62 {dimension_numbers = #tpu.dot_dimension_numbers<[1], [0], [0], [1], [0, 0, 1, 1], [], []>} : vector<8x8xbf16>, vector<8x8xbf16>, vector<8x8xf32> -> vector<8x8xf32>
      %202 = arith.truncf %201 : vector<8x8xf32> to vector<8x8xbf16>
      %203 = vector.extract_strided_slice %92 {offsets = [0, 0], sizes = [8, 32], strides = [1, 1]} : vector<32x32xbf16> to vector<8x32xbf16>
      %cst_63 = arith.constant dense<0.000000e+00> : vector<8x32xf32>
      %204 = tpu.matmul %202, %203, %cst_63 {dimension_numbers = #tpu.dot_dimension_numbers<[1], [0], [0], [1], [0, 0, 1, 1], [], []>} : vector<8x8xbf16>, vector<8x32xbf16>, vector<8x32xf32> -> vector<8x32xf32>
      %205 = vector.extract_strided_slice %180 {offsets = [0, 8], sizes = [8, 8], strides = [1, 1]} : vector<8x32xbf16> to vector<8x8xbf16>
      %206 = vector.extract_strided_slice %183 {offsets = [8, 0], sizes = [8, 8], strides = [1, 1]} : vector<32x8xbf16> to vector<8x8xbf16>
      %cst_64 = arith.constant dense<0.000000e+00> : vector<8x8xf32>
      %207 = tpu.matmul %205, %206, %cst_64 {dimension_numbers = #tpu.dot_dimension_numbers<[1], [0], [0], [1], [0, 0, 1, 1], [], []>} : vector<8x8xbf16>, vector<8x8xbf16>, vector<8x8xf32> -> vector<8x8xf32>
      %cst_65 = arith.constant dense<0xFF800000> : vector<8xf32>
      %208 = vector.multi_reduction <maximumf>, %207, %cst_65 [1] : vector<8x8xf32> to vector<8xf32>
      %209 = vector.shape_cast %208 : vector<8xf32> to vector<8x1xf32>
      %210 = vector.broadcast %209 : vector<8x1xf32> to vector<8x8xf32>
      %211 = arith.subf %207, %210 : vector<8x8xf32>
      %212 = math.exp %211 : vector<8x8xf32>
      %cst_66 = arith.constant dense<0.000000e+00> : vector<8xf32>
      %213 = vector.multi_reduction <add>, %212, %cst_66 [1] : vector<8x8xf32> to vector<8xf32>
      %214 = vector.shape_cast %213 : vector<8xf32> to vector<8x1xf32>
      %215 = tpu.reciprocal %214 {approx = true} : vector<8x1xf32> -> vector<8x1xf32>
      %216 = vector.broadcast %215 : vector<8x1xf32> to vector<8x8xf32>
      %217 = arith.mulf %212, %216 : vector<8x8xf32>
      %218 = arith.truncf %217 : vector<8x8xf32> to vector<8x8xbf16>
      %219 = vector.extract_strided_slice %185 {offsets = [0, 8], sizes = [8, 8], strides = [1, 1]} : vector<8x32xbf16> to vector<8x8xbf16>
      %cst_67 = arith.constant dense<0.000000e+00> : vector<8x8xf32>
      %220 = tpu.matmul %218, %219, %cst_67 {dimension_numbers = #tpu.dot_dimension_numbers<[1], [0], [0], [1], [0, 0, 1, 1], [], []>} : vector<8x8xbf16>, vector<8x8xbf16>, vector<8x8xf32> -> vector<8x8xf32>
      %221 = arith.truncf %220 : vector<8x8xf32> to vector<8x8xbf16>
      %222 = vector.extract_strided_slice %92 {offsets = [8, 0], sizes = [8, 32], strides = [1, 1]} : vector<32x32xbf16> to vector<8x32xbf16>
      %cst_68 = arith.constant dense<0.000000e+00> : vector<8x32xf32>
      %223 = tpu.matmul %221, %222, %cst_68 {dimension_numbers = #tpu.dot_dimension_numbers<[1], [0], [0], [1], [0, 0, 1, 1], [], []>} : vector<8x8xbf16>, vector<8x32xbf16>, vector<8x32xf32> -> vector<8x32xf32>
      %224 = arith.addf %204, %223 : vector<8x32xf32>
      %225 = vector.extract_strided_slice %180 {offsets = [0, 16], sizes = [8, 8], strides = [1, 1]} : vector<8x32xbf16> to vector<8x8xbf16>
      %226 = vector.extract_strided_slice %183 {offsets = [16, 0], sizes = [8, 8], strides = [1, 1]} : vector<32x8xbf16> to vector<8x8xbf16>
      %cst_69 = arith.constant dense<0.000000e+00> : vector<8x8xf32>
      %227 = tpu.matmul %225, %226, %cst_69 {dimension_numbers = #tpu.dot_dimension_numbers<[1], [0], [0], [1], [0, 0, 1, 1], [], []>} : vector<8x8xbf16>, vector<8x8xbf16>, vector<8x8xf32> -> vector<8x8xf32>
      %cst_70 = arith.constant dense<0xFF800000> : vector<8xf32>
      %228 = vector.multi_reduction <maximumf>, %227, %cst_70 [1] : vector<8x8xf32> to vector<8xf32>
      %229 = vector.shape_cast %228 : vector<8xf32> to vector<8x1xf32>
      %230 = vector.broadcast %229 : vector<8x1xf32> to vector<8x8xf32>
      %231 = arith.subf %227, %230 : vector<8x8xf32>
      %232 = math.exp %231 : vector<8x8xf32>
      %cst_71 = arith.constant dense<0.000000e+00> : vector<8xf32>
      %233 = vector.multi_reduction <add>, %232, %cst_71 [1] : vector<8x8xf32> to vector<8xf32>
      %234 = vector.shape_cast %233 : vector<8xf32> to vector<8x1xf32>
      %235 = tpu.reciprocal %234 {approx = true} : vector<8x1xf32> -> vector<8x1xf32>
      %236 = vector.broadcast %235 : vector<8x1xf32> to vector<8x8xf32>
      %237 = arith.mulf %232, %236 : vector<8x8xf32>
      %238 = arith.truncf %237 : vector<8x8xf32> to vector<8x8xbf16>
      %239 = vector.extract_strided_slice %185 {offsets = [0, 16], sizes = [8, 8], strides = [1, 1]} : vector<8x32xbf16> to vector<8x8xbf16>
      %cst_72 = arith.constant dense<0.000000e+00> : vector<8x8xf32>
      %240 = tpu.matmul %238, %239, %cst_72 {dimension_numbers = #tpu.dot_dimension_numbers<[1], [0], [0], [1], [0, 0, 1, 1], [], []>} : vector<8x8xbf16>, vector<8x8xbf16>, vector<8x8xf32> -> vector<8x8xf32>
      %241 = arith.truncf %240 : vector<8x8xf32> to vector<8x8xbf16>
      %242 = vector.extract_strided_slice %92 {offsets = [16, 0], sizes = [8, 32], strides = [1, 1]} : vector<32x32xbf16> to vector<8x32xbf16>
      %cst_73 = arith.constant dense<0.000000e+00> : vector<8x32xf32>
      %243 = tpu.matmul %241, %242, %cst_73 {dimension_numbers = #tpu.dot_dimension_numbers<[1], [0], [0], [1], [0, 0, 1, 1], [], []>} : vector<8x8xbf16>, vector<8x32xbf16>, vector<8x32xf32> -> vector<8x32xf32>
      %244 = arith.addf %224, %243 : vector<8x32xf32>
      %245 = vector.extract_strided_slice %180 {offsets = [0, 24], sizes = [8, 8], strides = [1, 1]} : vector<8x32xbf16> to vector<8x8xbf16>
      %246 = vector.extract_strided_slice %183 {offsets = [24, 0], sizes = [8, 8], strides = [1, 1]} : vector<32x8xbf16> to vector<8x8xbf16>
      %cst_74 = arith.constant dense<0.000000e+00> : vector<8x8xf32>
      %247 = tpu.matmul %245, %246, %cst_74 {dimension_numbers = #tpu.dot_dimension_numbers<[1], [0], [0], [1], [0, 0, 1, 1], [], []>} : vector<8x8xbf16>, vector<8x8xbf16>, vector<8x8xf32> -> vector<8x8xf32>
      %cst_75 = arith.constant dense<0xFF800000> : vector<8xf32>
      %248 = vector.multi_reduction <maximumf>, %247, %cst_75 [1] : vector<8x8xf32> to vector<8xf32>
      %249 = vector.shape_cast %248 : vector<8xf32> to vector<8x1xf32>
      %250 = vector.broadcast %249 : vector<8x1xf32> to vector<8x8xf32>
      %251 = arith.subf %247, %250 : vector<8x8xf32>
      %252 = math.exp %251 : vector<8x8xf32>
      %cst_76 = arith.constant dense<0.000000e+00> : vector<8xf32>
      %253 = vector.multi_reduction <add>, %252, %cst_76 [1] : vector<8x8xf32> to vector<8xf32>
      %254 = vector.shape_cast %253 : vector<8xf32> to vector<8x1xf32>
      %255 = tpu.reciprocal %254 {approx = true} : vector<8x1xf32> -> vector<8x1xf32>
      %256 = vector.broadcast %255 : vector<8x1xf32> to vector<8x8xf32>
      %257 = arith.mulf %252, %256 : vector<8x8xf32>
      %258 = arith.truncf %257 : vector<8x8xf32> to vector<8x8xbf16>
      %259 = vector.extract_strided_slice %185 {offsets = [0, 24], sizes = [8, 8], strides = [1, 1]} : vector<8x32xbf16> to vector<8x8xbf16>
      %cst_77 = arith.constant dense<0.000000e+00> : vector<8x8xf32>
      %260 = tpu.matmul %258, %259, %cst_77 {dimension_numbers = #tpu.dot_dimension_numbers<[1], [0], [0], [1], [0, 0, 1, 1], [], []>} : vector<8x8xbf16>, vector<8x8xbf16>, vector<8x8xf32> -> vector<8x8xf32>
      %261 = arith.truncf %260 : vector<8x8xf32> to vector<8x8xbf16>
      %262 = vector.extract_strided_slice %92 {offsets = [24, 0], sizes = [8, 32], strides = [1, 1]} : vector<32x32xbf16> to vector<8x32xbf16>
      %cst_78 = arith.constant dense<0.000000e+00> : vector<8x32xf32>
      %263 = tpu.matmul %261, %262, %cst_78 {dimension_numbers = #tpu.dot_dimension_numbers<[1], [0], [0], [1], [0, 0, 1, 1], [], []>} : vector<8x8xbf16>, vector<8x32xbf16>, vector<8x32xf32> -> vector<8x32xf32>
      %264 = arith.addf %244, %263 : vector<8x32xf32>
      %265 = tpu.concatenate %178, %264 in 0 : vector<8x32xf32>, vector<8x32xf32> -> vector<16x32xf32>
      %266 = arith.addf %arg18, %265 : vector<16x32xf32>
      %267 = arith.index_cast %arg17 : i32 to index
      %c0_79 = arith.constant 0 : index
      %c0_80 = arith.constant 0 : index
      %268 = vector.load %arg8[%267, %c0_79, %c0_80] : memref<2x1x32xf32, #tpu.memory_space<vmem>>, vector<1x1x32xf32>
      %269 = vector.shape_cast %268 : vector<1x1x32xf32> to vector<1x32xf32>
      %270 = arith.index_cast %arg17 : i32 to index
      %c0_81 = arith.constant 0 : index
      %c0_82 = arith.constant 0 : index
      %271 = vector.load %arg9[%270, %c0_81, %c0_82] : memref<2x1x32xf32, #tpu.memory_space<vmem>>, vector<1x1x32xf32>
      %272 = vector.shape_cast %271 : vector<1x1x32xf32> to vector<1x32xf32>
      %cst_83 = arith.constant dense<0.000000e+00> : vector<16xf32>
      %273 = vector.multi_reduction <add>, %266, %cst_83 [1] : vector<16x32xf32> to vector<16xf32>
      %274 = vector.shape_cast %273 : vector<16xf32> to vector<16x1xf32>
      %cst_84 = arith.constant 3.200000e+01 : f32
      %275 = vector.broadcast %cst_84 : f32 to vector<16x1xf32>
      %276 = arith.divf %274, %275 : vector<16x1xf32>
      %277 = vector.broadcast %276 : vector<16x1xf32> to vector<16x32xf32>
      %278 = arith.subf %266, %277 : vector<16x32xf32>
      %279 = arith.mulf %278, %278 : vector<16x32xf32>
      %cst_85 = arith.constant dense<0.000000e+00> : vector<16xf32>
      %280 = vector.multi_reduction <add>, %279, %cst_85 [1] : vector<16x32xf32> to vector<16xf32>
      %281 = vector.shape_cast %280 : vector<16xf32> to vector<16x1xf32>
      %cst_86 = arith.constant 0.0322580636 : f32
      %282 = vector.broadcast %cst_86 : f32 to vector<16x1xf32>
      %283 = arith.mulf %281, %282 : vector<16x1xf32>
      %284 = math.sqrt %283 : vector<16x1xf32>
      %cst_87 = arith.constant 9.99999997E-7 : f32
      %285 = vector.broadcast %cst_87 : f32 to vector<16x1xf32>
      %286 = arith.addf %284, %285 : vector<16x1xf32>
      %cst_88 = arith.constant 1.000000e+00 : f32
      %287 = vector.broadcast %cst_88 : f32 to vector<16x1xf32>
      %288 = arith.divf %287, %286 : vector<16x1xf32>
      %289 = vector.broadcast %276 : vector<16x1xf32> to vector<16x32xf32>
      %290 = arith.subf %266, %289 : vector<16x32xf32>
      %291 = vector.broadcast %269 : vector<1x32xf32> to vector<16x32xf32>
      %292 = arith.mulf %291, %290 : vector<16x32xf32>
      %293 = vector.broadcast %288 : vector<16x1xf32> to vector<16x32xf32>
      %294 = arith.mulf %292, %293 : vector<16x32xf32>
      %295 = vector.broadcast %272 : vector<1x32xf32> to vector<16x32xf32>
      %296 = arith.addf %294, %295 : vector<16x32xf32>
      %297 = arith.index_cast %arg17 : i32 to index
      %c0_89 = arith.constant 0 : index
      %c0_90 = arith.constant 0 : index
      %298 = vector.load %arg10[%297, %c0_89, %c0_90] : memref<2x96x64xbf16, #tpu.memory_space<vmem>>, vector<1x96x64xbf16>
      %299 = vector.shape_cast %298 : vector<1x96x64xbf16> to vector<96x64xbf16>
      %300 = arith.index_cast %arg17 : i32 to index
      %c0_91 = arith.constant 0 : index
      %c0_92 = arith.constant 0 : index
      %301 = vector.load %arg11[%300, %c0_91, %c0_92] : memref<2x1x64xf32, #tpu.memory_space<vmem>>, vector<1x1x64xf32>
      %302 = vector.shape_cast %301 : vector<1x1x64xf32> to vector<1x64xf32>
      %c1_i32_93 = arith.constant 1 : i32
      %303 = tpu.dynamic_rotate %296 by %c1_i32_93 dim 0 : vector<16x32xf32>, i32 -> vector<16x32xf32>
      %cst_94 = arith.constant 0.000000e+00 : f32
      %304 = vector.shape_cast %23 : vector<16x1xi1> to vector<16x1xi1>
      %305 = vector.broadcast %304 : vector<16x1xi1> to vector<16x32xi1>
      %306 = vector.broadcast %cst_94 : f32 to vector<16x32xf32>
      %307 = arith.select %305, %306, %303 : vector<16x32xi1>, vector<16x32xf32>
      %c15_i32 = arith.constant 15 : i32
      %308 = tpu.dynamic_rotate %296 by %c15_i32 dim 0 : vector<16x32xf32>, i32 -> vector<16x32xf32>
      %cst_95 = arith.constant 0.000000e+00 : f32
      %309 = vector.shape_cast %25 : vector<16x1xi1> to vector<16x1xi1>
      %310 = vector.broadcast %309 : vector<16x1xi1> to vector<16x32xi1>
      %311 = vector.broadcast %cst_95 : f32 to vector<16x32xf32>
      %312 = arith.select %310, %311, %308 : vector<16x32xi1>, vector<16x32xf32>
      %313 = tpu.concatenate %307, %296, %312 in 1 : vector<16x32xf32>, vector<16x32xf32>, vector<16x32xf32> -> vector<16x96xf32>
      %314 = arith.truncf %313 : vector<16x96xf32> to vector<16x96xbf16>
      %cst_96 = arith.constant dense<0.000000e+00> : vector<16x64xf32>
      %315 = tpu.matmul %314, %299, %cst_96 {dimension_numbers = #tpu.dot_dimension_numbers<[1], [0], [0], [1], [0, 0, 1, 1], [], []>} : vector<16x96xbf16>, vector<96x64xbf16>, vector<16x64xf32> -> vector<16x64xf32>
      %316 = vector.broadcast %302 : vector<1x64xf32> to vector<16x64xf32>
      %317 = arith.addf %315, %316 : vector<16x64xf32>
      %cst_97 = arith.constant 0.000000e+00 : f32
      %318 = vector.broadcast %cst_97 : f32 to vector<16x64xf32>
      %319 = arith.maximumf %317, %318 : vector<16x64xf32>
      %320 = arith.index_cast %arg17 : i32 to index
      %c0_98 = arith.constant 0 : index
      %c0_99 = arith.constant 0 : index
      %321 = vector.load %arg12[%320, %c0_98, %c0_99] : memref<2x192x32xbf16, #tpu.memory_space<vmem>>, vector<1x192x32xbf16>
      %322 = vector.shape_cast %321 : vector<1x192x32xbf16> to vector<192x32xbf16>
      %323 = arith.index_cast %arg17 : i32 to index
      %c0_100 = arith.constant 0 : index
      %c0_101 = arith.constant 0 : index
      %324 = vector.load %arg13[%323, %c0_100, %c0_101] : memref<2x1x32xf32, #tpu.memory_space<vmem>>, vector<1x1x32xf32>
      %325 = vector.shape_cast %324 : vector<1x1x32xf32> to vector<1x32xf32>
      %c1_i32_102 = arith.constant 1 : i32
      %326 = tpu.dynamic_rotate %319 by %c1_i32_102 dim 0 : vector<16x64xf32>, i32 -> vector<16x64xf32>
      %cst_103 = arith.constant 0.000000e+00 : f32
      %327 = vector.shape_cast %23 : vector<16x1xi1> to vector<16x1xi1>
      %328 = vector.broadcast %327 : vector<16x1xi1> to vector<16x64xi1>
      %329 = vector.broadcast %cst_103 : f32 to vector<16x64xf32>
      %330 = arith.select %328, %329, %326 : vector<16x64xi1>, vector<16x64xf32>
      %c15_i32_104 = arith.constant 15 : i32
      %331 = tpu.dynamic_rotate %319 by %c15_i32_104 dim 0 : vector<16x64xf32>, i32 -> vector<16x64xf32>
      %cst_105 = arith.constant 0.000000e+00 : f32
      %332 = vector.shape_cast %25 : vector<16x1xi1> to vector<16x1xi1>
      %333 = vector.broadcast %332 : vector<16x1xi1> to vector<16x64xi1>
      %334 = vector.broadcast %cst_105 : f32 to vector<16x64xf32>
      %335 = arith.select %333, %334, %331 : vector<16x64xi1>, vector<16x64xf32>
      %336 = tpu.concatenate %330, %319, %335 in 1 : vector<16x64xf32>, vector<16x64xf32>, vector<16x64xf32> -> vector<16x192xf32>
      %337 = arith.truncf %336 : vector<16x192xf32> to vector<16x192xbf16>
      %cst_106 = arith.constant dense<0.000000e+00> : vector<16x32xf32>
      %338 = tpu.matmul %337, %322, %cst_106 {dimension_numbers = #tpu.dot_dimension_numbers<[1], [0], [0], [1], [0, 0, 1, 1], [], []>} : vector<16x192xbf16>, vector<192x32xbf16>, vector<16x32xf32> -> vector<16x32xf32>
      %339 = vector.broadcast %325 : vector<1x32xf32> to vector<16x32xf32>
      %340 = arith.addf %338, %339 : vector<16x32xf32>
      %341 = arith.addf %266, %340 : vector<16x32xf32>
      scf.yield %341 : vector<16x32xf32>
    }
    %c2_i32_11 = arith.constant 2 : i32
    %c0_12 = arith.constant 0 : index
    %c0_13 = arith.constant 0 : index
    %28 = vector.load %arg14[%c0_12, %c0_13] : memref<1x32xf32, #tpu.memory_space<vmem>>, vector<1x32xf32>
    %c0_14 = arith.constant 0 : index
    %c0_15 = arith.constant 0 : index
    %29 = vector.load %arg15[%c0_14, %c0_15] : memref<1x32xf32, #tpu.memory_space<vmem>>, vector<1x32xf32>
    %cst_16 = arith.constant dense<0.000000e+00> : vector<16xf32>
    %30 = vector.multi_reduction <add>, %27, %cst_16 [1] : vector<16x32xf32> to vector<16xf32>
    %31 = vector.shape_cast %30 : vector<16xf32> to vector<16x1xf32>
    %cst_17 = arith.constant 3.200000e+01 : f32
    %32 = vector.broadcast %cst_17 : f32 to vector<16x1xf32>
    %33 = arith.divf %31, %32 : vector<16x1xf32>
    %34 = vector.broadcast %33 : vector<16x1xf32> to vector<16x32xf32>
    %35 = arith.subf %27, %34 : vector<16x32xf32>
    %36 = arith.mulf %35, %35 : vector<16x32xf32>
    %cst_18 = arith.constant dense<0.000000e+00> : vector<16xf32>
    %37 = vector.multi_reduction <add>, %36, %cst_18 [1] : vector<16x32xf32> to vector<16xf32>
    %38 = vector.shape_cast %37 : vector<16xf32> to vector<16x1xf32>
    %cst_19 = arith.constant 0.0322580636 : f32
    %39 = vector.broadcast %cst_19 : f32 to vector<16x1xf32>
    %40 = arith.mulf %38, %39 : vector<16x1xf32>
    %41 = math.sqrt %40 : vector<16x1xf32>
    %cst_20 = arith.constant 9.99999997E-7 : f32
    %42 = vector.broadcast %cst_20 : f32 to vector<16x1xf32>
    %43 = arith.addf %41, %42 : vector<16x1xf32>
    %cst_21 = arith.constant 1.000000e+00 : f32
    %44 = vector.broadcast %cst_21 : f32 to vector<16x1xf32>
    %45 = arith.divf %44, %43 : vector<16x1xf32>
    %46 = vector.broadcast %33 : vector<16x1xf32> to vector<16x32xf32>
    %47 = arith.subf %27, %46 : vector<16x32xf32>
    %48 = vector.broadcast %28 : vector<1x32xf32> to vector<16x32xf32>
    %49 = arith.mulf %48, %47 : vector<16x32xf32>
    %50 = vector.broadcast %45 : vector<16x1xf32> to vector<16x32xf32>
    %51 = arith.mulf %49, %50 : vector<16x32xf32>
    %52 = vector.broadcast %29 : vector<1x32xf32> to vector<16x32xf32>
    %53 = arith.addf %51, %52 : vector<16x32xf32>
    %c0_22 = arith.constant 0 : index
    %c0_23 = arith.constant 0 : index
    %54 = vector.load %arg16[%c0_22, %c0_23] : memref<16x32xf32, #tpu.memory_space<vmem>>, vector<16x32xf32>
    tpu.vector_store %arg16[%c0_22, %c0_23], %53 {strides = array<i32>} : memref<16x32xf32, #tpu.memory_space<vmem>>, vector<16x32xf32>,
    return
  }
  func.func @transform_0(%arg0: i32) -> (i32, i32) {
    %c0_i32 = arith.constant 0 : i32
    %c0_i32_0 = arith.constant 0 : i32
    return %arg0, %c0_i32 : i32, i32
  }
  func.func @transform_1(%arg0: i32) -> (i32, i32) {
    %c0_i32 = arith.constant 0 : i32
    %c0_i32_0 = arith.constant 0 : i32
    %c0_i32_1 = arith.constant 0 : i32
    return %c0_i32, %c0_i32_0 : i32, i32
  }
  func.func @transform_2(%arg0: i32) -> (i32, i32) {
    %c0_i32 = arith.constant 0 : i32
    %c0_i32_0 = arith.constant 0 : i32
    %c0_i32_1 = arith.constant 0 : i32
    return %c0_i32, %c0_i32_0 : i32, i32
  }
  func.func @transform_3(%arg0: i32) -> (i32, i32, i32) {
    %c0_i32 = arith.constant 0 : i32
    %c0_i32_0 = arith.constant 0 : i32
    %c0_i32_1 = arith.constant 0 : i32
    %c0_i32_2 = arith.constant 0 : i32
    return %c0_i32, %c0_i32_0, %c0_i32_1 : i32, i32, i32
  }
  func.func @transform_4(%arg0: i32) -> (i32, i32, i32) {
    %c0_i32 = arith.constant 0 : i32
    %c0_i32_0 = arith.constant 0 : i32
    %c0_i32_1 = arith.constant 0 : i32
    %c0_i32_2 = arith.constant 0 : i32
    return %c0_i32, %c0_i32_0, %c0_i32_1 : i32, i32, i32
  }
  func.func @transform_5(%arg0: i32) -> (i32, i32, i32) {
    %c0_i32 = arith.constant 0 : i32
    %c0_i32_0 = arith.constant 0 : i32
    %c0_i32_1 = arith.constant 0 : i32
    %c0_i32_2 = arith.constant 0 : i32
    return %c0_i32, %c0_i32_0, %c0_i32_1 : i32, i32, i32
  }
  func.func @transform_6(%arg0: i32) -> (i32, i32, i32) {
    %c0_i32 = arith.constant 0 : i32
    %c0_i32_0 = arith.constant 0 : i32
    %c0_i32_1 = arith.constant 0 : i32
    %c0_i32_2 = arith.constant 0 : i32
    return %c0_i32, %c0_i32_0, %c0_i32_1 : i32, i32, i32
  }
  func.func @transform_7(%arg0: i32) -> (i32, i32, i32) {
    %c0_i32 = arith.constant 0 : i32
    %c0_i32_0 = arith.constant 0 : i32
    %c0_i32_1 = arith.constant 0 : i32
    %c0_i32_2 = arith.constant 0 : i32
    return %c0_i32, %c0_i32_0, %c0_i32_1 : i32, i32, i32
  }
  func.func @transform_8(%arg0: i32) -> (i32, i32, i32) {
    %c0_i32 = arith.constant 0 : i32
    %c0_i32_0 = arith.constant 0 : i32
    %c0_i32_1 = arith.constant 0 : i32
    %c0_i32_2 = arith.constant 0 : i32
    return %c0_i32, %c0_i32_0, %c0_i32_1 : i32, i32, i32
  }
  func.func @transform_9(%arg0: i32) -> (i32, i32, i32) {
    %c0_i32 = arith.constant 0 : i32
    %c0_i32_0 = arith.constant 0 : i32
    %c0_i32_1 = arith.constant 0 : i32
    %c0_i32_2 = arith.constant 0 : i32
    return %c0_i32, %c0_i32_0, %c0_i32_1 : i32, i32, i32
  }
  func.func @transform_10(%arg0: i32) -> (i32, i32, i32) {
    %c0_i32 = arith.constant 0 : i32
    %c0_i32_0 = arith.constant 0 : i32
    %c0_i32_1 = arith.constant 0 : i32
    %c0_i32_2 = arith.constant 0 : i32
    return %c0_i32, %c0_i32_0, %c0_i32_1 : i32, i32, i32
  }
  func.func @transform_11(%arg0: i32) -> (i32, i32, i32) {
    %c0_i32 = arith.constant 0 : i32
    %c0_i32_0 = arith.constant 0 : i32
    %c0_i32_1 = arith.constant 0 : i32
    %c0_i32_2 = arith.constant 0 : i32
    return %c0_i32, %c0_i32_0, %c0_i32_1 : i32, i32, i32
  }
  func.func @transform_12(%arg0: i32) -> (i32, i32, i32) {
    %c0_i32 = arith.constant 0 : i32
    %c0_i32_0 = arith.constant 0 : i32
    %c0_i32_1 = arith.constant 0 : i32
    %c0_i32_2 = arith.constant 0 : i32
    return %c0_i32, %c0_i32_0, %c0_i32_1 : i32, i32, i32
  }
  func.func @transform_13(%arg0: i32) -> (i32, i32) {
    %c0_i32 = arith.constant 0 : i32
    %c0_i32_0 = arith.constant 0 : i32
    %c0_i32_1 = arith.constant 0 : i32
    return %c0_i32, %c0_i32_0 : i32, i32
  }
  func.func @transform_14(%arg0: i32) -> (i32, i32) {
    %c0_i32 = arith.constant 0 : i32
    %c0_i32_0 = arith.constant 0 : i32
    %c0_i32_1 = arith.constant 0 : i32
    return %c0_i32, %c0_i32_0 : i32, i32
  }
  func.func @transform_15(%arg0: i32) -> (i32, i32) {
    %c0_i32 = arith.constant 0 : i32
    %c0_i32_0 = arith.constant 0 : i32
    return %arg0, %c0_i32 : i32, i32
  }
}

</mosaic_0001>

<bundles_post_ra>
// kernel: tpu_custom_call.1
= control target key start
LH: loop header
LB: loop body
LE: loop exit
PB: predicated region body
PF: predicated region fallthrough
CT: control target
= control target key end

     0   :  { %20 = vsyncpa [#allocation3], 0  ;;  %v2517_v1 = vmov 0.0   ;;  %vm2518_vm0 = vmmov 0   ;;  %vm69_vm1 = vcmask 130048   ;;  %v114_v3 = vlaneseq  ;;  %s2653_s24 = smov 0   ;;  %s3054_s0 = inlined_call_operand.vmem [shape: bf16[16,16], index: 0, kind: input, shape index: {}]   ;;  %s3055_s1 = inlined_call_operand.vmem [shape: bf16[16,32], index: 1, kind: input, shape index: {}]   ;;  %s3056_s2 = inlined_call_operand.vmem [shape: f32[16,32], index: 2, kind: input, shape index: {}]   ;;  %s3057_s3 = inlined_call_operand.vmem [shape: f32[2,1,32], index: 3, kind: input, shape index: {}]   ;;  %s3058_s4 = inlined_call_operand.vmem [shape: f32[2,1,32], index: 4, kind: input, shape index: {}]   ;;  %s3059_s5 = inlined_call_operand.vmem [shape: bf16[2,32,96], index: 5, kind: input, shape index: {}]   ;;  %s3060_s6 = inlined_call_operand.vmem [shape: bf16[2,32,32], index: 6, kind: input, shape index: {}]   ;;  %s3061_s7 = inlined_call_operand.vmem [shape: f32[2,1,32], index: 7, kind: input, shape index: {}]   ;;  %s3062_s8 = inlined_call_operand.vmem [shape: f32[2,1,32], index: 8, kind: input, shape index: {}]   ;;  %s3063_s9 = inlined_call_operand.vmem [shape: bf16[2,96,64], index: 9, kind: input, shape index: {}]   ;;  %s3064_s10 = inlined_call_operand.vmem [shape: f32[2,1,64], index: 10, kind: input, shape index: {}]   ;;  %s3065_s11 = inlined_call_operand.vmem [shape: bf16[2,192,32], index: 11, kind: input, shape index: {}]   ;;  %s3066_s12 = inlined_call_operand.vmem [shape: f32[2,1,32], index: 12, kind: input, shape index: {}]   ;;  %s3067_s13 = inlined_call_operand.vmem [shape: f32[1,32], index: 13, kind: input, shape index: {}]   ;;  %s3068_s14 = inlined_call_operand.vmem [shape: f32[1,32], index: 14, kind: input, shape index: {}]   ;;  %s3069_s15 = inlined_call_operand.hbm [shape: f32[16,32], index: 15, kind: output, shape index: {}]  }
   0x1   :  { %v2378_v0 = vld [vmem:[%s3055_s1] sm:$0xff]   ;;  %2160 = vmatprep.subr.bf16.mxu0 %v2517_v1  ;;  %2162 = vmatprep.mubr.msk.bf16.mxu0 %vm2518_vm0, %v2517_v1  ;;  %v57_v16 = vld [vmem:[%s3056_s2 + $0x8] sm:$0xff] }
   0x2   :  { %v2379_v2 = vld [vmem:[%s3054_s0] sm:$0xff]   ;;  %2161 = vmatpush3.bf16.msra.mxu0 %v2378_v0  ;;  %v2623_v4 = vshrl.u32 %v114_v3, 7 }
   0x3   :  { %v56_v12 = vld [vmem:[%s3056_s2] sm:$0xff] }
   0x4   :  { %v116_v5 = vadd.s32 8, %v2623_v4  ;;  %v121_v6 = vand.u32 7, %v2623_v4 }
   0x5   :  { %2163 = vmatmul.mubr.msk.bf16.vlgmr.msra.gmra.mxu0 %vm69_vm1, %v2379_v2 }
   0x6   :  { %v128_v7 = vand.u32 7, %v116_v5  ;;  %vm2627_vm2 = vcmp.eq.s32.totalorder %v121_v6, 0  ;;  %vm2635_vm4 = vcmp.eq.s32.totalorder %v121_v6, 7 }
   0x8   :  { %vm2631_vm3 = vcmp.eq.s32.totalorder %v128_v7, 0  ;;  %vm2639_vm5 = vcmp.eq.s32.totalorder %v128_v7, 7 }
  0xc5   :  { %v107_v13 = vpop.f32.mrf.mxu0 }
  0xc6   :  { %v108_v14 = vadd.f32 %v107_v13, %v56_v12  }
  0xc7   :  { %v2164_v15 = vpop.f32.mrf.mxu0 }
  0xc9   :  { %v110_v17 = vpop.f32.mrf.mxu0 }
  0xca   :  { %v111_v18 = vadd.f32 %v110_v17, %v57_v16  }
  0xcb   :  { %v2165_v19 = vpop.f32.mrf.mxu0 }
  0xcc LB: > { %vm157_vm6 = vcmask 261120   ;;  %s2099_s2 = smul.u32 96, %s2515_s24  ;;  %s2096_s28 = sshll.u32 %s2515_s24, 4  ;;  %v2519_v32 = vmov 0.0   ;;  %vm2520_vm7 = vmmov 0   ;;  %vm291_vm12 = vcmask 64512   ;;  %s2515_s24 = sphi %s2653_s24, %s150_s24   ;;  %v2511_v14 = vphi %v108_v14, %v3079_v14   ;;  %v2507_v18 = vphi %v111_v18, %v3078_v18  }
  0xcd   : > { %v158_v20 = vsel %vm157_vm6, %v2511_v14, 0.0  ;;  %v161_v21 = vsel %vm157_vm6, %v2507_v18, 0.0  ;;  %2166 = vmatprep.subr.bf16.mxu1 %v2519_v32  ;;  %s220_s16 = scalar_lea.vmem %s3059_s5, %s2096_s28  ;;  %2170 = vmatprep.mubr.msk.bf16.mxu1 %vm2520_vm7, %v2519_v32  ;;  %s153_s19 = scalar_lea.vmem %s3057_s3, %s2515_s24  ;;  %vm355_vm13 = vcmask 1043456  }
  0xce   : > { %159 = vadd.xlane.f32.xlu0 %v158_v20  ;;  %s2672_s27 = scalar_lea.vmem %s3065_s11, %s2099_s2  ;;  %v2395_v33 = vld [vmem:[%s220_s16 + $0x8] sm:$0xff]   ;;  %2192 = vmatprep.subr.bf16.mxu0 %v2519_v32  ;;  %v2396_v34 = vld [vmem:[%s220_s16] sm:$0xff]   ;;  %s155_s0 = scalar_lea.vmem %s3058_s4, %s2515_s24 }
  0xcf   : > { %2194 = vmatprep.mubr.msk.bf16.mxu0 %vm2520_vm7, %v2519_v32  ;;  %2167 = vmatpush3.bf16.msra.mxu1 %v2395_v33  ;;  %v2036_v51 = vld [vmem:[%s153_s19] ss:$0 sm:$0xff]  ;;  %s2521_s1 = smov 96   ;;  %s2522_s22 = smov 88  }
  0xd0   : > { %2168 = vmatprep.subr.bf16.mxu1 %v2519_v32  ;;  %v2037_v57 = vld [vmem:[%s155_s0] ss:$0 sm:$0xff]  ;;  %s2523_s23 = smov 64   ;;  %s2524_s2 = smov 120  }
  0xd1   : > { %s2525_s25 = smov 56   ;;  %s2526_s26 = smov 112  }
  0xd2   : > { %162 = vadd.xlane.f32.xlu0 %v161_v21  ;;  %s2527_s29 = smov 80   ;;  %s2748_s17 = scalar_lea.vmem %s3060_s6, %s2096_s28 }
  0xd3   : > { %2169 = vmatpush3.bf16.msra.mxu1 %v2396_v34  ;;  %s2528_s28 = smov 72   ;;  %s2529_s18 = smov 104  }
  0xd4   : > { %2174 = vmatprep.subr.bf16.mxu1 %v2519_v32  ;;  %s2530_s19 = smov 48   ;;  %s2531_s20 = smov 40  }
  0xd5   : > { %s2098_s21 = smul.u32 48, %s2515_s24  ;;  %s1541_s16 = scalar_lea.vmem %s3062_s8, %s2515_s24 }
 0x157   : > { %v160_v22 = vpop.xlane.xlu0 %159 }
 0x158   : > { %v165_v23 = vmul.f32 0.03125, %v160_v22 }
 0x15a   : > { %v167_v24 = vsub.f32 %v2511_v14, %v165_v23 }
 0x15b   : > { %v163_v25 = vpop.xlane.xlu0 %162 }
 0x15c   : > { %v166_v26 = vmul.f32 0.03125, %v163_v25  ;;  %v169_v27 = vmul.f32 %v167_v24, %v167_v24  ;;  %v205_v53 = vmul.f32 %v2036_v51, %v167_v24 }
 0x15e   : > { %v168_v28 = vsub.f32 %v2507_v18, %v166_v26  ;;  %v171_v29 = vsel %vm157_vm6, %v169_v27, 0.0 }
 0x15f   : > { %172 = vadd.xlane.f32.xlu1 %v171_v29 }
 0x160   : > { %v170_v30 = vmul.f32 %v168_v28, %v168_v28  ;;  %v206_v54 = vmul.f32 %v2036_v51, %v168_v28 }
 0x162   : > { %v174_v31 = vsel %vm157_vm6, %v170_v30, 0.0 }
 0x163   : > { %175 = vadd.xlane.f32.xlu1 %v174_v31 }
 0x1e8   : > { %v173_v35 = vpop.xlane.xlu1 %172 }
 0x1e9   : > { %v177_v36 = vmul.f32 0.032258064, %v173_v35 }
 0x1eb   : > { %2415 = vrsqrt.f32 %v177_v36  ;;  %vm181_vm8 = vcmp.eq.f32.partialorder %v177_v36, inf  ;;  %v184_v41 = vand.u32 2147483648, %v177_v36  ;;  %vm183_vm9 = vcmp.eq.f32.partialorder %v177_v36, 0.0 }
 0x1ec   : > { %v176_v37 = vpop.xlane.xlu1 %175 }
 0x1ed   : > { %v178_v38 = vmul.f32 0.032258064, %v176_v37 }
 0x1ef   : > { %2417 = vrsqrt.f32 %v178_v38  ;;  %vm188_vm10 = vcmp.eq.f32.partialorder %v178_v38, inf  ;;  %v191_v47 = vand.u32 2147483648, %v178_v38  ;;  %vm190_vm11 = vcmp.eq.f32.partialorder %v178_v38, 0.0 }
 0x1f8   : > { %v2416_v39 = vpop.eup %2415 }
 0x1f9   : > { %v180_v40 = vmul.f32 %v2416_v39, %v177_v36 }
 0x1fb   : > { %v182_v42 = vsel %vm181_vm8, %v177_v36, %v180_v40  ;;  %vm1620_vm8 = vcmp.lt.s32.totalorder %v2623_v4, 1 }
 0x1fc   : > { %v2418_v43 = vpop.eup %2417  ;;  %v185_v44 = vsel %vm183_vm9, %v184_v41, %v182_v42  ;;  %vm1658_vm9 = vcmask 523264  }
 0x1fd   : > { %v193_v45 = vadd.f32 1e-06, %v185_v44  ;;  %v187_v46 = vmul.f32 %v2418_v43, %v178_v38 }
 0x1ff   : > { %2419 = vrcp.f32 %v193_v45  ;;  %v189_v48 = vsel %vm188_vm10, %v178_v38, %v187_v46  ;;  %vm1704_vm10 = vcmask 785408  }
 0x200   : > { %v192_v49 = vsel %vm190_vm11, %v191_v47, %v189_v48  ;;  %v284_v48 = vld [vmem:[%s2748_s17 + $0x4] sm:$0xf] }
 0x201   : > { %v194_v50 = vadd.f32 1e-06, %v192_v49  ;;  %v2752_v49 = vsel %vm355_vm13, %v284_v48, 0 }
 0x203   : > { %2421 = vrcp.f32 %v194_v50 }
 0x20c   : > { %v2420_v52 = vpop.eup %2419 }
 0x20d   : > { %v207_v55 = vmul.f32 %v2420_v52, %v205_v53  ;;  %v283_v52 = vld [vmem:[%s2748_s17] sm:$0xf] }
 0x20f   : > { %v215_v59 = vadd.f32 %v2037_v57, %v207_v55  ;;  %v2758_v55 = vsel %vm355_vm13, %v283_v52, 0 }
 0x210   : > { %v2422_v56 = vpop.eup %2421 }
 0x211   : > { %v208_v58 = vmul.f32 %v2422_v56, %v206_v54 }
 0x213   : > { %v216_v60 = vadd.f32 %v2037_v57, %v208_v58 }
 0x215   : > { %v217_v61 = vpack.c.bf16 %v216_v60, %v215_v59 }
 0x217   : > { %2171 = vmatmul.mubr.msk.bf16.vlgmr.msra.gmra.mxu1 %vm157_vm6, %v217_v61 }
 0x218   : > { %2176 = vmatprep.mubr.msk.bf16.mxu1 %vm2520_vm7, %v2519_v32 }
 0x2d7   : > { %v274_v62 = vpop.f32.mrf.mxu1 }
 0x2d8   : > { %v2703_v63 = vpack.c.bf16 %v274_v62, %v274_v62 }
 0x2d9   : > { %v2172_v0 = vpop.f32.mrf.mxu1 }
 0x2da   : > { %289 = vrot.lane.b32.xlu0 %v2703_v63, %s2521_s1 }
 0x2db   : > { %v2707_v1 = vpop.f32.mrf.mxu1 }
 0x2dd   : > { %v2173_v2 = vpop.f32.mrf.mxu1 }
 0x2de   : > { %402 = vrot.lane.b32.xlu0 %v2703_v63, %s2522_s22 }
 0x34c   : > { %v290_v3 = vpop.permute.xlu0 %289 }
 0x34d   : > { %v296_v5 = vsel %vm291_vm12, %v290_v3, 0 }
 0x34e   : > { %2175 = vmatpush3.bf16.xpose.msra.mxu1 %v296_v5 }
 0x34f   : > { %2180 = vmatprep.subr.bf16.mxu1 %v2519_v32 }
 0x350   : > { %v403_v27 = vpop.permute.xlu0 %402 }
 0x351   : > { %v408_v29 = vsel %vm291_vm12, %v403_v27, 0 }
 0x355   : > { %2177 = vmatmul.mubr.msk.bf16.vlgmr.msra.gmra.mxu1 %vm291_vm12, %v2703_v63 }
 0x356   : > { %2182 = vmatprep.mubr.msk.bf16.mxu1 %vm2520_vm7, %v2519_v32 }
 0x415   : > { %v332_v6 = vpop.f32.mrf.mxu1 }
 0x416   : > { %v338_v7 = vsel %vm291_vm12, %v332_v6, -inf }
 0x417   : > { %339 = vmax.xlane.f32.xlu1 %v338_v7  ;;  %v2178_v12 = vpop.f32.mrf.mxu1 }
 0x419   : > { %v335_v13 = vpop.f32.mrf.mxu1 }
 0x41b   : > { %v2179_v15 = vpop.f32.mrf.mxu1 }
 0x4a0   : > { %v340_v16 = vpop.xlane.xlu1 %339 }
 0x4a1   : > { %v341_v17 = vsub.f32 %v332_v6, %v340_v16 }
 0x4a3   : > { %v342_v19 = vmul.f32 1.442695, %v341_v17 }
 0x4a5   : > { %2423 = vpow2.f32 %v342_v19 }
 0x4b2   : > { %v2424_v20 = vpop.eup %2423 }
 0x4b3   : > { %v344_v21 = vsel %vm291_vm12, %v2424_v20, 0.0 }
 0x4b4   : > { %345 = vadd.xlane.f32.xlu1 %v344_v21 }
 0x4c5   : > { %350 = vrot.lane.b32.xlu1 %v2703_v63, %s2523_s23 }
 0x4c9   : > { %400 = vrot.lane.b32.xlu1 %v2703_v63, %s2524_s2 }
 0x53d   : > { %v346_v22 = vpop.xlane.xlu1 %345 }
 0x53e   : > { %2425 = vrcp.f32 %v346_v22 }
 0x541   : > { %v351_v23 = vpop.permute.xlu1 %350 }
 0x542   : > { %v357_v24 = vsel %vm355_vm13, %v351_v23, 0 }
 0x543   : > { %2181 = vmatpush3.bf16.msra.mxu1 %v357_v24 }
 0x544   : > { %2186 = vmatprep.subr.bf16.mxu1 %v2519_v32 }
 0x545   : > { %v401_v30 = vpop.permute.xlu1 %400 }
 0x54b   : > { %v2426_v25 = vpop.eup %2425 }
 0x54c   : > { %v348_v26 = vmul.f32 %v2426_v25, %v2424_v20 }
 0x54e   : > { %v349_v28 = vpack.c.bf16 %v348_v26, %v348_v26 }
 0x550   : > { %2183 = vmatmul.mubr.msk.bf16.vlgmr.msra.gmra.mxu1 %vm291_vm12, %v349_v28 }
 0x551   : > { %2187 = vmatpush3.bf16.xpose.msra.mxu1 %v408_v29  ;;  %2188 = vmatprep.mubr.msk.bf16.mxu1 %vm2520_vm7, %v2519_v32 }
 0x552   : > { %2198 = vmatprep.subr.bf16.mxu1 %v2519_v32 }
 0x558   : > { %2189 = vmatmul.mubr.msk.bf16.vlgmr.msra.gmra.mxu1 %vm291_vm12, %v401_v30 }
 0x559   : > { %2200 = vmatprep.mubr.msk.bf16.mxu1 %vm2520_vm7, %v2519_v32  ;;  %2199 = vmatpush3.bf16.msra.mxu1 %v2752_v49 }
 0x55a   : > { %2210 = vmatprep.subr.bf16.mxu1 %v2519_v32 }
 0x610   : > { %v393_v31 = vpop.f32.mrf.mxu1 }
 0x611   : > { %v399_v56 = vpack.c.bf16 %v393_v31, %v393_v31 }
 0x612   : > { %v2184_v33 = vpop.f32.mrf.mxu1 }
 0x614   : > { %v396_v34 = vpop.f32.mrf.mxu1 }
 0x616   : > { %v2185_v35 = vpop.f32.mrf.mxu1 }
 0x618   : > { %v444_v36 = vpop.f32.mrf.mxu1 }
 0x619   : > { %v450_v37 = vsel %vm291_vm12, %v444_v36, -inf }
 0x61a   : > { %451 = vmax.xlane.f32.xlu0 %v450_v37  ;;  %v2190_v38 = vpop.f32.mrf.mxu1 }
 0x61b   : > { %v285_v38 = vld [vmem:[%s2748_s17 + $0x8] sm:$0xf] }
 0x61c   : > { %v447_v39 = vpop.f32.mrf.mxu1 }
 0x61d   : > { %v2800_v39 = vsel %vm355_vm13, %v285_v38, 0 }
 0x61e   : > { %v2191_v40 = vpop.f32.mrf.mxu1 }
 0x630   : > { %462 = vrot.lane.b32.xlu0 %v2703_v63, %s2525_s25 }
 0x634   : > { %603 = vrot.lane.b32.xlu0 %v2703_v63, %s2526_s26 }
 0x6a3   : > { %v452_v41 = vpop.xlane.xlu0 %451 }
 0x6a4   : > { %v453_v42 = vsub.f32 %v444_v36, %v452_v41 }
 0x6a6   : > { %v454_v43 = vmul.f32 1.442695, %v453_v42 }
 0x6a7   : > { %v463_v44 = vpop.permute.xlu0 %462 }
 0x6a8   : > { %2427 = vpow2.f32 %v454_v43  ;;  %v468_v45 = vsel %vm355_vm13, %v463_v44, 0 }
 0x6a9   : > { %2193 = vmatpush3.bf16.msra.mxu0 %v468_v45 }
 0x6aa   : > { %2204 = vmatprep.subr.bf16.mxu0 %v2519_v32 }
 0x6ab   : > { %v604_v3 = vpop.permute.xlu0 %603 }
 0x6b5   : > { %v2428_v46 = vpop.eup %2427 }
 0x6b6   : > { %v456_v47 = vsel %vm291_vm12, %v2428_v46, 0.0 }
 0x6b7   : > { %457 = vadd.xlane.f32.xlu1 %v456_v47 }
 0x6c8   : > { %605 = vrot.lane.b32.xlu1 %v2703_v63, %s2527_s29 }
 0x740   : > { %v458_v50 = vpop.xlane.xlu1 %457 }
 0x741   : > { %2429 = vrcp.f32 %v458_v50 }
 0x744   : > { %v606_v57 = vpop.permute.xlu1 %605 }
 0x745   : > { %v611_v61 = vsel %vm291_vm12, %v606_v57, 0 }
 0x74e   : > { %v2430_v51 = vpop.eup %2429 }
 0x74f   : > { %v460_v53 = vmul.f32 %v2430_v51, %v2428_v46  ;;  %v2812_v51 = vpack.c.bf16 %v2707_v1, %v2707_v1 }
 0x751   : > { %v461_v54 = vpack.c.bf16 %v460_v53, %v460_v53 }
 0x753   : > { %2195 = vmatmul.mubr.msk.bf16.vlgmr.msra.gmra.mxu0 %vm291_vm12, %v461_v54 }
 0x754   : > { %2205 = vmatpush3.bf16.msra.mxu0 %v2758_v55  ;;  %2206 = vmatprep.mubr.msk.bf16.mxu0 %vm2520_vm7, %v2519_v32 }
 0x755   : > { %2216 = vmatprep.subr.bf16.mxu0 %v2519_v32 }
 0x75b   : > { %2207 = vmatmul.mubr.msk.bf16.vlgmr.msra.gmra.mxu0 %vm291_vm12, %v399_v56 }
 0x75c   : > { %2218 = vmatprep.mubr.msk.bf16.mxu0 %vm2520_vm7, %v2519_v32 }
 0x813   : > { %v504_v58 = vpop.f32.mrf.mxu0 }
 0x814   : > { %v510_v59 = vpack.c.bf16 %v504_v58, %v504_v58 }
 0x815   : > { %v2196_v60 = vpop.f32.mrf.mxu0 }
 0x816   : > { %2201 = vmatmul.mubr.msk.bf16.vlgmr.msra.gmra.mxu1 %vm291_vm12, %v510_v59 }
 0x817   : > { %2211 = vmatpush3.bf16.xpose.msra.mxu1 %v611_v61  ;;  %v507_v62 = vpop.f32.mrf.mxu0  ;;  %2212 = vmatprep.mubr.msk.bf16.mxu1 %vm2520_vm7, %v2519_v32 }
 0x818   : > { %2222 = vmatprep.subr.bf16.mxu1 %v2519_v32 }
 0x819   : > { %v2197_v0 = vpop.f32.mrf.mxu0 }
 0x81b   : > { %v2773_v2 = vpop.f32.mrf.mxu0 }
 0x81d   : > { %v2208_v5 = vpop.f32.mrf.mxu0 }
 0x81e   : > { %2213 = vmatmul.mubr.msk.bf16.vlgmr.msra.gmra.mxu1 %vm291_vm12, %v604_v3 }
 0x81f   : > { %v600_v6 = vpop.f32.mrf.mxu0  ;;  %2224 = vmatprep.mubr.msk.bf16.mxu1 %vm2520_vm7, %v2519_v32  ;;  %2223 = vmatpush3.bf16.msra.mxu1 %v2800_v39 }
 0x820   : > { %2234 = vmatprep.subr.bf16.mxu1 %v2519_v32 }
 0x821   : > { %v2209_v7 = vpop.f32.mrf.mxu0 }
 0x8d6   : > { %v2778_v12 = vpop.f32.mrf.mxu1 }
 0x8d7   : > { %v598_v1 = vadd.f32 %v2773_v2, %v2778_v12 }
 0x8d8   : > { %v2202_v13 = vpop.f32.mrf.mxu1 }
 0x8da   : > { %v554_v15 = vpop.f32.mrf.mxu1 }
 0x8dc   : > { %v2203_v16 = vpop.f32.mrf.mxu1 }
 0x8de   : > { %v647_v17 = vpop.f32.mrf.mxu1 }
 0x8df   : > { %v653_v19 = vsel %vm291_vm12, %v647_v17, -inf }
 0x8e0   : > { %654 = vmax.xlane.f32.xlu1 %v653_v19  ;;  %v2214_v20 = vpop.f32.mrf.mxu1 }
 0x8e2   : > { %v650_v21 = vpop.f32.mrf.mxu1 }
 0x8e4   : > { %v2215_v22 = vpop.f32.mrf.mxu1 }
 0x8f1   : > { %763 = vrot.lane.b32.xlu1 %v2703_v63, %s2528_s28 }
 0x8f5   : > { %761 = vrot.lane.b32.xlu1 %v2703_v63, %s2529_s18 }
 0x969   : > { %v655_v23 = vpop.xlane.xlu1 %654 }
 0x96a   : > { %v656_v24 = vsub.f32 %v647_v17, %v655_v23  ;;  %v286_v17 = vld [vmem:[%s2748_s17 + $0xc] sm:$0xf]  ;;  %s2532_s17 = smov 32  }
 0x96b   : > { %v2845_v19 = vsel %vm355_vm13, %v286_v17, 0 }
 0x96c   : > { %v657_v25 = vmul.f32 1.442695, %v656_v24 }
 0x96d   : > { %v764_v34 = vpop.permute.xlu1 %763 }
 0x96e   : > { %2431 = vpow2.f32 %v657_v25  ;;  %v769_v36 = vsel %vm291_vm12, %v764_v34, 0 }
 0x971   : > { %v762_v37 = vpop.permute.xlu1 %761 }
 0x97b   : > { %v2432_v26 = vpop.eup %2431 }
 0x97c   : > { %v659_v27 = vsel %vm291_vm12, %v2432_v26, 0.0 }
 0x97d   : > { %660 = vadd.xlane.f32.xlu0 %v659_v27 }
 0x993   : > { %665 = vrot.lane.b32.xlu0 %v2703_v63, %s2530_s19 }
 0xa06   : > { %v661_v28 = vpop.xlane.xlu0 %660 }
 0xa07   : > { %2433 = vrcp.f32 %v661_v28 }
 0xa0a   : > { %v666_v29 = vpop.permute.xlu0 %665 }
 0xa0b   : > { %v671_v30 = vsel %vm355_vm13, %v666_v29, 0 }
 0xa0c   : > { %2217 = vmatpush3.bf16.msra.mxu0 %v671_v30 }
 0xa0d   : > { %2228 = vmatprep.subr.bf16.mxu0 %v2519_v32 }
 0xa14   : > { %v2434_v31 = vpop.eup %2433 }
 0xa15   : > { %v663_v33 = vmul.f32 %v2434_v31, %v2432_v26 }
 0xa17   : > { %v664_v35 = vpack.c.bf16 %v663_v33, %v663_v33 }
 0xa19   : > { %2219 = vmatmul.mubr.msk.bf16.vlgmr.msra.gmra.mxu0 %vm291_vm12, %v664_v35 }
 0xa1a   : > { %2229 = vmatpush3.bf16.xpose.msra.mxu0 %v769_v36  ;;  %2230 = vmatprep.mubr.msk.bf16.mxu0 %vm2520_vm7, %v2519_v32 }
 0xa1b   : > { %2240 = vmatprep.subr.bf16.mxu0 %v2519_v32 }
 0xa21   : > { %2231 = vmatmul.mubr.msk.bf16.vlgmr.msra.gmra.mxu0 %vm291_vm12, %v762_v37 }
 0xa22   : > { %2242 = vmatprep.mubr.msk.bf16.mxu0 %vm2520_vm7, %v2519_v32  ;;  %2241 = vmatpush3.bf16.msra.mxu0 %v2845_v19 }
 0xa23   : > { %2252 = vmatprep.subr.bf16.mxu0 %v2519_v32 }
 0xad9   : > { %v707_v40 = vpop.f32.mrf.mxu0 }
 0xada   : > { %v713_v41 = vpack.c.bf16 %v707_v40, %v707_v40 }
 0xadb   : > { %v2220_v42 = vpop.f32.mrf.mxu0 }
 0xadc   : > { %2225 = vmatmul.mubr.msk.bf16.vlgmr.msra.gmra.mxu1 %vm291_vm12, %v713_v41 }
 0xadd   : > { %v710_v43 = vpop.f32.mrf.mxu0  ;;  %2236 = vmatprep.mubr.msk.bf16.mxu1 %vm2520_vm7, %v2519_v32 }
 0xadf   : > { %v2221_v44 = vpop.f32.mrf.mxu0 }
 0xae1   : > { %v805_v45 = vpop.f32.mrf.mxu0 }
 0xae2   : > { %v811_v46 = vsel %vm291_vm12, %v805_v45, -inf }
 0xae3   : > { %812 = vmax.xlane.f32.xlu0 %v811_v46  ;;  %v2232_v47 = vpop.f32.mrf.mxu0 }
 0xae5   : > { %v808_v48 = vpop.f32.mrf.mxu0 }
 0xae7   : > { %v2233_v50 = vpop.f32.mrf.mxu0 }
 0xaf9   : > { %823 = vrot.lane.b32.xlu0 %v2703_v63, %s2531_s20 }
 0xafd   : > { %1032 = vrot.lane.b32.xlu0 %v2812_v51, %s2522_s22  ;;  %s2946_s22 = scalar_lea.vmem %s3063_s9, %s2098_s21 }
 0xb6c   : > { %v813_v52 = vpop.xlane.xlu0 %812 }
 0xb6d   : > { %v814_v53 = vsub.f32 %v805_v45, %v813_v52 }
 0xb6f   : > { %v815_v54 = vmul.f32 1.442695, %v814_v53 }
 0xb70   : > { %v824_v56 = vpop.permute.xlu0 %823 }
 0xb71   : > { %2435 = vpow2.f32 %v815_v54  ;;  %v829_v57 = vsel %vm355_vm13, %v824_v56, 0 }
 0xb72   : > { %2235 = vmatpush3.bf16.msra.mxu1 %v829_v57 }
 0xb73   : > { %2246 = vmatprep.subr.bf16.mxu1 %v2519_v32 }
 0xb74   : > { %v1033_v2 = vpop.permute.xlu0 %1032 }
 0xb75   : > { %v1038_v12 = vsel %vm291_vm12, %v1033_v2, 0 }
 0xb7e   : > { %v2436_v58 = vpop.eup %2435 }
 0xb7f   : > { %v817_v63 = vsel %vm291_vm12, %v2436_v58, 0.0 }
 0xb80   : > { %818 = vadd.xlane.f32.xlu1 %v817_v63 }
 0xb91   : > { %921 = vrot.lane.b32.xlu1 %v2812_v51, %s2521_s1 }
 0xb95   : > { %1030 = vrot.lane.b32.xlu1 %v2812_v51, %s2524_s2 }
 0xb9c   : > { %v754_v59 = vpop.f32.mrf.mxu1 }
 0xb9d   : > { %v2825_v60 = vadd.f32 %v754_v59, %v598_v1 }
 0xb9e   : > { %v2226_v61 = vpop.f32.mrf.mxu1 }
 0xba0   : > { %v757_v62 = vpop.f32.mrf.mxu1 }
 0xba2   : > { %v2227_v0 = vpop.f32.mrf.mxu1 }
 0xc09   : > { %v819_v3 = vpop.xlane.xlu1 %818 }
 0xc0a   : > { %2437 = vrcp.f32 %v819_v3 }
 0xc0d   : > { %v922_v7 = vpop.permute.xlu1 %921 }
 0xc0e   : > { %v927_v15 = vsel %vm291_vm12, %v922_v7, 0 }
 0xc11   : > { %v1031_v16 = vpop.permute.xlu1 %1030 }
 0xc17   : > { %v2438_v5 = vpop.eup %2437 }
 0xc18   : > { %v821_v6 = vmul.f32 %v2438_v5, %v2436_v58 }
 0xc1a   : > { %v822_v13 = vpack.c.bf16 %v821_v6, %v821_v6 }
 0xc1c   : > { %2237 = vmatmul.mubr.msk.bf16.vlgmr.msra.gmra.mxu1 %vm291_vm12, %v822_v13 }
 0xc1d   : > { %2247 = vmatpush3.bf16.xpose.msra.mxu1 %v927_v15  ;;  %2248 = vmatprep.mubr.msk.bf16.mxu1 %vm2520_vm7, %v2519_v32 }
 0xc1e   : > { %2258 = vmatprep.subr.bf16.mxu1 %v2519_v32 }
 0xc24   : > { %2249 = vmatmul.mubr.msk.bf16.vlgmr.msra.gmra.mxu1 %vm291_vm12, %v2812_v51 }
 0xc25   : > { %2259 = vmatpush3.bf16.xpose.msra.mxu1 %v1038_v12  ;;  %2260 = vmatprep.mubr.msk.bf16.mxu1 %vm2520_vm7, %v2519_v32 }
 0xc26   : > { %2270 = vmatprep.subr.bf16.mxu1 %v2519_v32 }
 0xc2c   : > { %2261 = vmatmul.mubr.msk.bf16.vlgmr.msra.gmra.mxu1 %vm291_vm12, %v1031_v16 }
 0xc2d   : > { %2271 = vmatpush3.bf16.msra.mxu1 %v2752_v49  ;;  %2272 = vmatprep.mubr.msk.bf16.mxu1 %vm2520_vm7, %v2519_v32 }
 0xc2e   : > { %2282 = vmatprep.subr.bf16.mxu1 %v2519_v32 }
 0xcdc   : > { %v865_v20 = vpop.f32.mrf.mxu1 }
 0xcdd   : > { %v871_v21 = vpack.c.bf16 %v865_v20, %v865_v20 }
 0xcde   : > { %v2238_v22 = vpop.f32.mrf.mxu1 }
 0xcdf   : > { %2243 = vmatmul.mubr.msk.bf16.vlgmr.msra.gmra.mxu0 %vm291_vm12, %v871_v21 }
 0xce0   : > { %v868_v23 = vpop.f32.mrf.mxu1  ;;  %2254 = vmatprep.mubr.msk.bf16.mxu0 %vm2520_vm7, %v2519_v32 }
 0xce2   : > { %v2239_v49 = vpop.f32.mrf.mxu1 }
 0xce4   : > { %v963_v24 = vpop.f32.mrf.mxu1 }
 0xce5   : > { %v969_v25 = vsel %vm291_vm12, %v963_v24, -inf }
 0xce6   : > { %970 = vmax.xlane.f32.xlu0 %v969_v25  ;;  %v2250_v26 = vpop.f32.mrf.mxu1 }
 0xce8   : > { %v966_v27 = vpop.f32.mrf.mxu1 }
 0xcea   : > { %v2251_v28 = vpop.f32.mrf.mxu1 }
 0xcec   : > { %v1074_v29 = vpop.f32.mrf.mxu1 }
 0xced   : > { %v1080_v30 = vsel %vm291_vm12, %v1074_v29, -inf }
 0xcee   : > { %1081 = vmax.xlane.f32.xlu1 %v1080_v30  ;;  %v2262_v31 = vpop.f32.mrf.mxu1 }
 0xcf0   : > { %v1077_v33 = vpop.f32.mrf.mxu1 }
 0xcf2   : > { %v2263_v34 = vpop.f32.mrf.mxu1 }
 0xcff   : > { %1092 = vrot.lane.b32.xlu1 %v2812_v51, %s2525_s25 }
 0xd03   : > { %1229 = vrot.lane.b32.xlu1 %v2812_v51, %s2527_s29 }
 0xd07   : > { %1227 = vrot.lane.b32.xlu1 %v2812_v51, %s2526_s26  ;;  %s1539_s26 = scalar_lea.vmem %s3061_s7, %s2515_s24 }
 0xd6f   : > { %v971_v35 = vpop.xlane.xlu0 %970 }
 0xd70   : > { %v972_v36 = vsub.f32 %v963_v24, %v971_v35 }
 0xd72   : > { %v973_v37 = vmul.f32 1.442695, %v972_v36 }
 0xd74   : > { %2439 = vpow2.f32 %v973_v37 }
 0xd77   : > { %v1082_v38 = vpop.xlane.xlu1 %1081 }
 0xd78   : > { %v1083_v40 = vsub.f32 %v1074_v29, %v1082_v38 }
 0xd7a   : > { %v1084_v41 = vmul.f32 1.442695, %v1083_v40 }
 0xd7b   : > { %v1093_v1 = vpop.permute.xlu1 %1092 }
 0xd7c   : > { %2441 = vpow2.f32 %v1084_v41 }
 0xd7f   : > { %v1230_v15 = vpop.permute.xlu1 %1229 }
 0xd81   : > { %v2440_v42 = vpop.eup %2439 }
 0xd82   : > { %v975_v43 = vsel %vm291_vm12, %v2440_v42, 0.0 }
 0xd83   : > { %976 = vadd.xlane.f32.xlu0 %v975_v43  ;;  %v1228_v21 = vpop.permute.xlu1 %1227 }
 0xd89   : > { %v2442_v44 = vpop.eup %2441 }
 0xd8a   : > { %v1086_v45 = vsel %vm291_vm12, %v2442_v44, 0.0 }
 0xd8b   : > { %1087 = vadd.xlane.f32.xlu0 %v1086_v45 }
 0xd9f   : > { %v912_v46 = vpop.f32.mrf.mxu0 }
 0xda0   : > { %v2863_v47 = vadd.f32 %v912_v46, %v2825_v60  ;;  %v1098_v60 = vsel %vm355_vm13, %v1093_v1, 0 }
 0xda1   : > { %v2244_v48 = vpop.f32.mrf.mxu0  ;;  %981 = vrot.lane.b32.xlu0 %v2812_v51, %s2523_s23 }
 0xda2   : > { %v2918_v1 = vadd.f32 %v2511_v14, %v2863_v47 }
 0xda3   : > { %v915_v50 = vpop.f32.mrf.mxu0 }
 0xda5   : > { %v2245_v52 = vpop.f32.mrf.mxu0 }
 0xe0c   : > { %v977_v53 = vpop.xlane.xlu0 %976 }
 0xe0d   : > { %2443 = vrcp.f32 %v977_v53 }
 0xe14   : > { %v1088_v54 = vpop.xlane.xlu0 %1087 }
 0xe15   : > { %2445 = vrcp.f32 %v1088_v54 }
 0xe18   : > { %v982_v56 = vpop.permute.xlu0 %981 }
 0xe19   : > { %v987_v57 = vsel %vm355_vm13, %v982_v56, 0 }
 0xe1a   : > { %v2444_v58 = vpop.eup %2443  ;;  %2253 = vmatpush3.bf16.msra.mxu0 %v987_v57 }
 0xe1b   : > { %2264 = vmatprep.subr.bf16.mxu0 %v2519_v32  ;;  %v979_v63 = vmul.f32 %v2444_v58, %v2440_v42 }
 0xe1d   : > { %v980_v59 = vpack.c.bf16 %v979_v63, %v979_v63 }
 0xe1f   : > { %2255 = vmatmul.mubr.msk.bf16.vlgmr.msra.gmra.mxu0 %vm291_vm12, %v980_v59 }
 0xe20   : > { %2265 = vmatpush3.bf16.msra.mxu0 %v1098_v60  ;;  %2266 = vmatprep.mubr.msk.bf16.mxu0 %vm2520_vm7, %v2519_v32 }
 0xe21   : > { %2276 = vmatprep.subr.bf16.mxu0 %v2519_v32 }
 0xe22   : > { %v2446_v61 = vpop.eup %2445 }
 0xe23   : > { %v1090_v62 = vmul.f32 %v2446_v61, %v2442_v44  ;;  %v1543_v61 = vsel %vm157_vm6, %v2918_v1, 0.0 }
 0xe25   : > { %v1091_v0 = vpack.c.bf16 %v1090_v62, %v1090_v62 }
 0xe27   : > { %2267 = vmatmul.mubr.msk.bf16.vlgmr.msra.gmra.mxu0 %vm291_vm12, %v1091_v0 }
 0xe28   : > { %2277 = vmatpush3.bf16.msra.mxu0 %v2758_v55  ;;  %2278 = vmatprep.mubr.msk.bf16.mxu0 %vm2520_vm7, %v2519_v32  ;;  %v1235_v55 = vsel %vm291_vm12, %v1230_v15, 0 }
 0xe29   : > { %2288 = vmatprep.subr.bf16.mxu0 %v2519_v32 }
 0xedf   : > { %v1023_v3 = vpop.f32.mrf.mxu0 }
 0xee0   : > { %v1029_v5 = vpack.c.bf16 %v1023_v3, %v1023_v3 }
 0xee1   : > { %v2256_v6 = vpop.f32.mrf.mxu0 }
 0xee2   : > { %2279 = vmatmul.mubr.msk.bf16.vlgmr.msra.gmra.mxu0 %vm291_vm12, %v1029_v5 }
 0xee3   : > { %v1026_v7 = vpop.f32.mrf.mxu0  ;;  %2290 = vmatprep.mubr.msk.bf16.mxu0 %vm2520_vm7, %v2519_v32 }
 0xee5   : > { %v2257_v13 = vpop.f32.mrf.mxu0 }
 0xee7   : > { %v1134_v2 = vpop.f32.mrf.mxu0 }
 0xee8   : > { %v1140_v12 = vpack.c.bf16 %v1134_v2, %v1134_v2 }
 0xee9   : > { %v2268_v16 = vpop.f32.mrf.mxu0 }
 0xeea   : > { %2273 = vmatmul.mubr.msk.bf16.vlgmr.msra.gmra.mxu1 %vm291_vm12, %v1140_v12 }
 0xeeb   : > { %2283 = vmatpush3.bf16.xpose.msra.mxu1 %v1235_v55  ;;  %v1137_v17 = vpop.f32.mrf.mxu0  ;;  %2284 = vmatprep.mubr.msk.bf16.mxu1 %vm2520_vm7, %v2519_v32 }
 0xeec   : > { %2294 = vmatprep.subr.bf16.mxu1 %v2519_v32 }
 0xeed   : > { %v2269_v20 = vpop.f32.mrf.mxu0 }
 0xef2   : > { %2285 = vmatmul.mubr.msk.bf16.vlgmr.msra.gmra.mxu1 %vm291_vm12, %v1228_v21 }
 0xef3   : > { %2295 = vmatpush3.bf16.msra.mxu1 %v2800_v39  ;;  %2296 = vmatprep.mubr.msk.bf16.mxu1 %vm2520_vm7, %v2519_v32 }
 0xef4   : > { %2306 = vmatprep.subr.bf16.mxu1 %v2519_v32 }
 0xfa2   : > { %v1221_v22 = vpop.f32.mrf.mxu0 }
 0xfa4   : > { %v2280_v23 = vpop.f32.mrf.mxu0 }
 0xfa6   : > { %v1224_v49 = vpop.f32.mrf.mxu0 }
 0xfa8   : > { %v2281_v24 = vpop.f32.mrf.mxu0 }
 0xfaa   : > { %v1178_v25 = vpop.f32.mrf.mxu1 }
 0xfab   : > { %v2892_v26 = vadd.f32 %v1221_v22, %v1178_v25 }
 0xfac   : > { %v2274_v27 = vpop.f32.mrf.mxu1 }
 0xfae   : > { %v1181_v28 = vpop.f32.mrf.mxu1 }
 0xfb0   : > { %v2275_v29 = vpop.f32.mrf.mxu1 }
 0xfb2   : > { %v1271_v30 = vpop.f32.mrf.mxu1 }
 0xfb3   : > { %v1277_v31 = vsel %vm291_vm12, %v1271_v30, -inf }
 0xfb4   : > { %1278 = vmax.xlane.f32.xlu0 %v1277_v31  ;;  %v2286_v39 = vpop.f32.mrf.mxu1 }
 0xfb6   : > { %v1274_v33 = vpop.f32.mrf.mxu1 }
 0xfb8   : > { %v2287_v34 = vpop.f32.mrf.mxu1 }
 0xfca   : > { %1289 = vrot.lane.b32.xlu0 %v2812_v51, %s2530_s19  ;;  %s1616_s19 = scalar_lea.vmem %s3064_s10, %s2515_s24 }
 0xfce   : > { %1382 = vrot.lane.b32.xlu0 %v2812_v51, %s2529_s18 }
0x103d   : > { %v1279_v35 = vpop.xlane.xlu0 %1278 }
0x103e   : > { %v1280_v36 = vsub.f32 %v1271_v30, %v1279_v35 }
0x1040   : > { %v1281_v37 = vmul.f32 1.442695, %v1280_v36 }
0x1041   : > { %v1290_v38 = vpop.permute.xlu0 %1289 }
0x1042   : > { %2447 = vpow2.f32 %v1281_v37  ;;  %v1295_v40 = vsel %vm355_vm13, %v1290_v38, 0 }
0x1043   : > { %2289 = vmatpush3.bf16.msra.mxu0 %v1295_v40 }
0x1044   : > { %2300 = vmatprep.subr.bf16.mxu0 %v2519_v32 }
0x1045   : > { %v1383_v52 = vpop.permute.xlu0 %1382 }
0x104f   : > { %v2448_v41 = vpop.eup %2447 }
0x1050   : > { %v1283_v42 = vsel %vm291_vm12, %v2448_v41, 0.0 }
0x1051   : > { %1284 = vadd.xlane.f32.xlu1 %v1283_v42 }
0x1062   : > { %1384 = vrot.lane.b32.xlu1 %v2812_v51, %s2528_s28 }
0x10da   : > { %v1285_v43 = vpop.xlane.xlu1 %1284 }
0x10db   : > { %2449 = vrcp.f32 %v1285_v43  ;;  %v2398_v43 = vld [vmem:[%s2946_s22 + $0x20] sm:$0xff]  }
0x10de   : > { %v1385_v46 = vpop.permute.xlu1 %1384 }
0x10df   : > { %v1390_v50 = vsel %vm291_vm12, %v1385_v46, 0 }
0x10e8   : > { %v2450_v44 = vpop.eup %2449 }
0x10e9   : > { %v1287_v45 = vmul.f32 %v2450_v44, %v2448_v41  ;;  %v2399_v44 = vld [vmem:[%s2946_s22 + $0x18] sm:$0xff]  }
0x10eb   : > { %v1288_v48 = vpack.c.bf16 %v1287_v45, %v1287_v45  ;;  %v2400_v45 = vld [vmem:[%s2946_s22 + $0x10] sm:$0xff]  }
0x10ed   : > { %2291 = vmatmul.mubr.msk.bf16.vlgmr.msra.gmra.mxu0 %vm291_vm12, %v1288_v48 }
0x10ee   : > { %2301 = vmatpush3.bf16.xpose.msra.mxu0 %v1390_v50  ;;  %2302 = vmatprep.mubr.msk.bf16.mxu0 %vm2520_vm7, %v2519_v32 }
0x10ef   : > { %2312 = vmatprep.subr.bf16.mxu0 %v2519_v32 }
0x10f5   : > { %2303 = vmatmul.mubr.msk.bf16.vlgmr.msra.gmra.mxu0 %vm291_vm12, %v1383_v52 }
0x10f6   : > { %2313 = vmatpush3.bf16.msra.mxu0 %v2845_v19  ;;  %2314 = vmatprep.mubr.msk.bf16.mxu0 %vm2520_vm7, %v2519_v32 }
0x11ad   : > { %v1331_v53 = vpop.f32.mrf.mxu0 }
0x11ae   : > { %v1337_v54 = vpack.c.bf16 %v1331_v53, %v1331_v53 }
0x11af   : > { %v2292_v56 = vpop.f32.mrf.mxu0 }
0x11b0   : > { %2297 = vmatmul.mubr.msk.bf16.vlgmr.msra.gmra.mxu1 %vm291_vm12, %v1337_v54 }
0x11b1   : > { %v1334_v57 = vpop.f32.mrf.mxu0  ;;  %2308 = vmatprep.mubr.msk.bf16.mxu1 %vm2520_vm7, %v2519_v32 }
0x11b3   : > { %v2293_v58 = vpop.f32.mrf.mxu0 }
0x11b5   : > { %v1426_v63 = vpop.f32.mrf.mxu0 }
0x11b6   : > { %v1432_v19 = vsel %vm291_vm12, %v1426_v63, -inf }
0x11b7   : > { %1433 = vmax.xlane.f32.xlu1 %v1432_v19  ;;  %v2304_v59 = vpop.f32.mrf.mxu0 }
0x11b9   : > { %v1429_v60 = vpop.f32.mrf.mxu0 }
0x11bb   : > { %1544 = vadd.xlane.f32.xlu1 %v1543_v61  ;;  %v2305_v62 = vpop.f32.mrf.mxu0 }
0x1240   : > { %v1434_v0 = vpop.xlane.xlu1 %1433 }
0x1241   : > { %v1435_v3 = vsub.f32 %v1426_v63, %v1434_v0 }
0x1243   : > { %v1436_v5 = vmul.f32 1.442695, %v1435_v3  ;;  %v2068_v3 = vld [vmem:[%s1539_s26] ss:$0 sm:$0xff] }
0x1244   : > { %v1545_v25 = vpop.xlane.xlu1 %1544 }
0x1245   : > { %2451 = vpow2.f32 %v1436_v5 }
0x1252   : > { %v2452_v6 = vpop.eup %2451 }
0x1253   : > { %v1438_v7 = vsel %vm291_vm12, %v2452_v6, 0.0 }
0x1254   : > { %1439 = vadd.xlane.f32.xlu0 %v1438_v7 }
0x126a   : > { %1444 = vrot.lane.b32.xlu0 %v2812_v51, %s2531_s20  ;;  %s1778_s20 = scalar_lea.vmem %s3066_s12, %s2515_s24  ;;  %s150_s24 = sadd.s32 1, %s2515_s24  }
0x126b   : > { %p147_p0 = scmp.ge.s32.totalorder %s150_s24, 2  }
0x126c   :  { %s2534_s7 = smov (%p147_p0), [#allocation2]  }
0x126d   :  { %s1997_s8 = sshll.u32 (%p147_p0), %s2534_s7, 4  ;;  %s1998_s8 = int_to_ptr.vmem [resolvable:$true] %s1997_s8 }
0x126e   :  { %s2471_s9 = scalar_lea.vmem (%p147_p0), %s1998_s8, 256  ;;  %p2476_p2 = scmp.lt.s32.totalorder (%p147_p0), %s1998_s8, %s1998_s8 }
0x126f   :  { %p2472_p1 = scmp.ne.s32.totalorder (%p147_p0), %s1998_s8, %s2471_s9  ;;  %p2477_p3 = scmp.lt.s32.totalorder (%p147_p0), %s2471_s9, %s2471_s9 }
0x1270   : > { %v1375_v14 = vpop.f32.mrf.mxu1 }
0x1271   : > { %v1381_v47 = vadd.f32 %v1375_v14, %v2892_v26  ;;  %v1549_v26 = vmul.f32 0.03125, %v1545_v25  ;;  %p2478_p4 = por (%p147_p0), %p2477_p3, %p2476_p2 }
0x1272   : > { %v2298_v13 = vpop.f32.mrf.mxu1 }
0x1273   : > { %v1551_v28 = vsub.f32 %v2918_v1, %v1549_v26  ;;  %v2402_v13 = vld [vmem:[%s2946_s22] sm:$0xff]   ;;  %p2479_p5 = pnand (%p147_p0), %p2478_p4, %p2472_p1 }
0x1274   : > { %v1378_v15 = vpop.f32.mrf.mxu1 }
0x1275   : > { %v1553_v34 = vmul.f32 %v1551_v28, %v1551_v28  ;;  %v1589_v7 = vmul.f32 %v2068_v3, %v1551_v28 }
0x1276   : > { %v2299_v2 = vpop.f32.mrf.mxu1 }
0x1277   : > { %v1555_v36 = vsel %vm157_vm6, %v1553_v34, 0.0 }
0x12dd   : > { %v1440_v12 = vpop.xlane.xlu0 %1439 }
0x12de   : > { %2453 = vrcp.f32 %v1440_v12 }
0x12e1   : > { %v1445_v16 = vpop.permute.xlu0 %1444 }
0x12e2   : > { %v1450_v55 = vsel %vm355_vm13, %v1445_v16, 0 }
0x12e3   : > { %2307 = vmatpush3.bf16.msra.mxu1 %v1450_v55 }
0x12e4   : > { %2318 = vmatprep.subr.bf16.mxu1 %v2519_v32 }
0x12eb   : > { %v2454_v17 = vpop.eup %2453 }
0x12ec   : > { %v1442_v20 = vmul.f32 %v2454_v17, %v2452_v6  ;;  %v2401_v6 = vld [vmem:[%s2946_s22 + $0x8] sm:$0xff]  }
0x12ee   : > { %v1443_v21 = vpack.c.bf16 %v1442_v20, %v1442_v20 }
0x12f0   : > { %2309 = vmatmul.mubr.msk.bf16.vlgmr.msra.gmra.mxu1 %vm291_vm12, %v1443_v21 }
0x12f1   : > { %2330 = vmatprep.mubr.msk.bf16.mxu1 %vm2520_vm7, %v2519_v32  ;;  %vm1631_vm7 = vcmp.lt.s32.totalorder %v2623_v4, 7 }
0x13b0   : > { %v1486_v51 = vpop.f32.mrf.mxu1 }
0x13b1   : > { %v1492_v22 = vpack.c.bf16 %v1486_v51, %v1486_v51 }
0x13b2   : > { %v2310_v23 = vpop.f32.mrf.mxu1 }
0x13b3   : > { %2315 = vmatmul.mubr.msk.bf16.vlgmr.msra.gmra.mxu0 %vm291_vm12, %v1492_v22 }
0x13b4   : > { %v1489_v49 = vpop.f32.mrf.mxu1 }
0x13b6   : > { %v2311_v24 = vpop.f32.mrf.mxu1 }
0x1473   : > { %v1530_v27 = vpop.f32.mrf.mxu0 }
0x1474   : > { %v1536_v29 = vadd.f32 %v1530_v27, %v1381_v47  ;;  %v2069_v47 = vld [vmem:[%s1541_s16] ss:$0 sm:$0xff] }
0x1475   : > { %v2316_v30 = vpop.f32.mrf.mxu0 }
0x1476   : > { %v2935_v31 = vadd.f32 %v2507_v18, %v1536_v29  ;;  %v2397_v18 = vld [vmem:[%s2946_s22 + $0x28] sm:$0xff]  }
0x1477   : > { %v1533_v39 = vpop.f32.mrf.mxu0  ;;  %2319 = vmatpush3.bf16.msra.mxu1 %v2397_v18  ;;  %v2403_v18 = vld [vmem:[%s2672_s27 + $0x38] sm:$0xff]  }
0x1478   : > { %v1546_v33 = vsel %vm157_vm6, %v2935_v31, 0.0  ;;  %2320 = vmatprep.subr.bf16.mxu1 %v2519_v32 }
0x1479   : > { %1547 = vadd.xlane.f32.xlu1 %v1546_v33  ;;  %v2317_v35 = vpop.f32.mrf.mxu0 }
0x147b   : > { %2321 = vmatpush3.bf16.msra.mxu1 %v2398_v43  ;;  %v2533_v43 = vmov 0  }
0x147c   : > { %2322 = vmatprep.subr.bf16.mxu1 %v2519_v32  ;;  %1885 = vmatprep.subr.bf16.mxu0 %v2533_v43 }
0x147d   : > { %1556 = vadd.xlane.f32.xlu1 %v1555_v36  ;;  %1886 = vmatpush1.bf16.msra.mxu0 %v2403_v18 }
0x147e   : > { %1887 = vmatprep.subr.bf16.mxu0 %v2533_v43 }
0x147f   : > { %2323 = vmatpush3.bf16.msra.mxu1 %v2399_v44  ;;  %v2404_v44 = vld [vmem:[%s2672_s27 + $0x30] sm:$0xff]  }
0x1480   : > { %2324 = vmatprep.subr.bf16.mxu1 %v2519_v32 }
0x1481   : > { %1888 = vmatpush1.bf16.msra.mxu0 %v2404_v44 }
0x1482   : > { %1889 = vmatprep.subr.bf16.mxu0 %v2533_v43 }
0x1483   : > { %2325 = vmatpush3.bf16.msra.mxu1 %v2400_v45  ;;  %v2405_v45 = vld [vmem:[%s2672_s27 + $0x28] sm:$0xff]  }
0x1484   : > { %2326 = vmatprep.subr.bf16.mxu1 %v2519_v32 }
0x1485   : > { %1890 = vmatpush1.bf16.msra.mxu0 %v2405_v45 }
0x1486   : > { %1891 = vmatprep.subr.bf16.mxu0 %v2533_v43 }
0x1487   : > { %2327 = vmatpush3.bf16.msra.mxu1 %v2401_v6 }
0x1488   : > { %2328 = vmatprep.subr.bf16.mxu1 %v2519_v32 }
0x148b   : > { %2329 = vmatpush3.bf16.msra.mxu1 %v2402_v13 }
0x1502   : > { %v1548_v37 = vpop.xlane.xlu1 %1547 }
0x1503   : > { %v1550_v38 = vmul.f32 0.03125, %v1548_v37 }
0x1505   : > { %v1552_v40 = vsub.f32 %v2935_v31, %v1550_v38 }
0x1506   : > { %v1557_v46 = vpop.xlane.xlu1 %1556 }
0x1507   : > { %v1554_v41 = vmul.f32 %v1552_v40, %v1552_v40  ;;  %v1561_v48 = vmul.f32 0.032258064, %v1557_v46  ;;  %v1590_v15 = vmul.f32 %v2068_v3, %v1552_v40  ;;  %v2406_v46 = vld [vmem:[%s2672_s27 + $0x20] sm:$0xff]  }
0x1508   : > { %1892 = vmatpush1.bf16.msra.mxu0 %v2406_v46 }
0x1509   : > { %v1558_v42 = vsel %vm157_vm6, %v1554_v41, 0.0  ;;  %2455 = vrsqrt.f32 %v1561_v48  ;;  %vm1565_vm14 = vcmp.eq.f32.partialorder %v1561_v48, inf  ;;  %v1568_v57 = vand.u32 2147483648, %v1561_v48  ;;  %1893 = vmatprep.subr.bf16.mxu0 %v2533_v43 }
0x150a   : > { %1559 = vadd.xlane.f32.xlu1 %v1558_v42  ;;  %vm1567_vm15 = vcmp.eq.f32.partialorder %v1561_v48, 0.0 }
0x1516   : > { %v2456_v50 = vpop.eup %2455 }
0x1517   : > { %v1564_v54 = vmul.f32 %v2456_v50, %v1561_v48  ;;  %v2408_v50 = vld [vmem:[%s2672_s27 + $0x10] sm:$0xff]  }
0x1519   : > { %v1566_v56 = vsel %vm1565_vm14, %v1561_v48, %v1564_v54  ;;  %v2407_v48 = vld [vmem:[%s2672_s27 + $0x18] sm:$0xff]  }
0x151a   : > { %v1569_v58 = vsel %vm1567_vm15, %v1568_v57, %v1566_v56  ;;  %1894 = vmatpush1.bf16.msra.mxu0 %v2407_v48  ;;  %v2411_v54 = vld [vmem:[%s2672_s27 + $0x58] sm:$0xff]   ;;  %v2412_v56 = vld [vmem:[%s2672_s27 + $0x50] sm:$0xff]   ;;  %v2413_v57 = vld [vmem:[%s2672_s27 + $0x48] sm:$0xff]  }
0x151b   : > { %v1577_v63 = vadd.f32 1e-06, %v1569_v58  ;;  %1895 = vmatprep.subr.bf16.mxu0 %v2533_v43  ;;  %v2071_v58 = vld [vmem:[%s1616_s19] ss:$0 sm:$0xff] }
0x151e   : > { %1896 = vmatpush1.bf16.msra.mxu0 %v2408_v50 }
0x151f   : > { %1897 = vmatprep.subr.bf16.mxu0 %v2533_v43 }
0x1593   : > { %v1560_v52 = vpop.xlane.xlu1 %1559 }
0x1594   : > { %v1562_v53 = vmul.f32 0.032258064, %v1560_v52  ;;  %v2409_v52 = vld [vmem:[%s2672_s27 + $0x8] sm:$0xff]  }
0x1595   : > { %1898 = vmatpush1.bf16.msra.mxu0 %v2409_v52 }
0x1596   : > { %2457 = vrsqrt.f32 %v1562_v53  ;;  %vm1572_vm0 = vcmp.eq.f32.partialorder %v1562_v53, inf  ;;  %v1575_v60 = vand.u32 2147483648, %v1562_v53  ;;  %vm1574_vm1 = vcmp.eq.f32.partialorder %v1562_v53, 0.0  ;;  %1899 = vmatprep.subr.bf16.mxu0 %v2533_v43 }
0x1597   : > { %2459 = vrcp.f32 %v1577_v63  ;;  %v2414_v63 = vld [vmem:[%s2672_s27 + $0x40] sm:$0xff]  }
0x15a3   : > { %v2458_v19 = vpop.eup %2457 }
0x15a4   : > { %v1571_v59 = vmul.f32 %v2458_v19, %v1562_v53  ;;  %v2460_v5 = vpop.eup %2459 }
0x15a5   : > { %v1591_v14 = vmul.f32 %v2460_v5, %v1589_v7 }
0x15a6   : > { %v1573_v61 = vsel %vm1572_vm0, %v1562_v53, %v1571_v59  ;;  %v2410_v53 = vld [vmem:[%s2672_s27] sm:$0xff]  }
0x15a7   : > { %v1576_v62 = vsel %vm1574_vm1, %v1575_v60, %v1573_v61  ;;  %v1599_v16 = vadd.f32 %v2069_v47, %v1591_v14  ;;  %1900 = vmatpush1.bf16.msra.mxu0 %v2410_v53 }
0x15a8   : > { %v1578_v0 = vadd.f32 1e-06, %v1576_v62  ;;  %1909 = vmatprep.subr.bf16.mxu0 %v2533_v43 }
0x15a9   : > { %v1629_v20 = vrot.slane %v1599_v16, 1  ;;  %v1618_v25 = vrot.slane %v1599_v16, 7 }
0x15aa   : > { %2461 = vrcp.f32 %v1578_v0 }
0x15ab   : > { %1910 = vmatpush2.bf16.msra.mxu0 %v2411_v54 }
0x15ac   : > { %1911 = vmatprep.subr.bf16.mxu0 %v2533_v43 }
0x15af   : > { %1912 = vmatpush2.bf16.msra.mxu0 %v2412_v56 }
0x15b0   : > { %1913 = vmatprep.subr.bf16.mxu0 %v2533_v43 }
0x15b3   : > { %1914 = vmatpush2.bf16.msra.mxu0 %v2413_v57 }
0x15b4   : > { %1915 = vmatprep.subr.bf16.mxu0 %v2533_v43 }
0x15b7   : > { %v2462_v2 = vpop.eup %2461  ;;  %1916 = vmatpush2.bf16.msra.mxu0 %v2414_v63 }
0x15b8   : > { %v1592_v12 = vmul.f32 %v2462_v2, %v1590_v15 }
0x15ba   : > { %v1600_v55 = vadd.f32 %v2069_v47, %v1592_v12 }
0x15bc   : > { %v2380_v17 = vpack.i.bf16 %v1600_v55, %v1599_v16  ;;  %v1630_v21 = vrot.slane %v1600_v55, 1  ;;  %v1619_v24 = vrot.slane %v1600_v55, 7 }
0x15be   : > { %2381 = vrot.lane.b32.xlu1 %v2380_v17, %s2532_s17  ;;  %v1632_v51 = vsel %vm1631_vm7, %v1629_v20, %v1630_v21  ;;  %v1633_v32 = vsel %vm1631_vm7, %v1630_v21, %v1629_v20  ;;  %v1621_v29 = vsel %vm1620_vm8, %v1618_v25, %v1619_v24  ;;  %v1622_v30 = vsel %vm1620_vm8, %v1619_v24, %v1618_v25 }
0x15bf   : > { %v1638_v22 = vsel %vm2635_vm4, 0.0, %v1632_v51  ;;  %v1639_v23 = vsel %vm2639_vm5, 0.0, %v1633_v32  ;;  %v1627_v33 = vsel %vm2627_vm2, 0.0, %v1622_v30  ;;  %v1628_v34 = vsel %vm2631_vm3, 0.0, %v1621_v29 }
0x15c0   : > { %v2385_v49 = vpack.i.bf16 %v1639_v23, %v1638_v22 }
0x15c2   : > { %2386 = vrot.lane.b32.xlu0 %v2385_v49, %s2523_s23 }
0x1630   : > { %v2382_v26 = vpop.permute.xlu1 %2381 }
0x1631   : > { %v2384_v27 = vunpack.i.h.bf16 %v2382_v26  ;;  %v2383_v28 = vunpack.i.l.bf16 %v2382_v26  ;;  %v2080_v26 = vld [vmem:[%s1778_s20] ss:$0 sm:$0xff] }
0x1633   : > { %v1656_v37 = vsel %vm157_vm6, %v1627_v33, %v2383_v28  ;;  %v1657_v38 = vsel %vm157_vm6, %v1628_v34, %v2384_v27 }
0x1634   : > { %v2387_v39 = vpop.permute.xlu0 %2386 }
0x1635   : > { %v2389_v35 = vunpack.i.h.bf16 %v2387_v39  ;;  %v2388_v36 = vunpack.i.l.bf16 %v2387_v39 }
0x1637   : > { %v1659_v40 = vsel %vm1658_vm9, %v1656_v37, %v2388_v36  ;;  %v1660_v41 = vsel %vm1658_vm9, %v1657_v38, %v2389_v35 }
0x1638   : > { %v1661_v42 = vpack.c.bf16 %v1660_v41, %v1659_v40 }
0x163a   : > { %2331 = vmatmul.mubr.msk.bf16.vlgmr.msra.gmra.mxu1 %vm1704_vm10, %v1661_v42 }
0x16fa   : > { %v1742_v19 = vpop.f32.mrf.mxu1 }
0x16fb   : > { %v1743_v59 = vadd.f32 %v2071_v58, %v1742_v19 }
0x16fc   : > { %v2332_v60 = vpop.f32.mrf.mxu1 }
0x16fd   : > { %v1749_v61 = vmax.f32 %v1743_v59, 0.0  ;;  %v2094_v59 = vld [vmem:[%s3067_s13] ss:$0 sm:$0xff] (%p147_p0) }
0x16fe   : > { %v1745_v62 = vpop.f32.mrf.mxu1 }
0x16ff   : > { %v1746_v0 = vadd.f32 %v2071_v58, %v1745_v62  ;;  %v1780_v6 = vrot.slane %v1749_v61, 7  ;;  %v1786_v7 = vrot.slane %v1749_v61, 1  ;;  %v2095_v62 = vld [vmem:[%s3068_s14] ss:$0 sm:$0xff] (%p147_p0) }
0x1700   : > { %v2333_v3 = vpop.f32.mrf.mxu1 }
0x1701   : > { %v1750_v5 = vmax.f32 %v1746_v0, 0.0 }
0x1703   : > { %v1781_v14 = vrot.slane %v1750_v5, 7  ;;  %v1787_v47 = vrot.slane %v1750_v5, 1  ;;  %v2390_v13 = vpack.i.bf16 %v1750_v5, %v1749_v61 }
0x1705   : > { %2391 = vrot.lane.b32.xlu0 %v2390_v13, %s2523_s23  ;;  %v1788_v15 = vsel %vm1631_vm7, %v1786_v7, %v1787_v47  ;;  %v1789_v2 = vsel %vm1631_vm7, %v1787_v47, %v1786_v7  ;;  %v1782_v12 = vsel %vm1620_vm8, %v1780_v6, %v1781_v14  ;;  %v1783_v16 = vsel %vm1620_vm8, %v1781_v14, %v1780_v6 }
0x1706   : > { %v1790_v55 = vsel %vm2635_vm4, 0.0, %v1788_v15  ;;  %v1791_v17 = vsel %vm2639_vm5, 0.0, %v1789_v2  ;;  %v1784_v22 = vsel %vm2627_vm2, 0.0, %v1783_v16  ;;  %v1785_v23 = vsel %vm2631_vm3, 0.0, %v1782_v12 }
0x1707   : > { %v1803_v20 = vpack.c.bf16 %v1791_v17, %v1790_v55 }
0x1709   : > { %2093 = vmatprep.mubr.msk.bf16.mxu0 %vm1658_vm9, %v1803_v20 }
0x1777   : > { %v2392_v21 = vpop.permute.xlu0 %2391 }
0x1778   : > { %v2394_v51 = vunpack.i.h.bf16 %v2392_v21  ;;  %v2393_v32 = vunpack.i.l.bf16 %v2392_v21 }
0x177a   : > { %v1800_v49 = vsel %vm1658_vm9, %v1784_v22, %v2393_v32  ;;  %v1801_v24 = vsel %vm1658_vm9, %v1785_v23, %v2394_v51 }
0x177b   : > { %v1802_v25 = vpack.c.bf16 %v1801_v24, %v1800_v49 }
0x177d   : > { %1918 = vmatmul.mubr.bf16.vlgmr.msra.gmra.mxu0 %v1802_v25 }
0x183d   : > { %v1919_v27 = vpop.f32.mrf.mxu0 }
0x183e   : > { %v1920_v28 = vadd.f32 %v2080_v26, %v1919_v27 }
0x183f   : > { %v1921_v29 = vpop.f32.mrf.mxu0 }
0x1840   : > { %v1926_v30 = vadd.f32 %v1920_v28, %v2918_v1  }
0x1841   : > { %v1922_v39 = vpop.f32.mrf.mxu0 }
0x1842   : > { %v1923_v33 = vadd.f32 %v2080_v26, %v1922_v39  ;;  %v3079_v14 = vmov %v1926_v30  ;;  %149 = sbr.rel (!%p147_p0) target bundleno = 204 (0xcc), region = 97  ;;  %v1931_v36 = vsel (%p147_p0), %vm157_vm6, %v1926_v30, 0.0 }
0x1843   : > { %v1924_v34 = vpop.f32.mrf.mxu0  ;;  %1932 = vadd.xlane.f32.xlu0 (%p147_p0), %v1931_v36 }
0x1844   : > { %v1927_v35 = vadd.f32 %v1923_v33, %v2935_v31  }
0x1846   : > { %v3078_v18 = vmov %v1927_v35  ;;  %v1934_v1 = vsel (%p147_p0), %vm157_vm6, %v1927_v35, 0.0 }
0x1847   :  { %1935 = vadd.xlane.f32.xlu0 %v1934_v1 }
0x18cc   :  { %v1933_v37 = vpop.xlane.xlu0 %1932 }
0x18cd   :  { %v1938_v38 = vmul.f32 0.03125, %v1933_v37 }
0x18cf   :  { %v1940_v40 = vsub.f32 %v1926_v30, %v1938_v38 }
0x18d0   :  { %v1936_v31 = vpop.xlane.xlu0 %1935 }
0x18d1   :  { %v1939_v41 = vmul.f32 0.03125, %v1936_v31  ;;  %v1942_v42 = vmul.f32 %v1940_v40, %v1940_v40  ;;  %v1978_v60 = vmul.f32 %v2094_v59, %v1940_v40 }
0x18d3   :  { %v1941_v43 = vsub.f32 %v1927_v35, %v1939_v41  ;;  %v1944_v44 = vsel %vm157_vm6, %v1942_v42, 0.0 }
0x18d4   :  { %1945 = vadd.xlane.f32.xlu1 %v1944_v44 }
0x18d5   :  { %v1943_v45 = vmul.f32 %v1941_v43, %v1941_v43  ;;  %v1979_v3 = vmul.f32 %v2094_v59, %v1941_v43 }
0x18d7   :  { %v1947_v46 = vsel %vm157_vm6, %v1943_v45, 0.0 }
0x18d8   :  { %1948 = vadd.xlane.f32.xlu1 %v1947_v46 }
0x195d   :  { %v1946_v4 = vpop.xlane.xlu1 %1945 }
0x195e   :  { %v1950_v8 = vmul.f32 0.032258064, %v1946_v4 }
0x1960   :  { %2463 = vrsqrt.f32 %v1950_v8  ;;  %vm1954_vm2 = vcmp.eq.f32.partialorder %v1950_v8, inf  ;;  %v1957_v48 = vand.u32 2147483648, %v1950_v8  ;;  %vm1956_vm3 = vcmp.eq.f32.partialorder %v1950_v8, 0.0 }
0x1961   :  { %v1949_v9 = vpop.xlane.xlu1 %1948 }
0x1962   :  { %v1951_v10 = vmul.f32 0.032258064, %v1949_v9 }
0x1964   :  { %2465 = vrsqrt.f32 %v1951_v10  ;;  %vm1961_vm4 = vcmp.eq.f32.partialorder %v1951_v10, inf  ;;  %v1964_v57 = vand.u32 2147483648, %v1951_v10  ;;  %vm1963_vm5 = vcmp.eq.f32.partialorder %v1951_v10, 0.0 }
0x196d   :  { %v2464_v11 = vpop.eup %2463 }
0x196e   :  { %v1953_v18 = vmul.f32 %v2464_v11, %v1950_v8 }
0x1970   :  { %v1955_v50 = vsel %vm1954_vm2, %v1950_v8, %v1953_v18 }
0x1971   :  { %v2466_v52 = vpop.eup %2465  ;;  %v1958_v53 = vsel %vm1956_vm3, %v1957_v48, %v1955_v50 }
0x1972   :  { %v1966_v54 = vadd.f32 1e-06, %v1958_v53  ;;  %v1960_v56 = vmul.f32 %v2466_v52, %v1951_v10 }
0x1974   :  { %2467 = vrcp.f32 %v1966_v54  ;;  %v1962_v58 = vsel %vm1961_vm4, %v1951_v10, %v1960_v56 }
0x1975   :  { %v1965_v63 = vsel %vm1963_vm5, %v1964_v57, %v1962_v58 }
0x1976   :  { %v1967_v19 = vadd.f32 1e-06, %v1965_v63 }
0x1978   :  { %2469 = vrcp.f32 %v1967_v19 }
0x1981   :  { %v2468_v61 = vpop.eup %2467 }
0x1982   :  { %v1980_v0 = vmul.f32 %v2468_v61, %v1978_v60 }
0x1984   :  { %v1988_v5 = vadd.f32 %v2095_v62, %v1980_v0 }
0x1985   :  { %v2470_v6 = vpop.eup %2469 }
0x1986   :  { %v1981_v7 = vmul.f32 %v2470_v6, %v1979_v3  ;;  %1990 = vst.msk [vmem:[#allocation2] sm:$0xff] %vm157_vm6, %v1988_v5 }
0x1988   :  { %v1989_v14 = vadd.f32 %v2095_v62, %v1981_v7 }
0x198a   :  { %1991 = vst.msk [vmem:[#allocation2 + $0x8] sm:$0xff] %vm157_vm6, %v1989_v14 }
0x198b   :  { %2482 = shalt.err (!%p2479_p5)
}
0x198c   :  { %s2535_s10 = smov 128   ;;  %s2536_s11 = smov 8  }
0x198d   :  { %2003 = dma.vmem_to_hbm [thread:$0]  %s1998_s8, 256, %s3069_s15, [#allocation3], %s2535_s10, %s2535_s10, %s2536_s11  }
0x198e   :  { %2503 = dma.done.wait [#allocation3], 256  }
0x198f   :  { %2504 = vsyncadd [#allocation3], 4294967040 }
0x1990   :  { %2007 = vsyncpa [#allocation3], 1 }

// kernel: tpu_custom_call.1
= control target key start
LH: loop header
LB: loop body
LE: loop exit
PB: predicated region body
PF: predicated region fallthrough
CT: control target
= control target key end

     0   :  { %20 = vsyncpa [#allocation3], 0  ;;  %v2517_v1 = vmov 0.0   ;;  %vm2518_vm0 = vmmov 0   ;;  %vm69_vm1 = vcmask 130048   ;;  %v114_v3 = vlaneseq  ;;  %s2653_s24 = smov 0   ;;  %s3054_s0 = inlined_call_operand.vmem [shape: bf16[16,16], index: 0, kind: input, shape index: {}]   ;;  %s3055_s1 = inlined_call_operand.vmem [shape: bf16[16,32], index: 1, kind: input, shape index: {}]   ;;  %s3056_s2 = inlined_call_operand.vmem [shape: f32[16,32], index: 2, kind: input, shape index: {}]   ;;  %s3057_s3 = inlined_call_operand.vmem [shape: f32[2,1,32], index: 3, kind: input, shape index: {}]   ;;  %s3058_s4 = inlined_call_operand.vmem [shape: f32[2,1,32], index: 4, kind: input, shape index: {}]   ;;  %s3059_s5 = inlined_call_operand.vmem [shape: bf16[2,32,96], index: 5, kind: input, shape index: {}]   ;;  %s3060_s6 = inlined_call_operand.vmem [shape: bf16[2,32,32], index: 6, kind: input, shape index: {}]   ;;  %s3061_s7 = inlined_call_operand.vmem [shape: f32[2,1,32], index: 7, kind: input, shape index: {}]   ;;  %s3062_s8 = inlined_call_operand.vmem [shape: f32[2,1,32], index: 8, kind: input, shape index: {}]   ;;  %s3063_s9 = inlined_call_operand.vmem [shape: bf16[2,96,64], index: 9, kind: input, shape index: {}]   ;;  %s3064_s10 = inlined_call_operand.vmem [shape: f32[2,1,64], index: 10, kind: input, shape index: {}]   ;;  %s3065_s11 = inlined_call_operand.vmem [shape: bf16[2,192,32], index: 11, kind: input, shape index: {}]   ;;  %s3066_s12 = inlined_call_operand.vmem [shape: f32[2,1,32], index: 12, kind: input, shape index: {}]   ;;  %s3067_s13 = inlined_call_operand.vmem [shape: f32[1,32], index: 13, kind: input, shape index: {}]   ;;  %s3068_s14 = inlined_call_operand.vmem [shape: f32[1,32], index: 14, kind: input, shape index: {}]   ;;  %s3069_s15 = inlined_call_operand.hbm [shape: f32[16,32], index: 15, kind: output, shape index: {}]  }
   0x1   :  { %v2378_v0 = vld [vmem:[%s3055_s1] sm:$0xff]   ;;  %2160 = vmatprep.subr.bf16.mxu0 %v2517_v1  ;;  %2162 = vmatprep.mubr.msk.bf16.mxu0 %vm2518_vm0, %v2517_v1  ;;  %v57_v16 = vld [vmem:[%s3056_s2 + $0x8] sm:$0xff] }
   0x2   :  { %v2379_v2 = vld [vmem:[%s3054_s0] sm:$0xff]   ;;  %2161 = vmatpush3.bf16.msra.mxu0 %v2378_v0  ;;  %v2623_v4 = vshrl.u32 %v114_v3, 7 }
   0x3   :  { %v56_v12 = vld [vmem:[%s3056_s2] sm:$0xff] }
   0x4   :  { %v116_v5 = vadd.s32 8, %v2623_v4  ;;  %v121_v6 = vand.u32 7, %v2623_v4 }
   0x5   :  { %2163 = vmatmul.mubr.msk.bf16.vlgmr.msra.gmra.mxu0 %vm69_vm1, %v2379_v2 }
   0x6   :  { %v128_v7 = vand.u32 7, %v116_v5  ;;  %vm2627_vm2 = vcmp.eq.s32.totalorder %v121_v6, 0  ;;  %vm2635_vm4 = vcmp.eq.s32.totalorder %v121_v6, 7 }
   0x8   :  { %vm2631_vm3 = vcmp.eq.s32.totalorder %v128_v7, 0  ;;  %vm2639_vm5 = vcmp.eq.s32.totalorder %v128_v7, 7 }
  0xc5   :  { %v107_v13 = vpop.f32.mrf.mxu0 }
  0xc6   :  { %v108_v14 = vadd.f32 %v107_v13, %v56_v12  }
  0xc7   :  { %v2164_v15 = vpop.f32.mrf.mxu0 }
  0xc9   :  { %v110_v17 = vpop.f32.mrf.mxu0 }
  0xca   :  { %v111_v18 = vadd.f32 %v110_v17, %v57_v16  }
  0xcb   :  { %v2165_v19 = vpop.f32.mrf.mxu0 }
  0xcc LB: > { %vm157_vm6 = vcmask 261120   ;;  %s2099_s2 = smul.u32 96, %s2515_s24  ;;  %s2096_s28 = sshll.u32 %s2515_s24, 4  ;;  %v2519_v32 = vmov 0.0   ;;  %vm2520_vm7 = vmmov 0   ;;  %vm291_vm12 = vcmask 64512   ;;  %s2515_s24 = sphi %s2653_s24, %s150_s24   ;;  %v2511_v14 = vphi %v108_v14, %v3079_v14   ;;  %v2507_v18 = vphi %v111_v18, %v3078_v18  }
  0xcd   : > { %v158_v20 = vsel %vm157_vm6, %v2511_v14, 0.0  ;;  %v161_v21 = vsel %vm157_vm6, %v2507_v18, 0.0  ;;  %2166 = vmatprep.subr.bf16.mxu1 %v2519_v32  ;;  %s220_s16 = scalar_lea.vmem %s3059_s5, %s2096_s28  ;;  %2170 = vmatprep.mubr.msk.bf16.mxu1 %vm2520_vm7, %v2519_v32  ;;  %s153_s19 = scalar_lea.vmem %s3057_s3, %s2515_s24  ;;  %vm355_vm13 = vcmask 1043456  }
  0xce   : > { %159 = vadd.xlane.f32.xlu0 %v158_v20  ;;  %s2672_s27 = scalar_lea.vmem %s3065_s11, %s2099_s2  ;;  %v2395_v33 = vld [vmem:[%s220_s16 + $0x8] sm:$0xff]   ;;  %2192 = vmatprep.subr.bf16.mxu0 %v2519_v32  ;;  %v2396_v34 = vld [vmem:[%s220_s16] sm:$0xff]   ;;  %s155_s0 = scalar_lea.vmem %s3058_s4, %s2515_s24 }
  0xcf   : > { %2194 = vmatprep.mubr.msk.bf16.mxu0 %vm2520_vm7, %v2519_v32  ;;  %2167 = vmatpush3.bf16.msra.mxu1 %v2395_v33  ;;  %v2036_v51 = vld [vmem:[%s153_s19] ss:$0 sm:$0xff]  ;;  %s2521_s1 = smov 96   ;;  %s2522_s22 = smov 88  }
  0xd0   : > { %2168 = vmatprep.subr.bf16.mxu1 %v2519_v32  ;;  %v2037_v57 = vld [vmem:[%s155_s0] ss:$0 sm:$0xff]  ;;  %s2523_s23 = smov 64   ;;  %s2524_s2 = smov 120  }
  0xd1   : > { %s2525_s25 = smov 56   ;;  %s2526_s26 = smov 112  }
  0xd2   : > { %162 = vadd.xlane.f32.xlu0 %v161_v21  ;;  %s2527_s29 = smov 80   ;;  %s2748_s17 = scalar_lea.vmem %s3060_s6, %s2096_s28 }
  0xd3   : > { %2169 = vmatpush3.bf16.msra.mxu1 %v2396_v34  ;;  %s2528_s28 = smov 72   ;;  %s2529_s18 = smov 104  }
  0xd4   : > { %2174 = vmatprep.subr.bf16.mxu1 %v2519_v32  ;;  %s2530_s19 = smov 48   ;;  %s2531_s20 = smov 40  }
  0xd5   : > { %s2098_s21 = smul.u32 48, %s2515_s24  ;;  %s1541_s16 = scalar_lea.vmem %s3062_s8, %s2515_s24 }
 0x157   : > { %v160_v22 = vpop.xlane.xlu0 %159 }
 0x158   : > { %v165_v23 = vmul.f32 0.03125, %v160_v22 }
 0x15a   : > { %v167_v24 = vsub.f32 %v2511_v14, %v165_v23 }
 0x15b   : > { %v163_v25 = vpop.xlane.xlu0 %162 }
 0x15c   : > { %v166_v26 = vmul.f32 0.03125, %v163_v25  ;;  %v169_v27 = vmul.f32 %v167_v24, %v167_v24  ;;  %v205_v53 = vmul.f32 %v2036_v51, %v167_v24 }
 0x15e   : > { %v168_v28 = vsub.f32 %v2507_v18, %v166_v26  ;;  %v171_v29 = vsel %vm157_vm6, %v169_v27, 0.0 }
 0x15f   : > { %172 = vadd.xlane.f32.xlu1 %v171_v29 }
 0x160   : > { %v170_v30 = vmul.f32 %v168_v28, %v168_v28  ;;  %v206_v54 = vmul.f32 %v2036_v51, %v168_v28 }
 0x162   : > { %v174_v31 = vsel %vm157_vm6, %v170_v30, 0.0 }
 0x163   : > { %175 = vadd.xlane.f32.xlu1 %v174_v31 }
 0x1e8   : > { %v173_v35 = vpop.xlane.xlu1 %172 }
 0x1e9   : > { %v177_v36 = vmul.f32 0.032258064, %v173_v35 }
 0x1eb   : > { %2415 = vrsqrt.f32 %v177_v36  ;;  %vm181_vm8 = vcmp.eq.f32.partialorder %v177_v36, inf  ;;  %v184_v41 = vand.u32 2147483648, %v177_v36  ;;  %vm183_vm9 = vcmp.eq.f32.partialorder %v177_v36, 0.0 }
 0x1ec   : > { %v176_v37 = vpop.xlane.xlu1 %175 }
 0x1ed   : > { %v178_v38 = vmul.f32 0.032258064, %v176_v37 }
 0x1ef   : > { %2417 = vrsqrt.f32 %v178_v38  ;;  %vm188_vm10 = vcmp.eq.f32.partialorder %v178_v38, inf  ;;  %v191_v47 = vand.u32 2147483648, %v178_v38  ;;  %vm190_vm11 = vcmp.eq.f32.partialorder %v178_v38, 0.0 }
 0x1f8   : > { %v2416_v39 = vpop.eup %2415 }
 0x1f9   : > { %v180_v40 = vmul.f32 %v2416_v39, %v177_v36 }
 0x1fb   : > { %v182_v42 = vsel %vm181_vm8, %v177_v36, %v180_v40  ;;  %vm1620_vm8 = vcmp.lt.s32.totalorder %v2623_v4, 1 }
 0x1fc   : > { %v2418_v43 = vpop.eup %2417  ;;  %v185_v44 = vsel %vm183_vm9, %v184_v41, %v182_v42  ;;  %vm1658_vm9 = vcmask 523264  }
 0x1fd   : > { %v193_v45 = vadd.f32 1e-06, %v185_v44  ;;  %v187_v46 = vmul.f32 %v2418_v43, %v178_v38 }
 0x1ff   : > { %2419 = vrcp.f32 %v193_v45  ;;  %v189_v48 = vsel %vm188_vm10, %v178_v38, %v187_v46  ;;  %vm1704_vm10 = vcmask 785408  }
 0x200   : > { %v192_v49 = vsel %vm190_vm11, %v191_v47, %v189_v48  ;;  %v284_v48 = vld [vmem:[%s2748_s17 + $0x4] sm:$0xf] }
 0x201   : > { %v194_v50 = vadd.f32 1e-06, %v192_v49  ;;  %v2752_v49 = vsel %vm355_vm13, %v284_v48, 0 }
 0x203   : > { %2421 = vrcp.f32 %v194_v50 }
 0x20c   : > { %v2420_v52 = vpop.eup %2419 }
 0x20d   : > { %v207_v55 = vmul.f32 %v2420_v52, %v205_v53  ;;  %v283_v52 = vld [vmem:[%s2748_s17] sm:$0xf] }
 0x20f   : > { %v215_v59 = vadd.f32 %v2037_v57, %v207_v55  ;;  %v2758_v55 = vsel %vm355_vm13, %v283_v52, 0 }
 0x210   : > { %v2422_v56 = vpop.eup %2421 }
 0x211   : > { %v208_v58 = vmul.f32 %v2422_v56, %v206_v54 }
 0x213   : > { %v216_v60 = vadd.f32 %v2037_v57, %v208_v58 }
 0x215   : > { %v217_v61 = vpack.c.bf16 %v216_v60, %v215_v59 }
 0x217   : > { %2171 = vmatmul.mubr.msk.bf16.vlgmr.msra.gmra.mxu1 %vm157_vm6, %v217_v61 }
 0x218   : > { %2176 = vmatprep.mubr.msk.bf16.mxu1 %vm2520_vm7, %v2519_v32 }
 0x2d7   : > { %v274_v62 = vpop.f32.mrf.mxu1 }
 0x2d8   : > { %v2703_v63 = vpack.c.bf16 %v274_v62, %v274_v62 }
 0x2d9   : > { %v2172_v0 = vpop.f32.mrf.mxu1 }
 0x2da   : > { %289 = vrot.lane.b32.xlu0 %v2703_v63, %s2521_s1 }
 0x2db   : > { %v2707_v1 = vpop.f32.mrf.mxu1 }
 0x2dd   : > { %v2173_v2 = vpop.f32.mrf.mxu1 }
 0x2de   : > { %402 = vrot.lane.b32.xlu0 %v2703_v63, %s2522_s22 }
 0x34c   : > { %v290_v3 = vpop.permute.xlu0 %289 }
 0x34d   : > { %v296_v5 = vsel %vm291_vm12, %v290_v3, 0 }
 0x34e   : > { %2175 = vmatpush3.bf16.xpose.msra.mxu1 %v296_v5 }
 0x34f   : > { %2180 = vmatprep.subr.bf16.mxu1 %v2519_v32 }
 0x350   : > { %v403_v27 = vpop.permute.xlu0 %402 }
 0x351   : > { %v408_v29 = vsel %vm291_vm12, %v403_v27, 0 }
 0x355   : > { %2177 = vmatmul.mubr.msk.bf16.vlgmr.msra.gmra.mxu1 %vm291_vm12, %v2703_v63 }
 0x356   : > { %2182 = vmatprep.mubr.msk.bf16.mxu1 %vm2520_vm7, %v2519_v32 }
 0x415   : > { %v332_v6 = vpop.f32.mrf.mxu1 }
 0x416   : > { %v338_v7 = vsel %vm291_vm12, %v332_v6, -inf }
 0x417   : > { %339 = vmax.xlane.f32.xlu1 %v338_v7  ;;  %v2178_v12 = vpop.f32.mrf.mxu1 }
 0x419   : > { %v335_v13 = vpop.f32.mrf.mxu1 }
 0x41b   : > { %v2179_v15 = vpop.f32.mrf.mxu1 }
 0x4a0   : > { %v340_v16 = vpop.xlane.xlu1 %339 }
 0x4a1   : > { %v341_v17 = vsub.f32 %v332_v6, %v340_v16 }
 0x4a3   : > { %v342_v19 = vmul.f32 1.442695, %v341_v17 }
 0x4a5   : > { %2423 = vpow2.f32 %v342_v19 }
 0x4b2   : > { %v2424_v20 = vpop.eup %2423 }
 0x4b3   : > { %v344_v21 = vsel %vm291_vm12, %v2424_v20, 0.0 }
 0x4b4   : > { %345 = vadd.xlane.f32.xlu1 %v344_v21 }
 0x4c5   : > { %350 = vrot.lane.b32.xlu1 %v2703_v63, %s2523_s23 }
 0x4c9   : > { %400 = vrot.lane.b32.xlu1 %v2703_v63, %s2524_s2 }
 0x53d   : > { %v346_v22 = vpop.xlane.xlu1 %345 }
 0x53e   : > { %2425 = vrcp.f32 %v346_v22 }
 0x541   : > { %v351_v23 = vpop.permute.xlu1 %350 }
 0x542   : > { %v357_v24 = vsel %vm355_vm13, %v351_v23, 0 }
 0x543   : > { %2181 = vmatpush3.bf16.msra.mxu1 %v357_v24 }
 0x544   : > { %2186 = vmatprep.subr.bf16.mxu1 %v2519_v32 }
 0x545   : > { %v401_v30 = vpop.permute.xlu1 %400 }
 0x54b   : > { %v2426_v25 = vpop.eup %2425 }
 0x54c   : > { %v348_v26 = vmul.f32 %v2426_v25, %v2424_v20 }
 0x54e   : > { %v349_v28 = vpack.c.bf16 %v348_v26, %v348_v26 }
 0x550   : > { %2183 = vmatmul.mubr.msk.bf16.vlgmr.msra.gmra.mxu1 %vm291_vm12, %v349_v28 }
 0x551   : > { %2187 = vmatpush3.bf16.xpose.msra.mxu1 %v408_v29  ;;  %2188 = vmatprep.mubr.msk.bf16.mxu1 %vm2520_vm7, %v2519_v32 }
 0x552   : > { %2198 = vmatprep.subr.bf16.mxu1 %v2519_v32 }
 0x558   : > { %2189 = vmatmul.mubr.msk.bf16.vlgmr.msra.gmra.mxu1 %vm291_vm12, %v401_v30 }
 0x559   : > { %2200 = vmatprep.mubr.msk.bf16.mxu1 %vm2520_vm7, %v2519_v32  ;;  %2199 = vmatpush3.bf16.msra.mxu1 %v2752_v49 }
 0x55a   : > { %2210 = vmatprep.subr.bf16.mxu1 %v2519_v32 }
 0x610   : > { %v393_v31 = vpop.f32.mrf.mxu1 }
 0x611   : > { %v399_v56 = vpack.c.bf16 %v393_v31, %v393_v31 }
 0x612   : > { %v2184_v33 = vpop.f32.mrf.mxu1 }
 0x614   : > { %v396_v34 = vpop.f32.mrf.mxu1 }
 0x616   : > { %v2185_v35 = vpop.f32.mrf.mxu1 }
 0x618   : > { %v444_v36 = vpop.f32.mrf.mxu1 }
 0x619   : > { %v450_v37 = vsel %vm291_vm12, %v444_v36, -inf }
 0x61a   : > { %451 = vmax.xlane.f32.xlu0 %v450_v37  ;;  %v2190_v38 = vpop.f32.mrf.mxu1 }
 0x61b   : > { %v285_v38 = vld [vmem:[%s2748_s17 + $0x8] sm:$0xf] }
 0x61c   : > { %v447_v39 = vpop.f32.mrf.mxu1 }
 0x61d   : > { %v2800_v39 = vsel %vm355_vm13, %v285_v38, 0 }
 0x61e   : > { %v2191_v40 = vpop.f32.mrf.mxu1 }
 0x630   : > { %462 = vrot.lane.b32.xlu0 %v2703_v63, %s2525_s25 }
 0x634   : > { %603 = vrot.lane.b32.xlu0 %v2703_v63, %s2526_s26 }
 0x6a3   : > { %v452_v41 = vpop.xlane.xlu0 %451 }
 0x6a4   : > { %v453_v42 = vsub.f32 %v444_v36, %v452_v41 }
 0x6a6   : > { %v454_v43 = vmul.f32 1.442695, %v453_v42 }
 0x6a7   : > { %v463_v44 = vpop.permute.xlu0 %462 }
 0x6a8   : > { %2427 = vpow2.f32 %v454_v43  ;;  %v468_v45 = vsel %vm355_vm13, %v463_v44, 0 }
 0x6a9   : > { %2193 = vmatpush3.bf16.msra.mxu0 %v468_v45 }
 0x6aa   : > { %2204 = vmatprep.subr.bf16.mxu0 %v2519_v32 }
 0x6ab   : > { %v604_v3 = vpop.permute.xlu0 %603 }
 0x6b5   : > { %v2428_v46 = vpop.eup %2427 }
 0x6b6   : > { %v456_v47 = vsel %vm291_vm12, %v2428_v46, 0.0 }
 0x6b7   : > { %457 = vadd.xlane.f32.xlu1 %v456_v47 }
 0x6c8   : > { %605 = vrot.lane.b32.xlu1 %v2703_v63, %s2527_s29 }
 0x740   : > { %v458_v50 = vpop.xlane.xlu1 %457 }
 0x741   : > { %2429 = vrcp.f32 %v458_v50 }
 0x744   : > { %v606_v57 = vpop.permute.xlu1 %605 }
 0x745   : > { %v611_v61 = vsel %vm291_vm12, %v606_v57, 0 }
 0x74e   : > { %v2430_v51 = vpop.eup %2429 }
 0x74f   : > { %v460_v53 = vmul.f32 %v2430_v51, %v2428_v46  ;;  %v2812_v51 = vpack.c.bf16 %v2707_v1, %v2707_v1 }
 0x751   : > { %v461_v54 = vpack.c.bf16 %v460_v53, %v460_v53 }
 0x753   : > { %2195 = vmatmul.mubr.msk.bf16.vlgmr.msra.gmra.mxu0 %vm291_vm12, %v461_v54 }
 0x754   : > { %2205 = vmatpush3.bf16.msra.mxu0 %v2758_v55  ;;  %2206 = vmatprep.mubr.msk.bf16.mxu0 %vm2520_vm7, %v2519_v32 }
 0x755   : > { %2216 = vmatprep.subr.bf16.mxu0 %v2519_v32 }
 0x75b   : > { %2207 = vmatmul.mubr.msk.bf16.vlgmr.msra.gmra.mxu0 %vm291_vm12, %v399_v56 }
 0x75c   : > { %2218 = vmatprep.mubr.msk.bf16.mxu0 %vm2520_vm7, %v2519_v32 }
 0x813   : > { %v504_v58 = vpop.f32.mrf.mxu0 }
 0x814   : > { %v510_v59 = vpack.c.bf16 %v504_v58, %v504_v58 }
 0x815   : > { %v2196_v60 = vpop.f32.mrf.mxu0 }
 0x816   : > { %2201 = vmatmul.mubr.msk.bf16.vlgmr.msra.gmra.mxu1 %vm291_vm12, %v510_v59 }
 0x817   : > { %2211 = vmatpush3.bf16.xpose.msra.mxu1 %v611_v61  ;;  %v507_v62 = vpop.f32.mrf.mxu0  ;;  %2212 = vmatprep.mubr.msk.bf16.mxu1 %vm2520_vm7, %v2519_v32 }
 0x818   : > { %2222 = vmatprep.subr.bf16.mxu1 %v2519_v32 }
 0x819   : > { %v2197_v0 = vpop.f32.mrf.mxu0 }
 0x81b   : > { %v2773_v2 = vpop.f32.mrf.mxu0 }
 0x81d   : > { %v2208_v5 = vpop.f32.mrf.mxu0 }
 0x81e   : > { %2213 = vmatmul.mubr.msk.bf16.vlgmr.msra.gmra.mxu1 %vm291_vm12, %v604_v3 }
 0x81f   : > { %v600_v6 = vpop.f32.mrf.mxu0  ;;  %2224 = vmatprep.mubr.msk.bf16.mxu1 %vm2520_vm7, %v2519_v32  ;;  %2223 = vmatpush3.bf16.msra.mxu1 %v2800_v39 }
 0x820   : > { %2234 = vmatprep.subr.bf16.mxu1 %v2519_v32 }
 0x821   : > { %v2209_v7 = vpop.f32.mrf.mxu0 }
 0x8d6   : > { %v2778_v12 = vpop.f32.mrf.mxu1 }
 0x8d7   : > { %v598_v1 = vadd.f32 %v2773_v2, %v2778_v12 }
 0x8d8   : > { %v2202_v13 = vpop.f32.mrf.mxu1 }
 0x8da   : > { %v554_v15 = vpop.f32.mrf.mxu1 }
 0x8dc   : > { %v2203_v16 = vpop.f32.mrf.mxu1 }
 0x8de   : > { %v647_v17 = vpop.f32.mrf.mxu1 }
 0x8df   : > { %v653_v19 = vsel %vm291_vm12, %v647_v17, -inf }
 0x8e0   : > { %654 = vmax.xlane.f32.xlu1 %v653_v19  ;;  %v2214_v20 = vpop.f32.mrf.mxu1 }
 0x8e2   : > { %v650_v21 = vpop.f32.mrf.mxu1 }
 0x8e4   : > { %v2215_v22 = vpop.f32.mrf.mxu1 }
 0x8f1   : > { %763 = vrot.lane.b32.xlu1 %v2703_v63, %s2528_s28 }
 0x8f5   : > { %761 = vrot.lane.b32.xlu1 %v2703_v63, %s2529_s18 }
 0x969   : > { %v655_v23 = vpop.xlane.xlu1 %654 }
 0x96a   : > { %v656_v24 = vsub.f32 %v647_v17, %v655_v23  ;;  %v286_v17 = vld [vmem:[%s2748_s17 + $0xc] sm:$0xf]  ;;  %s2532_s17 = smov 32  }
 0x96b   : > { %v2845_v19 = vsel %vm355_vm13, %v286_v17, 0 }
 0x96c   : > { %v657_v25 = vmul.f32 1.442695, %v656_v24 }
 0x96d   : > { %v764_v34 = vpop.permute.xlu1 %763 }
 0x96e   : > { %2431 = vpow2.f32 %v657_v25  ;;  %v769_v36 = vsel %vm291_vm12, %v764_v34, 0 }
 0x971   : > { %v762_v37 = vpop.permute.xlu1 %761 }
 0x97b   : > { %v2432_v26 = vpop.eup %2431 }
 0x97c   : > { %v659_v27 = vsel %vm291_vm12, %v2432_v26, 0.0 }
 0x97d   : > { %660 = vadd.xlane.f32.xlu0 %v659_v27 }
 0x993   : > { %665 = vrot.lane.b32.xlu0 %v2703_v63, %s2530_s19 }
 0xa06   : > { %v661_v28 = vpop.xlane.xlu0 %660 }
 0xa07   : > { %2433 = vrcp.f32 %v661_v28 }
 0xa0a   : > { %v666_v29 = vpop.permute.xlu0 %665 }
 0xa0b   : > { %v671_v30 = vsel %vm355_vm13, %v666_v29, 0 }
 0xa0c   : > { %2217 = vmatpush3.bf16.msra.mxu0 %v671_v30 }
 0xa0d   : > { %2228 = vmatprep.subr.bf16.mxu0 %v2519_v32 }
 0xa14   : > { %v2434_v31 = vpop.eup %2433 }
 0xa15   : > { %v663_v33 = vmul.f32 %v2434_v31, %v2432_v26 }
 0xa17   : > { %v664_v35 = vpack.c.bf16 %v663_v33, %v663_v33 }
 0xa19   : > { %2219 = vmatmul.mubr.msk.bf16.vlgmr.msra.gmra.mxu0 %vm291_vm12, %v664_v35 }
 0xa1a   : > { %2229 = vmatpush3.bf16.xpose.msra.mxu0 %v769_v36  ;;  %2230 = vmatprep.mubr.msk.bf16.mxu0 %vm2520_vm7, %v2519_v32 }
 0xa1b   : > { %2240 = vmatprep.subr.bf16.mxu0 %v2519_v32 }
 0xa21   : > { %2231 = vmatmul.mubr.msk.bf16.vlgmr.msra.gmra.mxu0 %vm291_vm12, %v762_v37 }
 0xa22   : > { %2242 = vmatprep.mubr.msk.bf16.mxu0 %vm2520_vm7, %v2519_v32  ;;  %2241 = vmatpush3.bf16.msra.mxu0 %v2845_v19 }
 0xa23   : > { %2252 = vmatprep.subr.bf16.mxu0 %v2519_v32 }
 0xad9   : > { %v707_v40 = vpop.f32.mrf.mxu0 }
 0xada   : > { %v713_v41 = vpack.c.bf16 %v707_v40, %v707_v40 }
 0xadb   : > { %v2220_v42 = vpop.f32.mrf.mxu0 }
 0xadc   : > { %2225 = vmatmul.mubr.msk.bf16.vlgmr.msra.gmra.mxu1 %vm291_vm12, %v713_v41 }
 0xadd   : > { %v710_v43 = vpop.f32.mrf.mxu0  ;;  %2236 = vmatprep.mubr.msk.bf16.mxu1 %vm2520_vm7, %v2519_v32 }
 0xadf   : > { %v2221_v44 = vpop.f32.mrf.mxu0 }
 0xae1   : > { %v805_v45 = vpop.f32.mrf.mxu0 }
 0xae2   : > { %v811_v46 = vsel %vm291_vm12, %v805_v45, -inf }
 0xae3   : > { %812 = vmax.xlane.f32.xlu0 %v811_v46  ;;  %v2232_v47 = vpop.f32.mrf.mxu0 }
 0xae5   : > { %v808_v48 = vpop.f32.mrf.mxu0 }
 0xae7   : > { %v2233_v50 = vpop.f32.mrf.mxu0 }
 0xaf9   : > { %823 = vrot.lane.b32.xlu0 %v2703_v63, %s2531_s20 }
 0xafd   : > { %1032 = vrot.lane.b32.xlu0 %v2812_v51, %s2522_s22  ;;  %s2946_s22 = scalar_lea.vmem %s3063_s9, %s2098_s21 }
 0xb6c   : > { %v813_v52 = vpop.xlane.xlu0 %812 }
 0xb6d   : > { %v814_v53 = vsub.f32 %v805_v45, %v813_v52 }
 0xb6f   : > { %v815_v54 = vmul.f32 1.442695, %v814_v53 }
 0xb70   : > { %v824_v56 = vpop.permute.xlu0 %823 }
 0xb71   : > { %2435 = vpow2.f32 %v815_v54  ;;  %v829_v57 = vsel %vm355_vm13, %v824_v56, 0 }
 0xb72   : > { %2235 = vmatpush3.bf16.msra.mxu1 %v829_v57 }
 0xb73   : > { %2246 = vmatprep.subr.bf16.mxu1 %v2519_v32 }
 0xb74   : > { %v1033_v2 = vpop.permute.xlu0 %1032 }
 0xb75   : > { %v1038_v12 = vsel %vm291_vm12, %v1033_v2, 0 }
 0xb7e   : > { %v2436_v58 = vpop.eup %2435 }
 0xb7f   : > { %v817_v63 = vsel %vm291_vm12, %v2436_v58, 0.0 }
 0xb80   : > { %818 = vadd.xlane.f32.xlu1 %v817_v63 }
 0xb91   : > { %921 = vrot.lane.b32.xlu1 %v2812_v51, %s2521_s1 }
 0xb95   : > { %1030 = vrot.lane.b32.xlu1 %v2812_v51, %s2524_s2 }
 0xb9c   : > { %v754_v59 = vpop.f32.mrf.mxu1 }
 0xb9d   : > { %v2825_v60 = vadd.f32 %v754_v59, %v598_v1 }
 0xb9e   : > { %v2226_v61 = vpop.f32.mrf.mxu1 }
 0xba0   : > { %v757_v62 = vpop.f32.mrf.mxu1 }
 0xba2   : > { %v2227_v0 = vpop.f32.mrf.mxu1 }
 0xc09   : > { %v819_v3 = vpop.xlane.xlu1 %818 }
 0xc0a   : > { %2437 = vrcp.f32 %v819_v3 }
 0xc0d   : > { %v922_v7 = vpop.permute.xlu1 %921 }
 0xc0e   : > { %v927_v15 = vsel %vm291_vm12, %v922_v7, 0 }
 0xc11   : > { %v1031_v16 = vpop.permute.xlu1 %1030 }
 0xc17   : > { %v2438_v5 = vpop.eup %2437 }
 0xc18   : > { %v821_v6 = vmul.f32 %v2438_v5, %v2436_v58 }
 0xc1a   : > { %v822_v13 = vpack.c.bf16 %v821_v6, %v821_v6 }
 0xc1c   : > { %2237 = vmatmul.mubr.msk.bf16.vlgmr.msra.gmra.mxu1 %vm291_vm12, %v822_v13 }
 0xc1d   : > { %2247 = vmatpush3.bf16.xpose.msra.mxu1 %v927_v15  ;;  %2248 = vmatprep.mubr.msk.bf16.mxu1 %vm2520_vm7, %v2519_v32 }
 0xc1e   : > { %2258 = vmatprep.subr.bf16.mxu1 %v2519_v32 }
 0xc24   : > { %2249 = vmatmul.mubr.msk.bf16.vlgmr.msra.gmra.mxu1 %vm291_vm12, %v2812_v51 }
 0xc25   : > { %2259 = vmatpush3.bf16.xpose.msra.mxu1 %v1038_v12  ;;  %2260 = vmatprep.mubr.msk.bf16.mxu1 %vm2520_vm7, %v2519_v32 }
 0xc26   : > { %2270 = vmatprep.subr.bf16.mxu1 %v2519_v32 }
 0xc2c   : > { %2261 = vmatmul.mubr.msk.bf16.vlgmr.msra.gmra.mxu1 %vm291_vm12, %v1031_v16 }
 0xc2d   : > { %2271 = vmatpush3.bf16.msra.mxu1 %v2752_v49  ;;  %2272 = vmatprep.mubr.msk.bf16.mxu1 %vm2520_vm7, %v2519_v32 }
 0xc2e   : > { %2282 = vmatprep.subr.bf16.mxu1 %v2519_v32 }
 0xcdc   : > { %v865_v20 = vpop.f32.mrf.mxu1 }
 0xcdd   : > { %v871_v21 = vpack.c.bf16 %v865_v20, %v865_v20 }
 0xcde   : > { %v2238_v22 = vpop.f32.mrf.mxu1 }
 0xcdf   : > { %2243 = vmatmul.mubr.msk.bf16.vlgmr.msra.gmra.mxu0 %vm291_vm12, %v871_v21 }
 0xce0   : > { %v868_v23 = vpop.f32.mrf.mxu1  ;;  %2254 = vmatprep.mubr.msk.bf16.mxu0 %vm2520_vm7, %v2519_v32 }
 0xce2   : > { %v2239_v49 = vpop.f32.mrf.mxu1 }
 0xce4   : > { %v963_v24 = vpop.f32.mrf.mxu1 }
 0xce5   : > { %v969_v25 = vsel %vm291_vm12, %v963_v24, -inf }
 0xce6   : > { %970 = vmax.xlane.f32.xlu0 %v969_v25  ;;  %v2250_v26 = vpop.f32.mrf.mxu1 }
 0xce8   : > { %v966_v27 = vpop.f32.mrf.mxu1 }
 0xcea   : > { %v2251_v28 = vpop.f32.mrf.mxu1 }
 0xcec   : > { %v1074_v29 = vpop.f32.mrf.mxu1 }
 0xced   : > { %v1080_v30 = vsel %vm291_vm12, %v1074_v29, -inf }
 0xcee   : > { %1081 = vmax.xlane.f32.xlu1 %v1080_v30  ;;  %v2262_v31 = vpop.f32.mrf.mxu1 }
 0xcf0   : > { %v1077_v33 = vpop.f32.mrf.mxu1 }
 0xcf2   : > { %v2263_v34 = vpop.f32.mrf.mxu1 }
 0xcff   : > { %1092 = vrot.lane.b32.xlu1 %v2812_v51, %s2525_s25 }
 0xd03   : > { %1229 = vrot.lane.b32.xlu1 %v2812_v51, %s2527_s29 }
 0xd07   : > { %1227 = vrot.lane.b32.xlu1 %v2812_v51, %s2526_s26  ;;  %s1539_s26 = scalar_lea.vmem %s3061_s7, %s2515_s24 }
 0xd6f   : > { %v971_v35 = vpop.xlane.xlu0 %970 }
 0xd70   : > { %v972_v36 = vsub.f32 %v963_v24, %v971_v35 }
 0xd72   : > { %v973_v37 = vmul.f32 1.442695, %v972_v36 }
 0xd74   : > { %2439 = vpow2.f32 %v973_v37 }
 0xd77   : > { %v1082_v38 = vpop.xlane.xlu1 %1081 }
 0xd78   : > { %v1083_v40 = vsub.f32 %v1074_v29, %v1082_v38 }
 0xd7a   : > { %v1084_v41 = vmul.f32 1.442695, %v1083_v40 }
 0xd7b   : > { %v1093_v1 = vpop.permute.xlu1 %1092 }
 0xd7c   : > { %2441 = vpow2.f32 %v1084_v41 }
 0xd7f   : > { %v1230_v15 = vpop.permute.xlu1 %1229 }
 0xd81   : > { %v2440_v42 = vpop.eup %2439 }
 0xd82   : > { %v975_v43 = vsel %vm291_vm12, %v2440_v42, 0.0 }
 0xd83   : > { %976 = vadd.xlane.f32.xlu0 %v975_v43  ;;  %v1228_v21 = vpop.permute.xlu1 %1227 }
 0xd89   : > { %v2442_v44 = vpop.eup %2441 }
 0xd8a   : > { %v1086_v45 = vsel %vm291_vm12, %v2442_v44, 0.0 }
 0xd8b   : > { %1087 = vadd.xlane.f32.xlu0 %v1086_v45 }
 0xd9f   : > { %v912_v46 = vpop.f32.mrf.mxu0 }
 0xda0   : > { %v2863_v47 = vadd.f32 %v912_v46, %v2825_v60  ;;  %v1098_v60 = vsel %vm355_vm13, %v1093_v1, 0 }
 0xda1   : > { %v2244_v48 = vpop.f32.mrf.mxu0  ;;  %981 = vrot.lane.b32.xlu0 %v2812_v51, %s2523_s23 }
 0xda2   : > { %v2918_v1 = vadd.f32 %v2511_v14, %v2863_v47 }
 0xda3   : > { %v915_v50 = vpop.f32.mrf.mxu0 }
 0xda5   : > { %v2245_v52 = vpop.f32.mrf.mxu0 }
 0xe0c   : > { %v977_v53 = vpop.xlane.xlu0 %976 }
 0xe0d   : > { %2443 = vrcp.f32 %v977_v53 }
 0xe14   : > { %v1088_v54 = vpop.xlane.xlu0 %1087 }
 0xe15   : > { %2445 = vrcp.f32 %v1088_v54 }
 0xe18   : > { %v982_v56 = vpop.permute.xlu0 %981 }
 0xe19   : > { %v987_v57 = vsel %vm355_vm13, %v982_v56, 0 }
 0xe1a   : > { %v2444_v58 = vpop.eup %2443  ;;  %2253 = vmatpush3.bf16.msra.mxu0 %v987_v57 }
 0xe1b   : > { %2264 = vmatprep.subr.bf16.mxu0 %v2519_v32  ;;  %v979_v63 = vmul.f32 %v2444_v58, %v2440_v42 }
 0xe1d   : > { %v980_v59 = vpack.c.bf16 %v979_v63, %v979_v63 }
 0xe1f   : > { %2255 = vmatmul.mubr.msk.bf16.vlgmr.msra.gmra.mxu0 %vm291_vm12, %v980_v59 }
 0xe20   : > { %2265 = vmatpush3.bf16.msra.mxu0 %v1098_v60  ;;  %2266 = vmatprep.mubr.msk.bf16.mxu0 %vm2520_vm7, %v2519_v32 }
 0xe21   : > { %2276 = vmatprep.subr.bf16.mxu0 %v2519_v32 }
 0xe22   : > { %v2446_v61 = vpop.eup %2445 }
 0xe23   : > { %v1090_v62 = vmul.f32 %v2446_v61, %v2442_v44  ;;  %v1543_v61 = vsel %vm157_vm6, %v2918_v1, 0.0 }
 0xe25   : > { %v1091_v0 = vpack.c.bf16 %v1090_v62, %v1090_v62 }
 0xe27   : > { %2267 = vmatmul.mubr.msk.bf16.vlgmr.msra.gmra.mxu0 %vm291_vm12, %v1091_v0 }
 0xe28   : > { %2277 = vmatpush3.bf16.msra.mxu0 %v2758_v55  ;;  %2278 = vmatprep.mubr.msk.bf16.mxu0 %vm2520_vm7, %v2519_v32  ;;  %v1235_v55 = vsel %vm291_vm12, %v1230_v15, 0 }
 0xe29   : > { %2288 = vmatprep.subr.bf16.mxu0 %v2519_v32 }
 0xedf   : > { %v1023_v3 = vpop.f32.mrf.mxu0 }
 0xee0   : > { %v1029_v5 = vpack.c.bf16 %v1023_v3, %v1023_v3 }
 0xee1   : > { %v2256_v6 = vpop.f32.mrf.mxu0 }
 0xee2   : > { %2279 = vmatmul.mubr.msk.bf16.vlgmr.msra.gmra.mxu0 %vm291_vm12, %v1029_v5 }
 0xee3   : > { %v1026_v7 = vpop.f32.mrf.mxu0  ;;  %2290 = vmatprep.mubr.msk.bf16.mxu0 %vm2520_vm7, %v2519_v32 }
 0xee5   : > { %v2257_v13 = vpop.f32.mrf.mxu0 }
 0xee7   : > { %v1134_v2 = vpop.f32.mrf.mxu0 }
 0xee8   : > { %v1140_v12 = vpack.c.bf16 %v1134_v2, %v1134_v2 }
 0xee9   : > { %v2268_v16 = vpop.f32.mrf.mxu0 }
 0xeea   : > { %2273 = vmatmul.mubr.msk.bf16.vlgmr.msra.gmra.mxu1 %vm291_vm12, %v1140_v12 }
 0xeeb   : > { %2283 = vmatpush3.bf16.xpose.msra.mxu1 %v1235_v55  ;;  %v1137_v17 = vpop.f32.mrf.mxu0  ;;  %2284 = vmatprep.mubr.msk.bf16.mxu1 %vm2520_vm7, %v2519_v32 }
 0xeec   : > { %2294 = vmatprep.subr.bf16.mxu1 %v2519_v32 }
 0xeed   : > { %v2269_v20 = vpop.f32.mrf.mxu0 }
 0xef2   : > { %2285 = vmatmul.mubr.msk.bf16.vlgmr.msra.gmra.mxu1 %vm291_vm12, %v1228_v21 }
 0xef3   : > { %2295 = vmatpush3.bf16.msra.mxu1 %v2800_v39  ;;  %2296 = vmatprep.mubr.msk.bf16.mxu1 %vm2520_vm7, %v2519_v32 }
 0xef4   : > { %2306 = vmatprep.subr.bf16.mxu1 %v2519_v32 }
 0xfa2   : > { %v1221_v22 = vpop.f32.mrf.mxu0 }
 0xfa4   : > { %v2280_v23 = vpop.f32.mrf.mxu0 }
 0xfa6   : > { %v1224_v49 = vpop.f32.mrf.mxu0 }
 0xfa8   : > { %v2281_v24 = vpop.f32.mrf.mxu0 }
 0xfaa   : > { %v1178_v25 = vpop.f32.mrf.mxu1 }
 0xfab   : > { %v2892_v26 = vadd.f32 %v1221_v22, %v1178_v25 }
 0xfac   : > { %v2274_v27 = vpop.f32.mrf.mxu1 }
 0xfae   : > { %v1181_v28 = vpop.f32.mrf.mxu1 }
 0xfb0   : > { %v2275_v29 = vpop.f32.mrf.mxu1 }
 0xfb2   : > { %v1271_v30 = vpop.f32.mrf.mxu1 }
 0xfb3   : > { %v1277_v31 = vsel %vm291_vm12, %v1271_v30, -inf }
 0xfb4   : > { %1278 = vmax.xlane.f32.xlu0 %v1277_v31  ;;  %v2286_v39 = vpop.f32.mrf.mxu1 }
 0xfb6   : > { %v1274_v33 = vpop.f32.mrf.mxu1 }
 0xfb8   : > { %v2287_v34 = vpop.f32.mrf.mxu1 }
 0xfca   : > { %1289 = vrot.lane.b32.xlu0 %v2812_v51, %s2530_s19  ;;  %s1616_s19 = scalar_lea.vmem %s3064_s10, %s2515_s24 }
 0xfce   : > { %1382 = vrot.lane.b32.xlu0 %v2812_v51, %s2529_s18 }
0x103d   : > { %v1279_v35 = vpop.xlane.xlu0 %1278 }
0x103e   : > { %v1280_v36 = vsub.f32 %v1271_v30, %v1279_v35 }
0x1040   : > { %v1281_v37 = vmul.f32 1.442695, %v1280_v36 }
0x1041   : > { %v1290_v38 = vpop.permute.xlu0 %1289 }
0x1042   : > { %2447 = vpow2.f32 %v1281_v37  ;;  %v1295_v40 = vsel %vm355_vm13, %v1290_v38, 0 }
0x1043   : > { %2289 = vmatpush3.bf16.msra.mxu0 %v1295_v40 }
0x1044   : > { %2300 = vmatprep.subr.bf16.mxu0 %v2519_v32 }
0x1045   : > { %v1383_v52 = vpop.permute.xlu0 %1382 }
0x104f   : > { %v2448_v41 = vpop.eup %2447 }
0x1050   : > { %v1283_v42 = vsel %vm291_vm12, %v2448_v41, 0.0 }
0x1051   : > { %1284 = vadd.xlane.f32.xlu1 %v1283_v42 }
0x1062   : > { %1384 = vrot.lane.b32.xlu1 %v2812_v51, %s2528_s28 }
0x10da   : > { %v1285_v43 = vpop.xlane.xlu1 %1284 }
0x10db   : > { %2449 = vrcp.f32 %v1285_v43  ;;  %v2398_v43 = vld [vmem:[%s2946_s22 + $0x20] sm:$0xff]  }
0x10de   : > { %v1385_v46 = vpop.permute.xlu1 %1384 }
0x10df   : > { %v1390_v50 = vsel %vm291_vm12, %v1385_v46, 0 }
0x10e8   : > { %v2450_v44 = vpop.eup %2449 }
0x10e9   : > { %v1287_v45 = vmul.f32 %v2450_v44, %v2448_v41  ;;  %v2399_v44 = vld [vmem:[%s2946_s22 + $0x18] sm:$0xff]  }
0x10eb   : > { %v1288_v48 = vpack.c.bf16 %v1287_v45, %v1287_v45  ;;  %v2400_v45 = vld [vmem:[%s2946_s22 + $0x10] sm:$0xff]  }
0x10ed   : > { %2291 = vmatmul.mubr.msk.bf16.vlgmr.msra.gmra.mxu0 %vm291_vm12, %v1288_v48 }
0x10ee   : > { %2301 = vmatpush3.bf16.xpose.msra.mxu0 %v1390_v50  ;;  %2302 = vmatprep.mubr.msk.bf16.mxu0 %vm2520_vm7, %v2519_v32 }
0x10ef   : > { %2312 = vmatprep.subr.bf16.mxu0 %v2519_v32 }
0x10f5   : > { %2303 = vmatmul.mubr.msk.bf16.vlgmr.msra.gmra.mxu0 %vm291_vm12, %v1383_v52 }
0x10f6   : > { %2313 = vmatpush3.bf16.msra.mxu0 %v2845_v19  ;;  %2314 = vmatprep.mubr.msk.bf16.mxu0 %vm2520_vm7, %v2519_v32 }
0x11ad   : > { %v1331_v53 = vpop.f32.mrf.mxu0 }
0x11ae   : > { %v1337_v54 = vpack.c.bf16 %v1331_v53, %v1331_v53 }
0x11af   : > { %v2292_v56 = vpop.f32.mrf.mxu0 }
0x11b0   : > { %2297 = vmatmul.mubr.msk.bf16.vlgmr.msra.gmra.mxu1 %vm291_vm12, %v1337_v54 }
0x11b1   : > { %v1334_v57 = vpop.f32.mrf.mxu0  ;;  %2308 = vmatprep.mubr.msk.bf16.mxu1 %vm2520_vm7, %v2519_v32 }
0x11b3   : > { %v2293_v58 = vpop.f32.mrf.mxu0 }
0x11b5   : > { %v1426_v63 = vpop.f32.mrf.mxu0 }
0x11b6   : > { %v1432_v19 = vsel %vm291_vm12, %v1426_v63, -inf }
0x11b7   : > { %1433 = vmax.xlane.f32.xlu1 %v1432_v19  ;;  %v2304_v59 = vpop.f32.mrf.mxu0 }
0x11b9   : > { %v1429_v60 = vpop.f32.mrf.mxu0 }
0x11bb   : > { %1544 = vadd.xlane.f32.xlu1 %v1543_v61  ;;  %v2305_v62 = vpop.f32.mrf.mxu0 }
0x1240   : > { %v1434_v0 = vpop.xlane.xlu1 %1433 }
0x1241   : > { %v1435_v3 = vsub.f32 %v1426_v63, %v1434_v0 }
0x1243   : > { %v1436_v5 = vmul.f32 1.442695, %v1435_v3  ;;  %v2068_v3 = vld [vmem:[%s1539_s26] ss:$0 sm:$0xff] }
0x1244   : > { %v1545_v25 = vpop.xlane.xlu1 %1544 }
0x1245   : > { %2451 = vpow2.f32 %v1436_v5 }
0x1252   : > { %v2452_v6 = vpop.eup %2451 }
0x1253   : > { %v1438_v7 = vsel %vm291_vm12, %v2452_v6, 0.0 }
0x1254   : > { %1439 = vadd.xlane.f32.xlu0 %v1438_v7 }
0x126a   : > { %1444 = vrot.lane.b32.xlu0 %v2812_v51, %s2531_s20  ;;  %s1778_s20 = scalar_lea.vmem %s3066_s12, %s2515_s24  ;;  %s150_s24 = sadd.s32 1, %s2515_s24  }
0x126b   : > { %p147_p0 = scmp.ge.s32.totalorder %s150_s24, 2  }
0x126c   :  { %s2534_s7 = smov (%p147_p0), [#allocation2]  }
0x126d   :  { %s1997_s8 = sshll.u32 (%p147_p0), %s2534_s7, 4  ;;  %s1998_s8 = int_to_ptr.vmem [resolvable:$true] %s1997_s8 }
0x126e   :  { %s2471_s9 = scalar_lea.vmem (%p147_p0), %s1998_s8, 256  ;;  %p2476_p2 = scmp.lt.s32.totalorder (%p147_p0), %s1998_s8, %s1998_s8 }
0x126f   :  { %p2472_p1 = scmp.ne.s32.totalorder (%p147_p0), %s1998_s8, %s2471_s9  ;;  %p2477_p3 = scmp.lt.s32.totalorder (%p147_p0), %s2471_s9, %s2471_s9 }
0x1270   : > { %v1375_v14 = vpop.f32.mrf.mxu1 }
0x1271   : > { %v1381_v47 = vadd.f32 %v1375_v14, %v2892_v26  ;;  %v1549_v26 = vmul.f32 0.03125, %v1545_v25  ;;  %p2478_p4 = por (%p147_p0), %p2477_p3, %p2476_p2 }
0x1272   : > { %v2298_v13 = vpop.f32.mrf.mxu1 }
0x1273   : > { %v1551_v28 = vsub.f32 %v2918_v1, %v1549_v26  ;;  %v2402_v13 = vld [vmem:[%s2946_s22] sm:$0xff]   ;;  %p2479_p5 = pnand (%p147_p0), %p2478_p4, %p2472_p1 }
0x1274   : > { %v1378_v15 = vpop.f32.mrf.mxu1 }
0x1275   : > { %v1553_v34 = vmul.f32 %v1551_v28, %v1551_v28  ;;  %v1589_v7 = vmul.f32 %v2068_v3, %v1551_v28 }
0x1276   : > { %v2299_v2 = vpop.f32.mrf.mxu1 }
0x1277   : > { %v1555_v36 = vsel %vm157_vm6, %v1553_v34, 0.0 }
0x12dd   : > { %v1440_v12 = vpop.xlane.xlu0 %1439 }
0x12de   : > { %2453 = vrcp.f32 %v1440_v12 }
0x12e1   : > { %v1445_v16 = vpop.permute.xlu0 %1444 }
0x12e2   : > { %v1450_v55 = vsel %vm355_vm13, %v1445_v16, 0 }
0x12e3   : > { %2307 = vmatpush3.bf16.msra.mxu1 %v1450_v55 }
0x12e4   : > { %2318 = vmatprep.subr.bf16.mxu1 %v2519_v32 }
0x12eb   : > { %v2454_v17 = vpop.eup %2453 }
0x12ec   : > { %v1442_v20 = vmul.f32 %v2454_v17, %v2452_v6  ;;  %v2401_v6 = vld [vmem:[%s2946_s22 + $0x8] sm:$0xff]  }
0x12ee   : > { %v1443_v21 = vpack.c.bf16 %v1442_v20, %v1442_v20 }
0x12f0   : > { %2309 = vmatmul.mubr.msk.bf16.vlgmr.msra.gmra.mxu1 %vm291_vm12, %v1443_v21 }
0x12f1   : > { %2330 = vmatprep.mubr.msk.bf16.mxu1 %vm2520_vm7, %v2519_v32  ;;  %vm1631_vm7 = vcmp.lt.s32.totalorder %v2623_v4, 7 }
0x13b0   : > { %v1486_v51 = vpop.f32.mrf.mxu1 }
0x13b1   : > { %v1492_v22 = vpack.c.bf16 %v1486_v51, %v1486_v51 }
0x13b2   : > { %v2310_v23 = vpop.f32.mrf.mxu1 }
0x13b3   : > { %2315 = vmatmul.mubr.msk.bf16.vlgmr.msra.gmra.mxu0 %vm291_vm12, %v1492_v22 }
0x13b4   : > { %v1489_v49 = vpop.f32.mrf.mxu1 }
0x13b6   : > { %v2311_v24 = vpop.f32.mrf.mxu1 }
0x1473   : > { %v1530_v27 = vpop.f32.mrf.mxu0 }
0x1474   : > { %v1536_v29 = vadd.f32 %v1530_v27, %v1381_v47  ;;  %v2069_v47 = vld [vmem:[%s1541_s16] ss:$0 sm:$0xff] }
0x1475   : > { %v2316_v30 = vpop.f32.mrf.mxu0 }
0x1476   : > { %v2935_v31 = vadd.f32 %v2507_v18, %v1536_v29  ;;  %v2397_v18 = vld [vmem:[%s2946_s22 + $0x28] sm:$0xff]  }
0x1477   : > { %v1533_v39 = vpop.f32.mrf.mxu0  ;;  %2319 = vmatpush3.bf16.msra.mxu1 %v2397_v18  ;;  %v2403_v18 = vld [vmem:[%s2672_s27 + $0x38] sm:$0xff]  }
0x1478   : > { %v1546_v33 = vsel %vm157_vm6, %v2935_v31, 0.0  ;;  %2320 = vmatprep.subr.bf16.mxu1 %v2519_v32 }
0x1479   : > { %1547 = vadd.xlane.f32.xlu1 %v1546_v33  ;;  %v2317_v35 = vpop.f32.mrf.mxu0 }
0x147b   : > { %2321 = vmatpush3.bf16.msra.mxu1 %v2398_v43  ;;  %v2533_v43 = vmov 0  }
0x147c   : > { %2322 = vmatprep.subr.bf16.mxu1 %v2519_v32  ;;  %1885 = vmatprep.subr.bf16.mxu0 %v2533_v43 }
0x147d   : > { %1556 = vadd.xlane.f32.xlu1 %v1555_v36  ;;  %1886 = vmatpush1.bf16.msra.mxu0 %v2403_v18 }
0x147e   : > { %1887 = vmatprep.subr.bf16.mxu0 %v2533_v43 }
0x147f   : > { %2323 = vmatpush3.bf16.msra.mxu1 %v2399_v44  ;;  %v2404_v44 = vld [vmem:[%s2672_s27 + $0x30] sm:$0xff]  }
0x1480   : > { %2324 = vmatprep.subr.bf16.mxu1 %v2519_v32 }
0x1481   : > { %1888 = vmatpush1.bf16.msra.mxu0 %v2404_v44 }
0x1482   : > { %1889 = vmatprep.subr.bf16.mxu0 %v2533_v43 }
0x1483   : > { %2325 = vmatpush3.bf16.msra.mxu1 %v2400_v45  ;;  %v2405_v45 = vld [vmem:[%s2672_s27 + $0x28] sm:$0xff]  }
0x1484   : > { %2326 = vmatprep.subr.bf16.mxu1 %v2519_v32 }
0x1485   : > { %1890 = vmatpush1.bf16.msra.mxu0 %v2405_v45 }
0x1486   : > { %1891 = vmatprep.subr.bf16.mxu0 %v2533_v43 }
0x1487   : > { %2327 = vmatpush3.bf16.msra.mxu1 %v2401_v6 }
0x1488   : > { %2328 = vmatprep.subr.bf16.mxu1 %v2519_v32 }
0x148b   : > { %2329 = vmatpush3.bf16.msra.mxu1 %v2402_v13 }
0x1502   : > { %v1548_v37 = vpop.xlane.xlu1 %1547 }
0x1503   : > { %v1550_v38 = vmul.f32 0.03125, %v1548_v37 }
0x1505   : > { %v1552_v40 = vsub.f32 %v2935_v31, %v1550_v38 }
0x1506   : > { %v1557_v46 = vpop.xlane.xlu1 %1556 }
0x1507   : > { %v1554_v41 = vmul.f32 %v1552_v40, %v1552_v40  ;;  %v1561_v48 = vmul.f32 0.032258064, %v1557_v46  ;;  %v1590_v15 = vmul.f32 %v2068_v3, %v1552_v40  ;;  %v2406_v46 = vld [vmem:[%s2672_s27 + $0x20] sm:$0xff]  }
0x1508   : > { %1892 = vmatpush1.bf16.msra.mxu0 %v2406_v46 }
0x1509   : > { %v1558_v42 = vsel %vm157_vm6, %v1554_v41, 0.0  ;;  %2455 = vrsqrt.f32 %v1561_v48  ;;  %vm1565_vm14 = vcmp.eq.f32.partialorder %v1561_v48, inf  ;;  %v1568_v57 = vand.u32 2147483648, %v1561_v48  ;;  %1893 = vmatprep.subr.bf16.mxu0 %v2533_v43 }
0x150a   : > { %1559 = vadd.xlane.f32.xlu1 %v1558_v42  ;;  %vm1567_vm15 = vcmp.eq.f32.partialorder %v1561_v48, 0.0 }
0x1516   : > { %v2456_v50 = vpop.eup %2455 }
0x1517   : > { %v1564_v54 = vmul.f32 %v2456_v50, %v1561_v48  ;;  %v2408_v50 = vld [vmem:[%s2672_s27 + $0x10] sm:$0xff]  }
0x1519   : > { %v1566_v56 = vsel %vm1565_vm14, %v1561_v48, %v1564_v54  ;;  %v2407_v48 = vld [vmem:[%s2672_s27 + $0x18] sm:$0xff]  }
0x151a   : > { %v1569_v58 = vsel %vm1567_vm15, %v1568_v57, %v1566_v56  ;;  %1894 = vmatpush1.bf16.msra.mxu0 %v2407_v48  ;;  %v2411_v54 = vld [vmem:[%s2672_s27 + $0x58] sm:$0xff]   ;;  %v2412_v56 = vld [vmem:[%s2672_s27 + $0x50] sm:$0xff]   ;;  %v2413_v57 = vld [vmem:[%s2672_s27 + $0x48] sm:$0xff]  }
0x151b   : > { %v1577_v63 = vadd.f32 1e-06, %v1569_v58  ;;  %1895 = vmatprep.subr.bf16.mxu0 %v2533_v43  ;;  %v2071_v58 = vld [vmem:[%s1616_s19] ss:$0 sm:$0xff] }
0x151e   : > { %1896 = vmatpush1.bf16.msra.mxu0 %v2408_v50 }
0x151f   : > { %1897 = vmatprep.subr.bf16.mxu0 %v2533_v43 }
0x1593   : > { %v1560_v52 = vpop.xlane.xlu1 %1559 }
0x1594   : > { %v1562_v53 = vmul.f32 0.032258064, %v1560_v52  ;;  %v2409_v52 = vld [vmem:[%s2672_s27 + $0x8] sm:$0xff]  }
0x1595   : > { %1898 = vmatpush1.bf16.msra.mxu0 %v2409_v52 }
0x1596   : > { %2457 = vrsqrt.f32 %v1562_v53  ;;  %vm1572_vm0 = vcmp.eq.f32.partialorder %v1562_v53, inf  ;;  %v1575_v60 = vand.u32 2147483648, %v1562_v53  ;;  %vm1574_vm1 = vcmp.eq.f32.partialorder %v1562_v53, 0.0  ;;  %1899 = vmatprep.subr.bf16.mxu0 %v2533_v43 }
0x1597   : > { %2459 = vrcp.f32 %v1577_v63  ;;  %v2414_v63 = vld [vmem:[%s2672_s27 + $0x40] sm:$0xff]  }
0x15a3   : > { %v2458_v19 = vpop.eup %2457 }
0x15a4   : > { %v1571_v59 = vmul.f32 %v2458_v19, %v1562_v53  ;;  %v2460_v5 = vpop.eup %2459 }
0x15a5   : > { %v1591_v14 = vmul.f32 %v2460_v5, %v1589_v7 }
0x15a6   : > { %v1573_v61 = vsel %vm1572_vm0, %v1562_v53, %v1571_v59  ;;  %v2410_v53 = vld [vmem:[%s2672_s27] sm:$0xff]  }
0x15a7   : > { %v1576_v62 = vsel %vm1574_vm1, %v1575_v60, %v1573_v61  ;;  %v1599_v16 = vadd.f32 %v2069_v47, %v1591_v14  ;;  %1900 = vmatpush1.bf16.msra.mxu0 %v2410_v53 }
0x15a8   : > { %v1578_v0 = vadd.f32 1e-06, %v1576_v62  ;;  %1909 = vmatprep.subr.bf16.mxu0 %v2533_v43 }
0x15a9   : > { %v1629_v20 = vrot.slane %v1599_v16, 1  ;;  %v1618_v25 = vrot.slane %v1599_v16, 7 }
0x15aa   : > { %2461 = vrcp.f32 %v1578_v0 }
0x15ab   : > { %1910 = vmatpush2.bf16.msra.mxu0 %v2411_v54 }
0x15ac   : > { %1911 = vmatprep.subr.bf16.mxu0 %v2533_v43 }
0x15af   : > { %1912 = vmatpush2.bf16.msra.mxu0 %v2412_v56 }
0x15b0   : > { %1913 = vmatprep.subr.bf16.mxu0 %v2533_v43 }
0x15b3   : > { %1914 = vmatpush2.bf16.msra.mxu0 %v2413_v57 }
0x15b4   : > { %1915 = vmatprep.subr.bf16.mxu0 %v2533_v43 }
0x15b7   : > { %v2462_v2 = vpop.eup %2461  ;;  %1916 = vmatpush2.bf16.msra.mxu0 %v2414_v63 }
0x15b8   : > { %v1592_v12 = vmul.f32 %v2462_v2, %v1590_v15 }
0x15ba   : > { %v1600_v55 = vadd.f32 %v2069_v47, %v1592_v12 }
0x15bc   : > { %v2380_v17 = vpack.i.bf16 %v1600_v55, %v1599_v16  ;;  %v1630_v21 = vrot.slane %v1600_v55, 1  ;;  %v1619_v24 = vrot.slane %v1600_v55, 7 }
0x15be   : > { %2381 = vrot.lane.b32.xlu1 %v2380_v17, %s2532_s17  ;;  %v1632_v51 = vsel %vm1631_vm7, %v1629_v20, %v1630_v21  ;;  %v1633_v32 = vsel %vm1631_vm7, %v1630_v21, %v1629_v20  ;;  %v1621_v29 = vsel %vm1620_vm8, %v1618_v25, %v1619_v24  ;;  %v1622_v30 = vsel %vm1620_vm8, %v1619_v24, %v1618_v25 }
0x15bf   : > { %v1638_v22 = vsel %vm2635_vm4, 0.0, %v1632_v51  ;;  %v1639_v23 = vsel %vm2639_vm5, 0.0, %v1633_v32  ;;  %v1627_v33 = vsel %vm2627_vm2, 0.0, %v1622_v30  ;;  %v1628_v34 = vsel %vm2631_vm3, 0.0, %v1621_v29 }
0x15c0   : > { %v2385_v49 = vpack.i.bf16 %v1639_v23, %v1638_v22 }
0x15c2   : > { %2386 = vrot.lane.b32.xlu0 %v2385_v49, %s2523_s23 }
0x1630   : > { %v2382_v26 = vpop.permute.xlu1 %2381 }
0x1631   : > { %v2384_v27 = vunpack.i.h.bf16 %v2382_v26  ;;  %v2383_v28 = vunpack.i.l.bf16 %v2382_v26  ;;  %v2080_v26 = vld [vmem:[%s1778_s20] ss:$0 sm:$0xff] }
0x1633   : > { %v1656_v37 = vsel %vm157_vm6, %v1627_v33, %v2383_v28  ;;  %v1657_v38 = vsel %vm157_vm6, %v1628_v34, %v2384_v27 }
0x1634   : > { %v2387_v39 = vpop.permute.xlu0 %2386 }
0x1635   : > { %v2389_v35 = vunpack.i.h.bf16 %v2387_v39  ;;  %v2388_v36 = vunpack.i.l.bf16 %v2387_v39 }
0x1637   : > { %v1659_v40 = vsel %vm1658_vm9, %v1656_v37, %v2388_v36  ;;  %v1660_v41 = vsel %vm1658_vm9, %v1657_v38, %v2389_v35 }
0x1638   : > { %v1661_v42 = vpack.c.bf16 %v1660_v41, %v1659_v40 }
0x163a   : > { %2331 = vmatmul.mubr.msk.bf16.vlgmr.msra.gmra.mxu1 %vm1704_vm10, %v1661_v42 }
0x16fa   : > { %v1742_v19 = vpop.f32.mrf.mxu1 }
0x16fb   : > { %v1743_v59 = vadd.f32 %v2071_v58, %v1742_v19 }
0x16fc   : > { %v2332_v60 = vpop.f32.mrf.mxu1 }
0x16fd   : > { %v1749_v61 = vmax.f32 %v1743_v59, 0.0  ;;  %v2094_v59 = vld [vmem:[%s3067_s13] ss:$0 sm:$0xff] (%p147_p0) }
0x16fe   : > { %v1745_v62 = vpop.f32.mrf.mxu1 }
0x16ff   : > { %v1746_v0 = vadd.f32 %v2071_v58, %v1745_v62  ;;  %v1780_v6 = vrot.slane %v1749_v61, 7  ;;  %v1786_v7 = vrot.slane %v1749_v61, 1  ;;  %v2095_v62 = vld [vmem:[%s3068_s14] ss:$0 sm:$0xff] (%p147_p0) }
0x1700   : > { %v2333_v3 = vpop.f32.mrf.mxu1 }
0x1701   : > { %v1750_v5 = vmax.f32 %v1746_v0, 0.0 }
0x1703   : > { %v1781_v14 = vrot.slane %v1750_v5, 7  ;;  %v1787_v47 = vrot.slane %v1750_v5, 1  ;;  %v2390_v13 = vpack.i.bf16 %v1750_v5, %v1749_v61 }
0x1705   : > { %2391 = vrot.lane.b32.xlu0 %v2390_v13, %s2523_s23  ;;  %v1788_v15 = vsel %vm1631_vm7, %v1786_v7, %v1787_v47  ;;  %v1789_v2 = vsel %vm1631_vm7, %v1787_v47, %v1786_v7  ;;  %v1782_v12 = vsel %vm1620_vm8, %v1780_v6, %v1781_v14  ;;  %v1783_v16 = vsel %vm1620_vm8, %v1781_v14, %v1780_v6 }
0x1706   : > { %v1790_v55 = vsel %vm2635_vm4, 0.0, %v1788_v15  ;;  %v1791_v17 = vsel %vm2639_vm5, 0.0, %v1789_v2  ;;  %v1784_v22 = vsel %vm2627_vm2, 0.0, %v1783_v16  ;;  %v1785_v23 = vsel %vm2631_vm3, 0.0, %v1782_v12 }
0x1707   : > { %v1803_v20 = vpack.c.bf16 %v1791_v17, %v1790_v55 }
0x1709   : > { %2093 = vmatprep.mubr.msk.bf16.mxu0 %vm1658_vm9, %v1803_v20 }
0x1777   : > { %v2392_v21 = vpop.permute.xlu0 %2391 }
0x1778   : > { %v2394_v51 = vunpack.i.h.bf16 %v2392_v21  ;;  %v2393_v32 = vunpack.i.l.bf16 %v2392_v21 }
0x177a   : > { %v1800_v49 = vsel %vm1658_vm9, %v1784_v22, %v2393_v32  ;;  %v1801_v24 = vsel %vm1658_vm9, %v1785_v23, %v2394_v51 }
0x177b   : > { %v1802_v25 = vpack.c.bf16 %v1801_v24, %v1800_v49 }
0x177d   : > { %1918 = vmatmul.mubr.bf16.vlgmr.msra.gmra.mxu0 %v1802_v25 }
0x183d   : > { %v1919_v27 = vpop.f32.mrf.mxu0 }
0x183e   : > { %v1920_v28 = vadd.f32 %v2080_v26, %v1919_v27 }
0x183f   : > { %v1921_v29 = vpop.f32.mrf.mxu0 }
0x1840   : > { %v1926_v30 = vadd.f32 %v1920_v28, %v2918_v1  }
0x1841   : > { %v1922_v39 = vpop.f32.mrf.mxu0 }
0x1842   : > { %v1923_v33 = vadd.f32 %v2080_v26, %v1922_v39  ;;  %v3079_v14 = vmov %v1926_v30  ;;  %149 = sbr.rel (!%p147_p0) target bundleno = 204 (0xcc), region = 97  ;;  %v1931_v36 = vsel (%p147_p0), %vm157_vm6, %v1926_v30, 0.0 }
0x1843   : > { %v1924_v34 = vpop.f32.mrf.mxu0  ;;  %1932 = vadd.xlane.f32.xlu0 (%p147_p0), %v1931_v36 }
0x1844   : > { %v1927_v35 = vadd.f32 %v1923_v33, %v2935_v31  }
0x1846   : > { %v3078_v18 = vmov %v1927_v35  ;;  %v1934_v1 = vsel (%p147_p0), %vm157_vm6, %v1927_v35, 0.0 }
0x1847   :  { %1935 = vadd.xlane.f32.xlu0 %v1934_v1 }
0x18cc   :  { %v1933_v37 = vpop.xlane.xlu0 %1932 }
0x18cd   :  { %v1938_v38 = vmul.f32 0.03125, %v1933_v37 }
0x18cf   :  { %v1940_v40 = vsub.f32 %v1926_v30, %v1938_v38 }
0x18d0   :  { %v1936_v31 = vpop.xlane.xlu0 %1935 }
0x18d1   :  { %v1939_v41 = vmul.f32 0.03125, %v1936_v31  ;;  %v1942_v42 = vmul.f32 %v1940_v40, %v1940_v40  ;;  %v1978_v60 = vmul.f32 %v2094_v59, %v1940_v40 }
0x18d3   :  { %v1941_v43 = vsub.f32 %v1927_v35, %v1939_v41  ;;  %v1944_v44 = vsel %vm157_vm6, %v1942_v42, 0.0 }
0x18d4   :  { %1945 = vadd.xlane.f32.xlu1 %v1944_v44 }
0x18d5   :  { %v1943_v45 = vmul.f32 %v1941_v43, %v1941_v43  ;;  %v1979_v3 = vmul.f32 %v2094_v59, %v1941_v43 }
0x18d7   :  { %v1947_v46 = vsel %vm157_vm6, %v1943_v45, 0.0 }
0x18d8   :  { %1948 = vadd.xlane.f32.xlu1 %v1947_v46 }
0x195d   :  { %v1946_v4 = vpop.xlane.xlu1 %1945 }
0x195e   :  { %v1950_v8 = vmul.f32 0.032258064, %v1946_v4 }
0x1960   :  { %2463 = vrsqrt.f32 %v1950_v8  ;;  %vm1954_vm2 = vcmp.eq.f32.partialorder %v1950_v8, inf  ;;  %v1957_v48 = vand.u32 2147483648, %v1950_v8  ;;  %vm1956_vm3 = vcmp.eq.f32.partialorder %v1950_v8, 0.0 }
0x1961   :  { %v1949_v9 = vpop.xlane.xlu1 %1948 }
0x1962   :  { %v1951_v10 = vmul.f32 0.032258064, %v1949_v9 }
0x1964   :  { %2465 = vrsqrt.f32 %v1951_v10  ;;  %vm1961_vm4 = vcmp.eq.f32.partialorder %v1951_v10, inf  ;;  %v1964_v57 = vand.u32 2147483648, %v1951_v10  ;;  %vm1963_vm5 = vcmp.eq.f32.partialorder %v1951_v10, 0.0 }
0x196d   :  { %v2464_v11 = vpop.eup %2463 }
0x196e   :  { %v1953_v18 = vmul.f32 %v2464_v11, %v1950_v8 }
0x1970   :  { %v1955_v50 = vsel %vm1954_vm2, %v1950_v8, %v1953_v18 }
0x1971   :  { %v2466_v52 = vpop.eup %2465  ;;  %v1958_v53 = vsel %vm1956_vm3, %v1957_v48, %v1955_v50 }
0x1972   :  { %v1966_v54 = vadd.f32 1e-06, %v1958_v53  ;;  %v1960_v56 = vmul.f32 %v2466_v52, %v1951_v10 }
0x1974   :  { %2467 = vrcp.f32 %v1966_v54  ;;  %v1962_v58 = vsel %vm1961_vm4, %v1951_v10, %v1960_v56 }
0x1975   :  { %v1965_v63 = vsel %vm1963_vm5, %v1964_v57, %v1962_v58 }
0x1976   :  { %v1967_v19 = vadd.f32 1e-06, %v1965_v63 }
0x1978   :  { %2469 = vrcp.f32 %v1967_v19 }
0x1981   :  { %v2468_v61 = vpop.eup %2467 }
0x1982   :  { %v1980_v0 = vmul.f32 %v2468_v61, %v1978_v60 }
0x1984   :  { %v1988_v5 = vadd.f32 %v2095_v62, %v1980_v0 }
0x1985   :  { %v2470_v6 = vpop.eup %2469 }
0x1986   :  { %v1981_v7 = vmul.f32 %v2470_v6, %v1979_v3  ;;  %1990 = vst.msk [vmem:[#allocation2] sm:$0xff] %vm157_vm6, %v1988_v5 }
0x1988   :  { %v1989_v14 = vadd.f32 %v2095_v62, %v1981_v7 }
0x198a   :  { %1991 = vst.msk [vmem:[#allocation2 + $0x8] sm:$0xff] %vm157_vm6, %v1989_v14 }
0x198b   :  { %2482 = shalt.err (!%p2479_p5)
}
0x198c   :  { %s2535_s10 = smov 128   ;;  %s2536_s11 = smov 8  }
0x198d   :  { %2003 = dma.vmem_to_hbm [thread:$0]  %s1998_s8, 256, %s3069_s15, [#allocation3], %s2535_s10, %s2535_s10, %s2536_s11  }
0x198e   :  { %2503 = dma.done.wait [#allocation3], 256  }
0x198f   :  { %2504 = vsyncadd [#allocation3], 4294967040 }
0x1990   :  { %2007 = vsyncpa [#allocation3], 1 }

</bundles_post_ra>
